<compile_context>
chip_gen: v7x
topology: tpu7x:2x2x1
jax: 0.10.0
libtpu: 0.0.40
codegen_flags: <defaults>
</compile_context>

<pallas_src>
import functools

import jax
import jax.numpy as jnp
from jax.experimental import pallas as pl
from jax.experimental.pallas import tpu as pltpu

LN_EPS = 1e-5
_MXU_DTYPE = jnp.bfloat16   # MXU operand dtype; accumulation stays fp32.


# ---------------------------------------------------------------------------
# Helpers
# ---------------------------------------------------------------------------

def _round_up(n, m):
    return ((n + m - 1) // m) * m


def _divisor_tile(n, max_tile, granule=128):
    """Largest multiple of `granule` that divides n and is <= max_tile (else n)."""
    best = n
    cand = granule
    while cand <= min(n, max_tile):
        if n % cand == 0:
            best = cand
        cand += granule
    return best


def _clamp_vmem(nbytes):
    """Scoped-VMEM request: at least the default 32 MiB, at most 64 MiB (v7x physical)."""
    return int(min(max(nbytes, 32 * 1024 * 1024), 64 * 1024 * 1024))


def _layernorm(y, gamma, beta, eps):
    mu = jnp.mean(y, axis=-1, keepdims=True)
    var = jnp.mean((y - mu) ** 2, axis=-1, keepdims=True)
    return (y - mu) * jax.lax.rsqrt(var + eps) * gamma + beta


# ---------------------------------------------------------------------------
# Kernel 1: fused  QKV-proj + multi-head attention + out-proj + residual + LN1
#   grid = (batch, query-row tiles); K/V projected once per batch into VMEM scratch.
# ---------------------------------------------------------------------------

def _attn_kernel(x_kv_ref, x_q_ref, wqkv_ref, bqkv_ref, wo_ref, bo_ref, g_ref, be_ref,
                 o_ref, k_scr, v_scr, ctx_scr, *, num_heads, eps):
    qi = pl.program_id(1)
    D = x_q_ref.shape[-1]
    hd = D // num_heads
    scale = 1.0 / float(hd) ** 0.5

    # K/V projection for the full sequence of this batch element: computed once per
    # batch (first q-tile) and cached in VMEM scratch across the q-tile ("arbitrary") axis.
    @pl.when(qi == 0)
    def _():
        xs = x_kv_ref[0].astype(_MXU_DTYPE)                               # (S, D)
        kv = jnp.dot(xs, wqkv_ref[:, D:], preferred_element_type=jnp.float32)
        kv = kv + bqkv_ref[:, D:]                                         # (S, 2D) f32
        k_scr[...] = kv[:, :D].astype(_MXU_DTYPE)
        v_scr[...] = kv[:, D:].astype(_MXU_DTYPE)

    # Q projection for this tile of query rows; fold 1/sqrt(hd) into q.
    x_rows = x_q_ref[0]                                                   # (tq, D) f32
    q = jnp.dot(x_rows.astype(_MXU_DTYPE), wqkv_ref[:, :D],
                preferred_element_type=jnp.float32)
    q = (q + bqkv_ref[:, :D]) * scale                                     # (tq, D) f32

    k = k_scr[...]                                                        # (S, D) bf16
    v = v_scr[...]
    for h in range(num_heads):
        lo, hi = h * hd, (h + 1) * hd
        q_h = q[:, lo:hi].astype(_MXU_DTYPE)                              # (tq, hd)
        # q . k^T without materializing a transpose: contract the last dims.
        s = jax.lax.dot_general(q_h, k[:, lo:hi], (((1,), (1,)), ((), ())),
                                preferred_element_type=jnp.float32)       # (tq, S)
        m = jnp.max(s, axis=-1, keepdims=True)
        p = jnp.exp(s - m)
        p = p / jnp.sum(p, axis=-1, keepdims=True)                        # exact, f32 VPU
        # Write head output directly into the ctx scratch at its lane offset.
        ctx_scr[:, lo:hi] = jnp.dot(p.astype(_MXU_DTYPE), v[:, lo:hi],
                                    preferred_element_type=jnp.float32)

    # Output projection + residual + LayerNorm epilogue.
    proj = jnp.dot(ctx_scr[...].astype(_MXU_DTYPE), wo_ref[...],
                   preferred_element_type=jnp.float32) + bo_ref[...]
    y = x_rows + proj
    o_ref[0] = _layernorm(y, g_ref[...], be_ref[...], eps).astype(o_ref.dtype)


def attention_block(x, w_qkv, b_qkv, wo, bo, ln_g, ln_b, num_heads, *, max_tq=256):
    """x: (B, S, D) fp32.  w_qkv: (D, 3D) bf16.  wo: (D, D) bf16.  Returns (B, S, D) fp32."""
    B, S, D = x.shape
    tq = min(max_tq, _round_up(S, 8))
    n_q = pl.cdiv(S, tq)

    need = (
        2 * S * D * 4            # x (K/V source), double-buffered f32
        + 2 * tq * D * 4         # x query/residual tile
        + 2 * tq * D * 4         # output tile
        + (3 * D * D + D * D) * 2  # w_qkv + wo (bf16, single-buffered)
        + 6 * D * 4 + 3 * D * 4  # biases + LN params
        + 2 * S * D * 2          # K/V scratch (bf16)
        + tq * D * 4             # ctx scratch
        + 2 * tq * S * 4         # live score / prob tiles
    )
    cparams = pltpu.CompilerParams(
        dimension_semantics=("parallel", "arbitrary"),
        vmem_limit_bytes=_clamp_vmem(int(need * 1.5)))

    const = dict(pipeline_mode=pl.Buffered(1))   # weights never change across the grid
    return pl.pallas_call(
        functools.partial(_attn_kernel, num_heads=num_heads, eps=LN_EPS),
        out_shape=jax.ShapeDtypeStruct((B, S, D), jnp.float32),
        grid=(B, n_q),
        in_specs=[
            pl.BlockSpec((1, S, D), lambda b, q: (b, 0, 0)),    # full sequence (K/V source)
            pl.BlockSpec((1, tq, D), lambda b, q: (b, q, 0)),   # query rows / residual
            pl.BlockSpec((D, 3 * D), lambda b, q: (0, 0), **const),
            pl.BlockSpec((1, 3 * D), lambda b, q: (0, 0), **const),
            pl.BlockSpec((D, D), lambda b, q: (0, 0), **const),
            pl.BlockSpec((1, D), lambda b, q: (0, 0), **const),
            pl.BlockSpec((1, D), lambda b, q: (0, 0), **const),
            pl.BlockSpec((1, D), lambda b, q: (0, 0), **const),
        ],
        out_specs=pl.BlockSpec((1, tq, D), lambda b, q: (b, q, 0)),
        scratch_shapes=[
            pltpu.VMEM((S, D), _MXU_DTYPE),      # K cache
            pltpu.VMEM((S, D), _MXU_DTYPE),      # V cache
            pltpu.VMEM((tq, D), jnp.float32),    # per-tile ctx (heads written in place)
        ],
        compiler_params=cparams,
    )(x, x, w_qkv, b_qkv, wo, bo, ln_g, ln_b)


# ---------------------------------------------------------------------------
# Kernel 2: fused FFN (Linear -> ReLU -> Linear) + residual + LN2, F-tiled reduction
# ---------------------------------------------------------------------------

def _ffn_kernel(x_ref, w1_ref, b1_ref, w2_ref, b2_ref, g_ref, be_ref, o_ref, acc_ref,
                *, eps):
    f = pl.program_id(1)

    @pl.when(f == 0)
    def _():
        acc_ref[...] = jnp.zeros_like(acc_ref)

    x = x_ref[...]                                                        # (tm, D) f32
    h = jnp.dot(x.astype(_MXU_DTYPE), w1_ref[...],
                preferred_element_type=jnp.float32) + b1_ref[...]
    h = jnp.maximum(h, 0.0)
    acc_ref[...] += jnp.dot(h.astype(_MXU_DTYPE), w2_ref[...],
                            preferred_element_type=jnp.float32)

    @pl.when(f == pl.num_programs(1) - 1)
    def _():
        z = x + acc_ref[...] + b2_ref[...]
        o_ref[...] = _layernorm(z, g_ref[...], be_ref[...], eps).astype(o_ref.dtype)


def ffn_block(x, w1, b1, w2, b2, ln_g, ln_b, *, max_rows=512, max_tf=1024):
    """x: (N, D) fp32.  w1: (D, F) bf16.  w2: (F, D) bf16.  Returns (N, D) fp32."""
    N, D = x.shape
    F = w1.shape[1]
    tm = min(max_rows, _round_up(N, 8))
    tf = _divisor_tile(F, max_tf)       # reduction tile must divide F exactly
    n_rows = pl.cdiv(N, tm)
    n_f = F // tf

    need = (
        2 * tm * D * 4                  # x tile (double-buffered)
        + 2 * tm * D * 4                # output tile
        + tm * D * 4                    # fp32 accumulator scratch
        + 2 * D * tf * 2 + 2 * tf * D * 2   # w1 / w2 tiles (bf16, double-buffered)
        + 2 * tf * 4 + 3 * D * 4        # biases + LN params
        + tm * tf * 4                   # live hidden tile
    )
    cparams = pltpu.CompilerParams(
        dimension_semantics=("parallel", "arbitrary"),
        vmem_limit_bytes=_clamp_vmem(int(need * 1.5)))

    const = dict(pipeline_mode=pl.Buffered(1))
    return pl.pallas_call(
        functools.partial(_ffn_kernel, eps=LN_EPS),
        out_shape=jax.ShapeDtypeStruct((N, D), jnp.float32),
        grid=(n_rows, n_f),
        in_specs=[
            pl.BlockSpec((tm, D), lambda i, f: (i, 0)),
            pl.BlockSpec((D, tf), lambda i, f: (0, f)),
            pl.BlockSpec((1, tf), lambda i, f: (0, f)),
            pl.BlockSpec((tf, D), lambda i, f: (f, 0)),
            pl.BlockSpec((1, D), lambda i, f: (0, 0), **const),
            pl.BlockSpec((1, D), lambda i, f: (0, 0), **const),
            pl.BlockSpec((1, D), lambda i, f: (0, 0), **const),
        ],
        out_specs=pl.BlockSpec((tm, D), lambda i, f: (i, 0)),
        scratch_shapes=[pltpu.VMEM((tm, D), jnp.float32)],
        compiler_params=cparams,
    )(x, w1, b1, w2, b2, ln_g, ln_b)


# ---------------------------------------------------------------------------
# Full encoder layer (forward)
# ---------------------------------------------------------------------------

def transformer_encoder_layer(src, params, num_heads, *,
                              attn_q_tile=256, ffn_row_tile=512, ffn_f_tile=1024):
    """src: (S, B, D) sequence-first, like nn.MultiheadAttention default."""
    S, B, D = src.shape

    # One boundary transpose to batch-first; everything else stays lane-dense.
    x_b = jnp.transpose(src, (1, 0, 2))                                   # (B, S, D)

    # Weights fed to the MXU as bf16 (halves DMA bytes / VMEM); biases & LN stay fp32.
    w_qkv = params["w_qkv"].astype(_MXU_DTYPE)
    wo = params["wo"].astype(_MXU_DTYPE)
    w1 = params["ff_w1"].astype(_MXU_DTYPE)
    w2 = params["ff_w2"].astype(_MXU_DTYPE)

    # --- fused QKV-proj + attention + out-proj + add + LN1 ---
    x1 = attention_block(x_b, w_qkv, params["b_qkv"], wo, params["bo"],
                         params["ln1_g"], params["ln1_b"], num_heads,
                         max_tq=attn_q_tile)                              # (B, S, D)

    # --- fused Linear-ReLU-Linear + add + LN2 (F-tiled reduction) ---
    x2 = ffn_block(x1.reshape(B * S, D),
                   w1, params["ff_b1"], w2, params["ff_b2"],
                   params["ln2_g"], params["ln2_b"],
                   max_rows=ffn_row_tile, max_tf=ffn_f_tile)              # (B*S, D)

    return jnp.transpose(x2.reshape(B, S, D), (1, 0, 2))                  # (S, B, D)


# ---------------------------------------------------------------------------
# Pure-JAX reference (fp32) for a sanity check
# ---------------------------------------------------------------------------

def reference_layer(src, params, num_heads):
    S, B, D = src.shape
    hd = D // num_heads

    qkv = jnp.einsum("sbd,de->sbe", src, params["w_qkv"]) + params["b_qkv"][0]
    q, k, v = qkv[..., :D], qkv[..., D:2 * D], qkv[..., 2 * D:]

    def split(t):
        return t.reshape(S, B, num_heads, hd).transpose(1, 2, 0, 3)       # (B,H,S,hd)

    q, k, v = split(q), split(k), split(v)
    s = jnp.einsum("bhqd,bhkd->bhqk", q, k) / float(hd) ** 0.5
    p = jax.nn.softmax(s, axis=-1)
    o = jnp.einsum("bhqk,bhkd->bhqd", p, v)
    o = o.transpose(2, 0, 1, 3).reshape(S, B, D)
    o = o @ params["wo"] + params["bo"][0]

    y = _layernorm(src + o, params["ln1_g"][0], params["ln1_b"][0], LN_EPS)
    h = jnp.maximum(y @ params["ff_w1"] + params["ff_b1"][0], 0.0)
    f = h @ params["ff_w2"] + params["ff_b2"][0]
    return _layernorm(y + f, params["ln2_g"][0], params["ln2_b"][0], LN_EPS)


# ---------------------------------------------------------------------------
# Deterministic parameter construction
# ---------------------------------------------------------------------------

def make_params(key, d_model, dim_ff):
    ks = jax.random.split(key, 4)
    s = 0.05
    return {
        "w_qkv": s * jax.random.normal(ks[0], (d_model, 3 * d_model), jnp.float32),
        "b_qkv": jnp.full((1, 3 * d_model), 0.01, jnp.float32),
        "wo": s * jax.random.normal(ks[1], (d_model, d_model), jnp.float32),
        "bo": jnp.full((1, d_model), 0.01, jnp.float32),
        "ff_w1": s * jax.random.normal(ks[2], (d_model, dim_ff), jnp.float32),
        "ff_b1": jnp.full((1, dim_ff), 0.01, jnp.float32),
        "ff_w2": s * jax.random.normal(ks[3], (dim_ff, d_model), jnp.float32),
        "ff_b2": jnp.full((1, d_model), 0.01, jnp.float32),
        "ln1_g": jnp.ones((1, d_model), jnp.float32),
        "ln1_b": jnp.zeros((1, d_model), jnp.float32),
        "ln2_g": jnp.ones((1, d_model), jnp.float32),
        "ln2_b": jnp.zeros((1, d_model), jnp.float32),
    }


if __name__ == "__main__":
    # Small but layout-friendly shapes: D / dim_ff multiples of 128, S a multiple of 8.
    # Tile sizes below force >1 step along every grid axis so the q-tile K/V cache,
    # the FFN reduction accumulator and the megacore "parallel" axes are all exercised.
    S, B, D, H, DIM_FF = 256, 2, 128, 4, 1024

    key = jax.random.PRNGKey(0)
    k_src, k_par = jax.random.split(key, 2)

    src = jax.random.normal(k_src, (S, B, D), jnp.float32)   # (seq, batch, d_model)
    params = make_params(k_par, D, DIM_FF)

    out = transformer_encoder_layer(src, params, num_heads=H,
                                    attn_q_tile=128, ffn_row_tile=256, ffn_f_tile=512)
    out = jax.block_until_ready(out)

    assert out.shape == (S, B, D)
    assert bool(jnp.all(jnp.isfinite(out)))

    ref = reference_layer(src, params, num_heads=H)
    # Tolerance accounts for bf16 MXU operands (fp32 accumulation, exact softmax division).
    assert jnp.allclose(out, ref, atol=3e-2, rtol=3e-2)

    print("KERNEL_OK")
</pallas_src>

<mosaic_0001>
module attributes {stable_mosaic.version = 11 : i64} {
  func.func @_attn_kernel(%arg0: i32, %arg1: i32, %arg2: memref<1x256x128xf32, #tpu.memory_space<vmem>>, %arg3: memref<1x128x128xf32, #tpu.memory_space<vmem>>, %arg4: memref<128x384xbf16, #tpu.memory_space<vmem>>, %arg5: memref<1x384xf32, #tpu.memory_space<vmem>>, %arg6: memref<128x128xbf16, #tpu.memory_space<vmem>>, %arg7: memref<1x128xf32, #tpu.memory_space<vmem>>, %arg8: memref<1x128xf32, #tpu.memory_space<vmem>>, %arg9: memref<1x128xf32, #tpu.memory_space<vmem>>, %arg10: memref<1x128x128xf32, #tpu.memory_space<vmem>>, %arg11: memref<256x128xbf16, #tpu.memory_space<vmem>>, %arg12: memref<256x128xbf16, #tpu.memory_space<vmem>>, %arg13: memref<128x128xf32, #tpu.memory_space<vmem>>) attributes {dimension_semantics = [#tpu.dimension_semantics<parallel>, #tpu.dimension_semantics<arbitrary>], iteration_bounds = array<i64: 2, 2>, scalar_prefetch = 0 : i64, scratch_operands = 3 : i64, tpu.core_type = #tpu.core_type<tc>, window_params = [{transform_indices = @transform_0, window_bounds = array<i64: 1, 256, 128>}, {transform_indices = @transform_1, window_bounds = array<i64: 1, 128, 128>}, {pipeline_mode = #tpu.pipeline_mode<synchronous>, transform_indices = @transform_2, window_bounds = array<i64: 128, 384>}, {pipeline_mode = #tpu.pipeline_mode<synchronous>, transform_indices = @transform_3, window_bounds = array<i64: 1, 384>}, {pipeline_mode = #tpu.pipeline_mode<synchronous>, transform_indices = @transform_4, window_bounds = array<i64: 128, 128>}, {pipeline_mode = #tpu.pipeline_mode<synchronous>, transform_indices = @transform_5, window_bounds = array<i64: 1, 128>}, {pipeline_mode = #tpu.pipeline_mode<synchronous>, transform_indices = @transform_6, window_bounds = array<i64: 1, 128>}, {pipeline_mode = #tpu.pipeline_mode<synchronous>, transform_indices = @transform_7, window_bounds = array<i64: 1, 128>}, {transform_indices = @transform_8, window_bounds = array<i64: 1, 128, 128>}]} {
    %c0_i32 = arith.constant 0 : i32
    %0 = arith.cmpi eq, %arg1, %c0_i32 : i32
    %1 = arith.extui %0 : i1 to i32
    %c0_i32_0 = arith.constant 0 : i32
    %2 = arith.cmpi ne, %1, %c0_i32_0 : i32
    scf.if %2 {
      %c0_52 = arith.constant 0 : index
      %c0_53 = arith.constant 0 : index
      %c0_54 = arith.constant 0 : index
      %118 = vector.load %arg2[%c0_52, %c0_53, %c0_54] : memref<1x256x128xf32, #tpu.memory_space<vmem>>, vector<1x256x128xf32>
      %119 = vector.shape_cast %118 : vector<1x256x128xf32> to vector<256x128xf32>
      %120 = arith.truncf %119 : vector<256x128xf32> to vector<256x128xbf16>
      %c0_55 = arith.constant 0 : index
      %c128 = arith.constant 128 : index
      %121 = vector.load %arg4[%c0_55, %c128] : memref<128x384xbf16, #tpu.memory_space<vmem>>, vector<128x256xbf16>
      %cst_56 = arith.constant dense<0.000000e+00> : vector<256x256xf32>
      %122 = tpu.matmul %120, %121, %cst_56 {dimension_numbers = #tpu.dot_dimension_numbers<[1], [0], [0], [1], [0, 0, 1, 1], [], []>} : vector<256x128xbf16>, vector<128x256xbf16>, vector<256x256xf32> -> vector<256x256xf32>
      %c0_57 = arith.constant 0 : index
      %c128_58 = arith.constant 128 : index
      %123 = vector.load %arg5[%c0_57, %c128_58] : memref<1x384xf32, #tpu.memory_space<vmem>>, vector<1x256xf32>
      %124 = vector.broadcast %123 : vector<1x256xf32> to vector<256x256xf32>
      %125 = arith.addf %122, %124 : vector<256x256xf32>
      %126 = vector.extract_strided_slice %125 {offsets = [0, 0], sizes = [256, 128], strides = [1, 1]} : vector<256x256xf32> to vector<256x128xf32>
      %127 = arith.truncf %126 : vector<256x128xf32> to vector<256x128xbf16>
      %c0_59 = arith.constant 0 : index
      %c0_60 = arith.constant 0 : index
      %128 = vector.load %arg11[%c0_59, %c0_60] : memref<256x128xbf16, #tpu.memory_space<vmem>>, vector<256x128xbf16>
      tpu.vector_store %arg11[%c0_59, %c0_60], %127 {strides = array<i32>} : memref<256x128xbf16, #tpu.memory_space<vmem>>, vector<256x128xbf16>,
      %129 = vector.extract_strided_slice %125 {offsets = [0, 128], sizes = [256, 128], strides = [1, 1]} : vector<256x256xf32> to vector<256x128xf32>
      %130 = arith.truncf %129 : vector<256x128xf32> to vector<256x128xbf16>
      %c0_61 = arith.constant 0 : index
      %c0_62 = arith.constant 0 : index
      %131 = vector.load %arg12[%c0_61, %c0_62] : memref<256x128xbf16, #tpu.memory_space<vmem>>, vector<256x128xbf16>
      tpu.vector_store %arg12[%c0_61, %c0_62], %130 {strides = array<i32>} : memref<256x128xbf16, #tpu.memory_space<vmem>>, vector<256x128xbf16>,
    } else {
    }
    %c0 = arith.constant 0 : index
    %c0_1 = arith.constant 0 : index
    %c0_2 = arith.constant 0 : index
    %3 = vector.load %arg3[%c0, %c0_1, %c0_2] : memref<1x128x128xf32, #tpu.memory_space<vmem>>, vector<1x128x128xf32>
    %4 = vector.shape_cast %3 : vector<1x128x128xf32> to vector<128x128xf32>
    %5 = arith.truncf %4 : vector<128x128xf32> to vector<128x128xbf16>
    %c0_3 = arith.constant 0 : index
    %c0_4 = arith.constant 0 : index
    %6 = vector.load %arg4[%c0_3, %c0_4] : memref<128x384xbf16, #tpu.memory_space<vmem>>, vector<128x128xbf16>
    %cst = arith.constant dense<0.000000e+00> : vector<128x128xf32>
    %7 = tpu.matmul %5, %6, %cst {dimension_numbers = #tpu.dot_dimension_numbers<[1], [0], [0], [1], [0, 0, 1, 1], [], []>} : vector<128x128xbf16>, vector<128x128xbf16>, vector<128x128xf32> -> vector<128x128xf32>
    %c0_5 = arith.constant 0 : index
    %c0_6 = arith.constant 0 : index
    %8 = vector.load %arg5[%c0_5, %c0_6] : memref<1x384xf32, #tpu.memory_space<vmem>>, vector<1x128xf32>
    %9 = vector.broadcast %8 : vector<1x128xf32> to vector<128x128xf32>
    %10 = arith.addf %7, %9 : vector<128x128xf32>
    %cst_7 = arith.constant 0.176776692 : f32
    %11 = vector.broadcast %cst_7 : f32 to vector<128x128xf32>
    %12 = arith.mulf %10, %11 : vector<128x128xf32>
    %c0_8 = arith.constant 0 : index
    %c0_9 = arith.constant 0 : index
    %13 = vector.load %arg11[%c0_8, %c0_9] : memref<256x128xbf16, #tpu.memory_space<vmem>>, vector<256x128xbf16>
    %c0_10 = arith.constant 0 : index
    %c0_11 = arith.constant 0 : index
    %14 = vector.load %arg12[%c0_10, %c0_11] : memref<256x128xbf16, #tpu.memory_space<vmem>>, vector<256x128xbf16>
    %15 = vector.extract_strided_slice %12 {offsets = [0, 0], sizes = [128, 32], strides = [1, 1]} : vector<128x128xf32> to vector<128x32xf32>
    %16 = arith.truncf %15 : vector<128x32xf32> to vector<128x32xbf16>
    %17 = vector.extract_strided_slice %13 {offsets = [0, 0], sizes = [256, 32], strides = [1, 1]} : vector<256x128xbf16> to vector<256x32xbf16>
    %cst_12 = arith.constant dense<0.000000e+00> : vector<128x256xf32>
    %18 = tpu.matmul %16, %17, %cst_12 {dimension_numbers = #tpu.dot_dimension_numbers<[1], [1], [0], [0], [0, 0, 1, 0], [], []>} : vector<128x32xbf16>, vector<256x32xbf16>, vector<128x256xf32> -> vector<128x256xf32>
    %cst_13 = arith.constant dense<0xFF800000> : vector<128xf32>
    %19 = vector.multi_reduction <maximumf>, %18, %cst_13 [1] : vector<128x256xf32> to vector<128xf32>
    %20 = vector.shape_cast %19 : vector<128xf32> to vector<128x1xf32>
    %21 = vector.broadcast %20 : vector<128x1xf32> to vector<128x256xf32>
    %22 = arith.subf %18, %21 : vector<128x256xf32>
    %23 = math.exp %22 : vector<128x256xf32>
    %cst_14 = arith.constant dense<0.000000e+00> : vector<128xf32>
    %24 = vector.multi_reduction <add>, %23, %cst_14 [1] : vector<128x256xf32> to vector<128xf32>
    %25 = vector.shape_cast %24 : vector<128xf32> to vector<128x1xf32>
    %26 = vector.broadcast %25 : vector<128x1xf32> to vector<128x256xf32>
    %27 = arith.divf %23, %26 : vector<128x256xf32>
    %28 = arith.truncf %27 : vector<128x256xf32> to vector<128x256xbf16>
    %29 = vector.extract_strided_slice %14 {offsets = [0, 0], sizes = [256, 32], strides = [1, 1]} : vector<256x128xbf16> to vector<256x32xbf16>
    %cst_15 = arith.constant dense<0.000000e+00> : vector<128x32xf32>
    %30 = tpu.matmul %28, %29, %cst_15 {dimension_numbers = #tpu.dot_dimension_numbers<[1], [0], [0], [1], [0, 0, 1, 1], [], []>} : vector<128x256xbf16>, vector<256x32xbf16>, vector<128x32xf32> -> vector<128x32xf32>
    %c0_16 = arith.constant 0 : index
    %c0_17 = arith.constant 0 : index
    %31 = vector.load %arg13[%c0_16, %c0_17] : memref<128x128xf32, #tpu.memory_space<vmem>>, vector<128x32xf32>
    tpu.vector_store %arg13[%c0_16, %c0_17], %30 {strides = array<i32>} : memref<128x128xf32, #tpu.memory_space<vmem>>, vector<128x32xf32>,
    %32 = vector.extract_strided_slice %12 {offsets = [0, 32], sizes = [128, 32], strides = [1, 1]} : vector<128x128xf32> to vector<128x32xf32>
    %33 = arith.truncf %32 : vector<128x32xf32> to vector<128x32xbf16>
    %34 = vector.extract_strided_slice %13 {offsets = [0, 32], sizes = [256, 32], strides = [1, 1]} : vector<256x128xbf16> to vector<256x32xbf16>
    %cst_18 = arith.constant dense<0.000000e+00> : vector<128x256xf32>
    %35 = tpu.matmul %33, %34, %cst_18 {dimension_numbers = #tpu.dot_dimension_numbers<[1], [1], [0], [0], [0, 0, 1, 0], [], []>} : vector<128x32xbf16>, vector<256x32xbf16>, vector<128x256xf32> -> vector<128x256xf32>
    %cst_19 = arith.constant dense<0xFF800000> : vector<128xf32>
    %36 = vector.multi_reduction <maximumf>, %35, %cst_19 [1] : vector<128x256xf32> to vector<128xf32>
    %37 = vector.shape_cast %36 : vector<128xf32> to vector<128x1xf32>
    %38 = vector.broadcast %37 : vector<128x1xf32> to vector<128x256xf32>
    %39 = arith.subf %35, %38 : vector<128x256xf32>
    %40 = math.exp %39 : vector<128x256xf32>
    %cst_20 = arith.constant dense<0.000000e+00> : vector<128xf32>
    %41 = vector.multi_reduction <add>, %40, %cst_20 [1] : vector<128x256xf32> to vector<128xf32>
    %42 = vector.shape_cast %41 : vector<128xf32> to vector<128x1xf32>
    %43 = vector.broadcast %42 : vector<128x1xf32> to vector<128x256xf32>
    %44 = arith.divf %40, %43 : vector<128x256xf32>
    %45 = arith.truncf %44 : vector<128x256xf32> to vector<128x256xbf16>
    %46 = vector.extract_strided_slice %14 {offsets = [0, 32], sizes = [256, 32], strides = [1, 1]} : vector<256x128xbf16> to vector<256x32xbf16>
    %cst_21 = arith.constant dense<0.000000e+00> : vector<128x32xf32>
    %47 = tpu.matmul %45, %46, %cst_21 {dimension_numbers = #tpu.dot_dimension_numbers<[1], [0], [0], [1], [0, 0, 1, 1], [], []>} : vector<128x256xbf16>, vector<256x32xbf16>, vector<128x32xf32> -> vector<128x32xf32>
    %c0_22 = arith.constant 0 : index
    %c32 = arith.constant 32 : index
    %48 = vector.load %arg13[%c0_22, %c32] : memref<128x128xf32, #tpu.memory_space<vmem>>, vector<128x32xf32>
    tpu.vector_store %arg13[%c0_22, %c32], %47 {strides = array<i32>} : memref<128x128xf32, #tpu.memory_space<vmem>>, vector<128x32xf32>,
    %49 = vector.extract_strided_slice %12 {offsets = [0, 64], sizes = [128, 32], strides = [1, 1]} : vector<128x128xf32> to vector<128x32xf32>
    %50 = arith.truncf %49 : vector<128x32xf32> to vector<128x32xbf16>
    %51 = vector.extract_strided_slice %13 {offsets = [0, 64], sizes = [256, 32], strides = [1, 1]} : vector<256x128xbf16> to vector<256x32xbf16>
    %cst_23 = arith.constant dense<0.000000e+00> : vector<128x256xf32>
    %52 = tpu.matmul %50, %51, %cst_23 {dimension_numbers = #tpu.dot_dimension_numbers<[1], [1], [0], [0], [0, 0, 1, 0], [], []>} : vector<128x32xbf16>, vector<256x32xbf16>, vector<128x256xf32> -> vector<128x256xf32>
    %cst_24 = arith.constant dense<0xFF800000> : vector<128xf32>
    %53 = vector.multi_reduction <maximumf>, %52, %cst_24 [1] : vector<128x256xf32> to vector<128xf32>
    %54 = vector.shape_cast %53 : vector<128xf32> to vector<128x1xf32>
    %55 = vector.broadcast %54 : vector<128x1xf32> to vector<128x256xf32>
    %56 = arith.subf %52, %55 : vector<128x256xf32>
    %57 = math.exp %56 : vector<128x256xf32>
    %cst_25 = arith.constant dense<0.000000e+00> : vector<128xf32>
    %58 = vector.multi_reduction <add>, %57, %cst_25 [1] : vector<128x256xf32> to vector<128xf32>
    %59 = vector.shape_cast %58 : vector<128xf32> to vector<128x1xf32>
    %60 = vector.broadcast %59 : vector<128x1xf32> to vector<128x256xf32>
    %61 = arith.divf %57, %60 : vector<128x256xf32>
    %62 = arith.truncf %61 : vector<128x256xf32> to vector<128x256xbf16>
    %63 = vector.extract_strided_slice %14 {offsets = [0, 64], sizes = [256, 32], strides = [1, 1]} : vector<256x128xbf16> to vector<256x32xbf16>
    %cst_26 = arith.constant dense<0.000000e+00> : vector<128x32xf32>
    %64 = tpu.matmul %62, %63, %cst_26 {dimension_numbers = #tpu.dot_dimension_numbers<[1], [0], [0], [1], [0, 0, 1, 1], [], []>} : vector<128x256xbf16>, vector<256x32xbf16>, vector<128x32xf32> -> vector<128x32xf32>
    %c0_27 = arith.constant 0 : index
    %c64 = arith.constant 64 : index
    %65 = vector.load %arg13[%c0_27, %c64] : memref<128x128xf32, #tpu.memory_space<vmem>>, vector<128x32xf32>
    tpu.vector_store %arg13[%c0_27, %c64], %64 {strides = array<i32>} : memref<128x128xf32, #tpu.memory_space<vmem>>, vector<128x32xf32>,
    %66 = vector.extract_strided_slice %12 {offsets = [0, 96], sizes = [128, 32], strides = [1, 1]} : vector<128x128xf32> to vector<128x32xf32>
    %67 = arith.truncf %66 : vector<128x32xf32> to vector<128x32xbf16>
    %68 = vector.extract_strided_slice %13 {offsets = [0, 96], sizes = [256, 32], strides = [1, 1]} : vector<256x128xbf16> to vector<256x32xbf16>
    %cst_28 = arith.constant dense<0.000000e+00> : vector<128x256xf32>
    %69 = tpu.matmul %67, %68, %cst_28 {dimension_numbers = #tpu.dot_dimension_numbers<[1], [1], [0], [0], [0, 0, 1, 0], [], []>} : vector<128x32xbf16>, vector<256x32xbf16>, vector<128x256xf32> -> vector<128x256xf32>
    %cst_29 = arith.constant dense<0xFF800000> : vector<128xf32>
    %70 = vector.multi_reduction <maximumf>, %69, %cst_29 [1] : vector<128x256xf32> to vector<128xf32>
    %71 = vector.shape_cast %70 : vector<128xf32> to vector<128x1xf32>
    %72 = vector.broadcast %71 : vector<128x1xf32> to vector<128x256xf32>
    %73 = arith.subf %69, %72 : vector<128x256xf32>
    %74 = math.exp %73 : vector<128x256xf32>
    %cst_30 = arith.constant dense<0.000000e+00> : vector<128xf32>
    %75 = vector.multi_reduction <add>, %74, %cst_30 [1] : vector<128x256xf32> to vector<128xf32>
    %76 = vector.shape_cast %75 : vector<128xf32> to vector<128x1xf32>
    %77 = vector.broadcast %76 : vector<128x1xf32> to vector<128x256xf32>
    %78 = arith.divf %74, %77 : vector<128x256xf32>
    %79 = arith.truncf %78 : vector<128x256xf32> to vector<128x256xbf16>
    %80 = vector.extract_strided_slice %14 {offsets = [0, 96], sizes = [256, 32], strides = [1, 1]} : vector<256x128xbf16> to vector<256x32xbf16>
    %cst_31 = arith.constant dense<0.000000e+00> : vector<128x32xf32>
    %81 = tpu.matmul %79, %80, %cst_31 {dimension_numbers = #tpu.dot_dimension_numbers<[1], [0], [0], [1], [0, 0, 1, 1], [], []>} : vector<128x256xbf16>, vector<256x32xbf16>, vector<128x32xf32> -> vector<128x32xf32>
    %c0_32 = arith.constant 0 : index
    %c96 = arith.constant 96 : index
    %82 = vector.load %arg13[%c0_32, %c96] : memref<128x128xf32, #tpu.memory_space<vmem>>, vector<128x32xf32>
    tpu.vector_store %arg13[%c0_32, %c96], %81 {strides = array<i32>} : memref<128x128xf32, #tpu.memory_space<vmem>>, vector<128x32xf32>,
    %c0_33 = arith.constant 0 : index
    %c0_34 = arith.constant 0 : index
    %83 = vector.load %arg13[%c0_33, %c0_34] : memref<128x128xf32, #tpu.memory_space<vmem>>, vector<128x128xf32>
    %84 = arith.truncf %83 : vector<128x128xf32> to vector<128x128xbf16>
    %c0_35 = arith.constant 0 : index
    %c0_36 = arith.constant 0 : index
    %85 = vector.load %arg6[%c0_35, %c0_36] : memref<128x128xbf16, #tpu.memory_space<vmem>>, vector<128x128xbf16>
    %cst_37 = arith.constant dense<0.000000e+00> : vector<128x128xf32>
    %86 = tpu.matmul %84, %85, %cst_37 {dimension_numbers = #tpu.dot_dimension_numbers<[1], [0], [0], [1], [0, 0, 1, 1], [], []>} : vector<128x128xbf16>, vector<128x128xbf16>, vector<128x128xf32> -> vector<128x128xf32>
    %c0_38 = arith.constant 0 : index
    %c0_39 = arith.constant 0 : index
    %87 = vector.load %arg7[%c0_38, %c0_39] : memref<1x128xf32, #tpu.memory_space<vmem>>, vector<1x128xf32>
    %88 = vector.broadcast %87 : vector<1x128xf32> to vector<128x128xf32>
    %89 = arith.addf %86, %88 : vector<128x128xf32>
    %90 = arith.addf %4, %89 : vector<128x128xf32>
    %c0_40 = arith.constant 0 : index
    %c0_41 = arith.constant 0 : index
    %91 = vector.load %arg8[%c0_40, %c0_41] : memref<1x128xf32, #tpu.memory_space<vmem>>, vector<1x128xf32>
    %c0_42 = arith.constant 0 : index
    %c0_43 = arith.constant 0 : index
    %92 = vector.load %arg9[%c0_42, %c0_43] : memref<1x128xf32, #tpu.memory_space<vmem>>, vector<1x128xf32>
    %cst_44 = arith.constant dense<0.000000e+00> : vector<128xf32>
    %93 = vector.multi_reduction <add>, %90, %cst_44 [1] : vector<128x128xf32> to vector<128xf32>
    %94 = vector.shape_cast %93 : vector<128xf32> to vector<128x1xf32>
    %cst_45 = arith.constant 1.280000e+02 : f32
    %95 = vector.broadcast %cst_45 : f32 to vector<128x1xf32>
    %96 = arith.divf %94, %95 : vector<128x1xf32>
    %97 = vector.broadcast %96 : vector<128x1xf32> to vector<128x128xf32>
    %98 = arith.subf %90, %97 : vector<128x128xf32>
    %99 = arith.mulf %98, %98 : vector<128x128xf32>
    %cst_46 = arith.constant dense<0.000000e+00> : vector<128xf32>
    %100 = vector.multi_reduction <add>, %99, %cst_46 [1] : vector<128x128xf32> to vector<128xf32>
    %101 = vector.shape_cast %100 : vector<128xf32> to vector<128x1xf32>
    %cst_47 = arith.constant 1.280000e+02 : f32
    %102 = vector.broadcast %cst_47 : f32 to vector<128x1xf32>
    %103 = arith.divf %101, %102 : vector<128x1xf32>
    %104 = vector.broadcast %96 : vector<128x1xf32> to vector<128x128xf32>
    %105 = arith.subf %90, %104 : vector<128x128xf32>
    %cst_48 = arith.constant 9.99999974E-6 : f32
    %106 = vector.broadcast %cst_48 : f32 to vector<128x1xf32>
    %107 = arith.addf %103, %106 : vector<128x1xf32>
    %108 = math.rsqrt %107 : vector<128x1xf32>
    %109 = vector.broadcast %108 : vector<128x1xf32> to vector<128x128xf32>
    %110 = arith.mulf %105, %109 : vector<128x128xf32>
    %111 = vector.broadcast %91 : vector<1x128xf32> to vector<128x128xf32>
    %112 = arith.mulf %110, %111 : vector<128x128xf32>
    %113 = vector.broadcast %92 : vector<1x128xf32> to vector<128x128xf32>
    %114 = arith.addf %112, %113 : vector<128x128xf32>
    %c0_49 = arith.constant 0 : index
    %c0_50 = arith.constant 0 : index
    %c0_51 = arith.constant 0 : index
    %115 = vector.load %arg10[%c0_49, %c0_50, %c0_51] : memref<1x128x128xf32, #tpu.memory_space<vmem>>, vector<1x128x128xf32>
    %116 = vector.shape_cast %115 : vector<1x128x128xf32> to vector<128x128xf32>
    %117 = vector.shape_cast %114 : vector<128x128xf32> to vector<1x128x128xf32>
    tpu.vector_store %arg10[%c0_49, %c0_50, %c0_51], %117 {strides = array<i32>} : memref<1x128x128xf32, #tpu.memory_space<vmem>>, vector<1x128x128xf32>,
    return
  }
  func.func @transform_0(%arg0: i32, %arg1: i32) -> (i32, i32, i32) {
    %c0_i32 = arith.constant 0 : i32
    %c0_i32_0 = arith.constant 0 : i32
    %c0_i32_1 = arith.constant 0 : i32
    return %arg0, %c0_i32, %c0_i32_0 : i32, i32, i32
  }
  func.func @transform_1(%arg0: i32, %arg1: i32) -> (i32, i32, i32) {
    %c0_i32 = arith.constant 0 : i32
    %c0_i32_0 = arith.constant 0 : i32
    return %arg0, %arg1, %c0_i32 : i32, i32, i32
  }
  func.func @transform_2(%arg0: i32, %arg1: i32) -> (i32, i32) {
    %c0_i32 = arith.constant 0 : i32
    %c0_i32_0 = arith.constant 0 : i32
    %c0_i32_1 = arith.constant 0 : i32
    return %c0_i32, %c0_i32_0 : i32, i32
  }
  func.func @transform_3(%arg0: i32, %arg1: i32) -> (i32, i32) {
    %c0_i32 = arith.constant 0 : i32
    %c0_i32_0 = arith.constant 0 : i32
    %c0_i32_1 = arith.constant 0 : i32
    return %c0_i32, %c0_i32_0 : i32, i32
  }
  func.func @transform_4(%arg0: i32, %arg1: i32) -> (i32, i32) {
    %c0_i32 = arith.constant 0 : i32
    %c0_i32_0 = arith.constant 0 : i32
    %c0_i32_1 = arith.constant 0 : i32
    return %c0_i32, %c0_i32_0 : i32, i32
  }
  func.func @transform_5(%arg0: i32, %arg1: i32) -> (i32, i32) {
    %c0_i32 = arith.constant 0 : i32
    %c0_i32_0 = arith.constant 0 : i32
    %c0_i32_1 = arith.constant 0 : i32
    return %c0_i32, %c0_i32_0 : i32, i32
  }
  func.func @transform_6(%arg0: i32, %arg1: i32) -> (i32, i32) {
    %c0_i32 = arith.constant 0 : i32
    %c0_i32_0 = arith.constant 0 : i32
    %c0_i32_1 = arith.constant 0 : i32
    return %c0_i32, %c0_i32_0 : i32, i32
  }
  func.func @transform_7(%arg0: i32, %arg1: i32) -> (i32, i32) {
    %c0_i32 = arith.constant 0 : i32
    %c0_i32_0 = arith.constant 0 : i32
    %c0_i32_1 = arith.constant 0 : i32
    return %c0_i32, %c0_i32_0 : i32, i32
  }
  func.func @transform_8(%arg0: i32, %arg1: i32) -> (i32, i32, i32) {
    %c0_i32 = arith.constant 0 : i32
    %c0_i32_0 = arith.constant 0 : i32
    return %arg0, %arg1, %c0_i32 : i32, i32, i32
  }
}

</mosaic_0001>

<bundles_post_ra>
// kernel: tpu_custom_call.1
= control target key start
LH: loop header
LB: loop body
LE: loop exit
PB: predicated region body
PF: predicated region fallthrough
CT: control target
= control target key end

     0   :  { %s8664_s0 = inlined_call_operand.hbm [shape: f32[2,256,128], index: 0, kind: input, shape index: {}]   ;;  %s8665_s1 = inlined_call_operand.hbm [shape: f32[2,256,128], index: 1, kind: input, shape index: {}]   ;;  %s8666_s2 = inlined_call_operand.hbm [shape: bf16[128,384], index: 2, kind: input, shape index: {}]   ;;  %s8667_s3 = inlined_call_operand.vmem [shape: f32[1,384], index: 3, kind: input, shape index: {}]   ;;  %s8668_s4 = inlined_call_operand.hbm [shape: bf16[128,128], index: 4, kind: input, shape index: {}]   ;;  %s8669_s5 = inlined_call_operand.vmem [shape: f32[1,128], index: 5, kind: input, shape index: {}]   ;;  %s8670_s6 = inlined_call_operand.vmem [shape: f32[1,128], index: 6, kind: input, shape index: {}]   ;;  %s8671_s7 = inlined_call_operand.vmem [shape: f32[1,128], index: 7, kind: input, shape index: {}]   ;;  %s8672_s8 = inlined_call_operand.hbm [shape: f32[2,256,128], index: 8, kind: output, shape index: {}]  }
   0x1   :  { %8795 = sst [smem:[#allocation107_spill]] %s8664_s0 }
   0x2   :  { %8796 = sst [smem:[#allocation108_spill]] %s8666_s2 }
   0x3   :  { %8797 = sst [smem:[#allocation109_spill]] %s8667_s3 }
   0x4   :  { %8798 = sst [smem:[#allocation110_spill]] %s8668_s4 }
   0x5   :  { %8799 = sst [smem:[#allocation111_spill]] %s8669_s5 }
   0x6   :  { %8800 = sst [smem:[#allocation112_spill]] %s8670_s6 }
   0x7   :  { %8801 = sst [smem:[#allocation113_spill]] %s8671_s7 }
   0x8   :  { %8802 = sst [smem:[#allocation114_spill]] %s8672_s8 }
   0x9   :  { %13 = vsyncpa [#allocation6], 0 }
   0xa   :  { %15 = vsyncpa [#allocation6 + $0x1], 0 }
   0xb   :  { %16 = vsyncpa [#allocation9], 0 }
   0xc   :  { %18 = vsyncpa [#allocation9 + $0x1], 0 }
   0xd   :  { %19 = vsyncpa [#allocation12], 0 }
   0xe   :  { %20 = vsyncpa [#allocation7], 0 }
   0xf   :  { %22 = vsyncpa [#allocation7 + $0x1], 0  ;;  %s6014_s27 = smov 0   ;;  %s6016_s28 = smov 0  }
  0x10   :  { %s6018_s29 = smov 0   ;;  %s6020_s30 = smov 0  }
  0x11   :  { %s6022_s9 = smov 0   ;;  %s6024_s10 = smov 0  }
  0x12   :  { %s6026_s11 = smov 0   ;;  %s6028_s12 = smov 0  }
  0x13   :  { %s6030_s13 = smov 0   ;;  %s6032_s14 = smov 0  }
  0x14   :  { %s6034_s15 = smov 0  }
  0x15 LB: > { %8803 = sst [smem:[#allocation19_spill]] %s5910_s27  ;;  %s6068_s16 = sadd.s32 4294967295, %s5950_s15   ;;  %s5950_s15 = sphi %s6034_s15, %s28_s15   ;;  %s5946_s14 = sphi %s6032_s14, %s9130_s14   ;;  %s5942_s13 = sphi %s6030_s13, %s9129_s13   ;;  %s5938_s12 = sphi %s6028_s12, %s9128_s12   ;;  %s5934_s11 = sphi %s6026_s11, %s9127_s11   ;;  %s5930_s10 = sphi %s6024_s10, %s9126_s10   ;;  %s5926_s9 = sphi %s6022_s9, %s9125_s9   ;;  %s5922_s30 = sphi %s6020_s30, %s9124_s30   ;;  %s5918_s29 = sphi %s6018_s29, %s9123_s29   ;;  %s5914_s28 = sphi %s6016_s28, %s9122_s28   ;;  %s5910_s27 = sphi %s6014_s27, %s9121_s27  }
  0x16   : > { %8804 = sst [smem:[#allocation20_spill]] %s5934_s11  ;;  %s4415_s17 = sadd.s32 4294967294, %s5950_s15  }
  0x17   : > { %8805 = sst [smem:[#allocation21_spill]] %s5938_s12  ;;  %p60_p0 = scmp.ne.s32.totalorder %s5926_s9, %s5922_s30 }
  0x18   : > { %p8676_p1 = scmp.eq.s32.totalorder %s6068_s16, 0  ;;  %p88_p2 = scmp.ne.s32.totalorder %s5914_s28, %s5910_s27 }
  0x19   : > { %p246_p4 = scmp.eq.s32.totalorder %s4415_s17, 3  ;;  %p4416_p6 = scmp.ge.s32.totalorder %s5950_s15, 1 }
  0x1a   : > { %p6077_p3 = por %p8676_p1, %p60_p0  ;;  %p6083_p5 = por %p88_p2, %p8676_p1 }
  0x1b   : > { %p6088_p7 = por %p246_p4, %p88_p2  ;;  %p253_p8 = scmp.lt.s32.totalorder %s5950_s15, 5 }
  0x1c   : > { %s8806_s18 = scalar_select %p6077_p3, 1, 0 }
  0x1d   : > { %s8807_s19 = scalar_select %p6083_p5, 1, 0 }
  0x1e   : > { %s8809_s20 = scalar_select %p6088_p7, 1, 0 }
  0x1f   : > { %8808 = sst [smem:[#allocation22_spill]] %s8807_s19  ;;  %p6093_p9 = pnand %p4416_p6, %p253_p8 }
  0x20   : > { %8810 = sst [smem:[#allocation23_spill]] %s8809_s20  ;;  %s5952_s22 = smov [#allocation10]  }
  0x21   : > { %s8811_s21 = scalar_select %p6093_p9, 1, 0 }
  0x22   : > { %s265_s23 = sshll.u32 %s5952_s22, 4  ;;  %p5067_p10 = pneg %p6093_p9  ;;  %s266_s23 = int_to_ptr.vmem [resolvable:$true] %s265_s23 }
  0x23   : > { %s5953_s25 = smov [#allocation11]   ;;  %s8813_s2 = sld [smem:[#allocation108_spill]] }
  0x24   : > { %p6101_p11 = pnand %p5067_p10, %p8676_p1  ;;  %s281_s26 = sshll.u32 %s5953_s25, 4  ;;  %s6105_s26 = int_to_ptr.vmem [resolvable:$true] %s281_s26 }
  0x26   : > { %p5702_p13 = pneg %p6101_p11 }
  0x29   : > { %s5700_s20 = scalar_lea.hbm %s8813_s2, 3072 }
  0x2a   : > { %p5701_p12 = scmp.ne.s32.totalorder %s8813_s2, %s5700_s20  ;;  %p5707_p4 = scmp.lt.u32.totalorder %s5700_s20, %s8813_s2 }
  0x2c   : > { %p5703_p0 = pnand %p5702_p13, %p5701_p12 }
  0x2e   : > { %p5704_p2 = pneg %p5703_p0 }
  0x30   : > { %p5709_p6 = pnand %p5707_p4, %p5704_p2 }
  0x32   : > { %5712 = shalt.err (!%p5709_p6)
}
  0x33   : > { %s5713_s25 = scalar_lea.vmem %s266_s23, 3072  ;;  %p5721_p7 = scmp.lt.s32.totalorder %s266_s23, %s266_s23 }
  0x34   : > { %p5714_p8 = scmp.ne.s32.totalorder %s266_s23, %s5713_s25  ;;  %p5722_p5 = scmp.lt.s32.totalorder %s5713_s25, %s5713_s25 }
  0x36   : > { %p5716_p10 = pnand %p5714_p8, %p5702_p13  ;;  %p5723_p3 = por %p5722_p5, %p5721_p7 }
  0x38   : > { %p5717_p1 = pneg %p5716_p10 }
  0x3a   : > { %p5724_p9 = pnand %p5723_p3, %p5717_p1 }
  0x3c   : > { %5727 = shalt.err (!%p5724_p9)
}
  0x3d   : > { %s5954_s27 = smov 192   ;;  %s5955_s30 = smov 12  }
  0x3e   : > { %5070 = dma.hbm_to_vmem [thread:$0]  (!%p6101_p11), %s8813_s2, 3072, %s266_s23, [#allocation9], %s5954_s27, %s5954_s27, %s5955_s30  }
  0x3f   : > { %s8814_s4 = sld [smem:[#allocation110_spill]] }
  0x45   : > { %s5728_s22 = scalar_lea.hbm %s8814_s4, 1024 }
  0x46   : > { %p5729_p12 = scmp.ne.s32.totalorder %s8814_s4, %s5728_s22  ;;  %p5735_p5 = scmp.lt.u32.totalorder %s5728_s22, %s8814_s4 }
  0x48   : > { %p5731_p1 = pnand %p5729_p12, %p5702_p13 }
  0x4a   : > { %p5732_p3 = pneg %p5731_p1 }
  0x4c   : > { %p5737_p7 = pnand %p5735_p5, %p5732_p3 }
  0x4e   : > { %5740 = shalt.err (!%p5737_p7)
}
  0x4f   : > { %s5741_s23 = scalar_lea.vmem %s6105_s26, 1024  ;;  %p5749_p4 = scmp.lt.s32.totalorder %s6105_s26, %s6105_s26 }
  0x50   : > { %p5742_p9 = scmp.ne.s32.totalorder %s6105_s26, %s5741_s23  ;;  %p5750_p6 = scmp.lt.s32.totalorder %s5741_s23, %s5741_s23 }
  0x52   : > { %p5744_p0 = pnand %p5742_p9, %p5702_p13  ;;  %p5751_p8 = por %p5750_p6, %p5749_p4 }
  0x54   : > { %p5745_p2 = pneg %p5744_p0 }
  0x56   : > { %p5752_p10 = pnand %p5751_p8, %p5745_p2 }
  0x58   : > { %5755 = shalt.err (!%p5752_p10)
}
  0x59   : > { %s5956_s5 = smov 64   ;;  %s5957_s6 = smov 4  }
  0x5a   : > { %5073 = dma.hbm_to_vmem [thread:$0]  (!%p6101_p11), %s8814_s4, 1024, %s6105_s26, [#allocation12], %s5956_s5, %s5956_s5, %s5957_s6  }
  0x5b   : > { %p240_p13 = scmp.eq.s32.totalorder %s6068_s16, 3  ;;  %s40_s30 = sadd.s32 1, %s5946_s14 }
  0x5c   : > { %p54_p12 = scmp.ne.s32.totalorder %s5930_s10, %s5926_s9  ;;  %p8681_p1 = scmp.eq.s32.totalorder %s5950_s15, 0 }
  0x5d   : > { %p8680_p3 = scmp.lt.s32.totalorder %s5950_s15, 4  ;;  %s304_s8 = sand.u32 1, %s5930_s10  }
  0x5e   : > { %p56_p5 = por %p8681_p1, %p54_p12  ;;  %s4420_s12 = sshll.u32 %s304_s8, 8 }
  0x5f   : > { %s4508_s20 = sshll.u32 %s5946_s14, 12  ;;  %s8815_s0 = sld [smem:[#allocation107_spill]] }
  0x60   : > { %s308_s24 = scalar_lea.vmem [#allocation5], %s4420_s12  ;;  %p6171_p11 = pnand %p8680_p3, %p56_p5 }
  0x61   : > { %s315_s26 = sshll.u32 %s308_s24, 4  ;;  %s6177_s5 = scalar_lea.sflag [#allocation6], %s304_s8  ;;  %s6175_s26 = int_to_ptr.vmem [resolvable:$true] %s315_s26 }
  0x62   : > { %p5758_p9 = pneg %p6171_p11 }
  0x65   : > { %s6167_s25 = scalar_lea.hbm %s8815_s0, %s4508_s20  ;;  %s5761_s12 = scalar_lea.hbm %s8815_s0, 8192 }
  0x66   : > { %s5756_s6 = scalar_lea.hbm %s6167_s25, 4096  ;;  %p5762_p4 = scmp.lt.u32.totalorder %s6167_s25, %s8815_s0 }
  0x67   : > { %p5757_p7 = scmp.ne.s32.totalorder %s6167_s25, %s5756_s6  ;;  %p5763_p6 = scmp.lt.u32.totalorder %s5761_s12, %s5756_s6 }
  0x68   : > { %p5765_p10 = scmp.lt.u32.totalorder %s5756_s6, %s6167_s25 }
  0x69   : > { %p5759_p0 = pnand %p5758_p9, %p5757_p7  ;;  %p5764_p8 = por %p5763_p6, %p5762_p4 }
  0x6b   : > { %p5760_p2 = pneg %p5759_p0  ;;  %p5766_p12 = por %p5765_p10, %p5764_p8 }
  0x6d   : > { %p5767_p5 = pnand %p5766_p12, %p5760_p2 }
  0x6f   : > { %5770 = shalt.err (!%p5767_p5)
}
  0x70   : > { %s5771_s8 = scalar_lea.vmem %s6175_s26, 4096  ;;  %s5958_s22 = smov [#allocation5]  }
  0x71   : > { %p5772_p7 = scmp.ne.s32.totalorder %s6175_s26, %s5771_s8  ;;  %s5776_s24 = sshll.u32 %s5958_s22, 4  ;;  %s5777_s24 = int_to_ptr.vmem [resolvable:$false] %s5776_s24 }
  0x72   : > { %s5778_s7 = scalar_lea.vmem %s5777_s24, 8192  ;;  %p5779_p1 = scmp.lt.s32.totalorder %s6175_s26, %s5777_s24 }
  0x73   : > { %p5774_p0 = pnand %p5772_p7, %p5758_p9  ;;  %p5780_p4 = scmp.lt.s32.totalorder %s5778_s7, %s5771_s8 }
  0x75   : > { %p5775_p3 = pneg %p5774_p0  ;;  %p5781_p6 = por %p5780_p4, %p5779_p1 }
  0x77   : > { %p5782_p8 = pnand %p5781_p6, %p5775_p3 }
  0x79   : > { %5785 = shalt.err (!%p5782_p8)
}
  0x7a   : > { %s8682_s6 = smov 128   ;;  %s8683_s27 = smov 8  }
  0x7b   : > { %5077 = dma.hbm_to_vmem [thread:$0]  (!%p6171_p11), %s6167_s25, 4096, %s6175_s26, %s6177_s5, %s8682_s6, %s8682_s6, %s8683_s27  }
  0x7c   : > { %s47_s12 = sadd.s32 1, %s5930_s10  ;;  %s37_s20 = sadd.s32 1, %s5942_s13 }
  0x7d   : > { %p38_p1 = scmp.ge.s32.totalorder %s37_s20, 2  ;;  %s75_s17 = sadd.s32 1, %s5918_s29 }
  0x7e   : > { %p82_p3 = scmp.ne.s32.totalorder %s5918_s29, %s5914_s28  ;;  %s327_s8 = sand.u32 1, %s5918_s29  }
  0x7f   : > { %s9132_s20 = smov (%p38_p1, %s37_s20), 0  ;;  %s9134_s30 = smov (!%p38_p1, %s40_s30), %s5946_s14 }
  0x80   : > { %8817 = sst [smem:[#allocation24_spill]] %s9132_s20  ;;  %s71_s23 = ssub.s32 %s5942_s13, %s9132_s20 }
  0x81   : > { %s325_s22 = sand.u32 1, %s5950_s15   ;;  %p42_p9 = scmp.ge.s32.totalorder %s9134_s30, 2 }
  0x82   : > { %p6224_p11 = por %p240_p13, %p82_p3  ;;  %p8820_p2 = scmp.eq.s32.totalorder %s5950_s15, 0 }
  0x83   : > { %s4423_s5 = sshll.u32 %s327_s8, 7  ;;  %s9136_s30 = smov (%p42_p9, %s9134_s30), 0 }
  0x84   : > { %s8818_s25 = scalar_select %p6224_p11, 1, 0 }
  0x85   : > { %p6230_p10 = por %p82_p3, %p8820_p2  ;;  %s4424_s24 = sshll.u32 %s5942_s13, 4 }
  0x86   : > { %8819 = sst [smem:[#allocation25_spill]] %s8818_s25  ;;  %s44_s7 = ssub.s32 %s5946_s14, %s9136_s30 }
  0x87   : > { %s4425_s6 = sshll.u32 %s5946_s14, 5  ;;  %p45_p12 = scmp.eq.s32.totalorder %s44_s7, 0 }
  0x88   : > { %s72_s27 = sor.u32 %s71_s23, %s44_s7  ;;  %s335_s0 = sadd.s32 %s4425_s6, %s4424_s24 }
  0x89   : > { %p73_p13 = scmp.eq.s32.totalorder %s72_s27, 0  ;;  %s4426_s20 = sshll.u32 %s335_s0, 7 }
  0x8a   : > { %s6241_s2 = scalar_select %p45_p12, %s5930_s10, %s47_s12  }
  0x8b   : > { %s6244_s4 = scalar_select %p73_p13, %s5918_s29, %s75_s17  }
  0x8c   : > { %s329_s25 = scalar_lea.vmem [#allocation8], %s4423_s5  ;;  %s6249_s19 = scalar_lea.hbm %s8665_s1, %s4426_s20 }
  0x8d   : > { %s338_s3 = sshll.u32 %s329_s25, 4  ;;  %p8822_p5 = scmp.lt.s32.totalorder %s5950_s15, 4  ;;  %s6251_s3 = int_to_ptr.vmem [resolvable:$true] %s338_s3 }
  0x8e   : > { %s6261_s0 = scalar_lea.sflag [#allocation9], %s325_s22  ;;  %s5786_s27 = scalar_lea.hbm %s6249_s19, 2048 }
  0x8f   : > { %p6257_p7 = pnand %p8822_p5, %p6230_p10  ;;  %p5787_p0 = scmp.ne.s32.totalorder %s6249_s19, %s5786_s27 }
  0x90   : > { %s5791_s20 = scalar_lea.hbm %s8665_s1, 8192  ;;  %p5792_p1 = scmp.lt.u32.totalorder %s6249_s19, %s8665_s1 }
  0x91   : > { %p5788_p4 = pneg %p6257_p7  ;;  %p5793_p3 = scmp.lt.u32.totalorder %s5791_s20, %s5786_s27 }
  0x92   : > { %p5795_p2 = scmp.lt.u32.totalorder %s5786_s27, %s6249_s19 }
  0x93   : > { %p5789_p6 = pnand %p5788_p4, %p5787_p0  ;;  %p5794_p9 = por %p5793_p3, %p5792_p1 }
  0x95   : > { %p5790_p8 = pneg %p5789_p6  ;;  %p5796_p10 = por %p5795_p2, %p5794_p9 }
  0x97   : > { %p5797_p12 = pnand %p5796_p10, %p5790_p8 }
  0x99   : > { %5800 = shalt.err (!%p5797_p12)
}
  0x9a   : > { %s5801_s22 = scalar_lea.vmem %s6251_s3, 2048  ;;  %s5961_s25 = smov [#allocation8]  }
  0x9b   : > { %p5802_p13 = scmp.ne.s32.totalorder %s6251_s3, %s5801_s22  ;;  %s5806_s26 = sshll.u32 %s5961_s25, 4  ;;  %s5807_s26 = int_to_ptr.vmem [resolvable:$false] %s5806_s26 }
  0x9c   : > { %s5808_s5 = scalar_lea.vmem %s5807_s26, 4096  ;;  %p5809_p6 = scmp.lt.s32.totalorder %s6251_s3, %s5807_s26 }
  0x9d   : > { %p5804_p5 = pnand %p5802_p13, %p5788_p4  ;;  %p5810_p1 = scmp.lt.s32.totalorder %s5808_s5, %s5801_s22 }
  0x9f   : > { %p5805_p0 = pneg %p5804_p5  ;;  %p5811_p3 = por %p5810_p1, %p5809_p6 }
  0xa1   : > { %p5812_p9 = pnand %p5811_p3, %p5805_p0 }
  0xa3   : > { %5815 = shalt.err (!%p5812_p9)
}
  0xa4   : > { %s8824_s24 = smov 8   ;;  %s8825_s7 = smov 128  }
  0xa5   : > { %5080 = dma.hbm_to_vmem [thread:$0]  (!%p6257_p7), %s6249_s19, 2048, %s6251_s3, %s6261_s0, %s8825_s7, %s8825_s7, %s8824_s24  }
  0xa6   : > { %p8826_p4 = scmp.ne.s32.totalorder %s8811_s21, 0 }
  0xa8   : > { %350 = sbr.rel (%p8826_p4) target bundleno = 3111 (0xc27), region = 52 }
  0xaf   : > { %s352_s8 = sand.u32 1, %s5926_s9   ;;  %p8827_p8 = scmp.ne.s32.totalorder %s8806_s18, 0 }
  0xb0   : > { %s4428_s27 = sshll.u32 %s352_s8, 8  ;;  %s353_s11 = scalar_lea.sflag [#allocation6], %s352_s8 }
  0xb1   : > { %s6295_s12 = scalar_lea.vmem [#allocation5], %s4428_s27 }
  0xb2   : > { %5889 = dma.done.wait (%p8827_p8), %s353_s11, 4096  }
  0xb3   : > { %5891 = vsyncadd (%p8827_p8), %s353_s11, 4294963200  ;;  %s8828_s6 = sld [smem:[#allocation22_spill]]  ;;  %s361_s3 = sand.u32 1, %s6068_s16  }
  0xb4   : > { %s363_s19 = sand.u32 1, %s5914_s28   ;;  %s362_s0 = scalar_lea.sflag [#allocation9], %s361_s3 }
  0xb5   : > { %s4429_s21 = sshll.u32 %s363_s19, 7 }
  0xb6   : > { %s6305_s20 = scalar_lea.vmem [#allocation8], %s4429_s21 }
  0xb9   : > { %p8829_p7 = scmp.ne.s32.totalorder %s8828_s6, 0 }
  0xbb   : > { %5893 = dma.done.wait (%p8829_p7), %s362_s0, 2048  }
  0xbc   : > { %5895 = vsyncadd (%p8829_p7), %s362_s0, 4294965248  ;;  %p8830_p2 = scmp.eq.s32.totalorder %s6068_s16, 0 }
  0xbe   : > { %5897 = dma.done.wait (%p8830_p2), [#allocation9], 3072   ;;  %p8831_p10 = pmov %p8830_p2 }
  0xbf   : > { %p8832_p12 = pmov %p8830_p2 }
  0xc0   : > { %5899 = vsyncadd (%p8831_p10), [#allocation9], 4294964224 }
  0xc1   : > { %5901 = dma.done.wait (%p8832_p12), [#allocation12], 1024   ;;  %p8833_p13 = pmov %p8830_p2 }
  0xc2   : > { %s6319_s18 = scalar_lea.vmem [#allocation13], %s4429_s21  ;;  %s8834_s17 = sld [smem:[#allocation20_spill]] }
  0xc3   : > { %5903 = vsyncadd (%p8833_p13), [#allocation12], 4294966272 }
  0xc8   : > { %p4433_p5 = scmp.ne.s32.totalorder %s8834_s17, 0 }
  0xc9   : > { %v5193_v0 = vld [vmem:[#allocation10 + $0x8] ss:$12 sps:$4 sm:$0xff] (!%p4433_p5)   ;;  %v5195_v1 = vld [vmem:[#allocation10 + $0x4] ss:$12 sps:$4 sm:$0xff] (!%p4433_p5)   ;;  %v5962_v2 = vmov (!%p4433_p5), 0   ;;  %v421_v24 = vld [vmem:[%s6295_s12 + $0x18] sm:$0xff] (!%p4433_p5) }
  0xca   : > { %417 = sbr.rel (%p4433_p5) target bundleno = 511 (0x1ff), region = 72  ;;  %606 = vmatprep.mubr.bf16.mxu0 (!%p4433_p5), %v5962_v2  ;;  %686 = vmatprep.mubr.bf16.mxu1 (!%p4433_p5), %v5962_v2  ;;  %v5196_v3 = vld [vmem:[#allocation10 + $0x20] ss:$12 sps:$4 sm:$0xff] (!%p4433_p5)   ;;  %v5198_v4 = vld [vmem:[#allocation10 + $0x1c] ss:$12 sps:$4 sm:$0xff] (!%p4433_p5)   ;;  %v420_v23 = vld [vmem:[%s6295_s12 + $0x10] sm:$0xff] (!%p4433_p5) }
  0xcb   : > { %574 = vmatprep.subr.bf16.mxu0 (!%p4433_p5), %v5193_v0  ;;  %4989 = vmatprep.subr.bf16.mxu1 (!%p4433_p5), %v5193_v0  ;;  %v5199_v5 = vld [vmem:[#allocation10 + $0x38] ss:$12 sps:$4 sm:$0xff] (!%p4433_p5)   ;;  %v5201_v6 = vld [vmem:[#allocation10 + $0x34] ss:$12 sps:$4 sm:$0xff] (!%p4433_p5)   ;;  %v5202_v7 = vld [vmem:[#allocation10 + $0x50] ss:$12 sps:$4 sm:$0xff] (!%p4433_p5)   ;;  %v451_v27 = vpack.c.bf16 (!%p4433_p5), %v421_v24, %v420_v23 }
  0xcc   : > { %575 = vmatpush1.bf16.msra.mxu0 (!%p4433_p5), %v5195_v1  ;;  %4997 = vmatpush1.bf16.msra.mxu1 (!%p4433_p5), %v5195_v1  ;;  %v5204_v8 = vld [vmem:[#allocation10 + $0x4c] ss:$12 sps:$4 sm:$0xff] (!%p4433_p5)   ;;  %v5205_v9 = vld [vmem:[#allocation10 + $0x68] ss:$12 sps:$4 sm:$0xff] (!%p4433_p5)   ;;  %v5207_v10 = vld [vmem:[#allocation10 + $0x64] ss:$12 sps:$4 sm:$0xff] (!%p4433_p5)   ;;  %v484_v1 = vlaneseq (!%p4433_p5) }
  0xcd   : > { %576 = vmatprep.subr.bf16.mxu0 (!%p4433_p5), %v5196_v3  ;;  %4990 = vmatprep.subr.bf16.mxu1 (!%p4433_p5), %v5196_v3  ;;  %v5208_v11 = vld [vmem:[#allocation10 + $0x80] ss:$12 sps:$4 sm:$0xff] (!%p4433_p5)   ;;  %v5210_v12 = vld [vmem:[#allocation10 + $0x7c] ss:$12 sps:$4 sm:$0xff] (!%p4433_p5)   ;;  %v5211_v13 = vld [vmem:[#allocation10 + $0x98] ss:$12 sps:$4 sm:$0xff] (!%p4433_p5)  }
  0xce   : > { %v5213_v14 = vld [vmem:[#allocation10 + $0x94] ss:$12 sps:$4 sm:$0xff] (!%p4433_p5)   ;;  %v5214_v15 = vld [vmem:[#allocation10 + $0xb0] ss:$12 sps:$4 sm:$0xff] (!%p4433_p5)   ;;  %v5216_v16 = vld [vmem:[#allocation10 + $0xac] ss:$12 sps:$4 sm:$0xff] (!%p4433_p5)  }
  0xcf   : > { %v418_v17 = vld [vmem:[%s6295_s12] sm:$0xff] (!%p4433_p5)  ;;  %v419_v18 = vld [vmem:[%s6295_s12 + $0x8] sm:$0xff] (!%p4433_p5)  ;;  %v436_v25 = vld [vmem:[%s6295_s12 + $0x90] sm:$0xff] (!%p4433_p5)  ;;  %v485_v3 = vshrl.u32 (!%p4433_p5), %v484_v1, 7  ;;  %s8835_s22 = sld [smem:[#allocation109_spill]] (!%p4433_p5) }
  0xd0   : > { %577 = vmatpush1.bf16.msra.mxu0 (!%p4433_p5), %v5198_v4  ;;  %4998 = vmatpush1.bf16.msra.mxu1 (!%p4433_p5), %v5198_v4  ;;  %v434_v19 = vld [vmem:[%s6295_s12 + $0x80] sm:$0xff] (!%p4433_p5)  ;;  %v435_v20 = vld [vmem:[%s6295_s12 + $0x88] sm:$0xff] (!%p4433_p5)  ;;  %v450_v21 = vpack.c.bf16 (!%p4433_p5), %v419_v18, %v418_v17  ;;  %v437_v26 = vld [vmem:[%s6295_s12 + $0x98] sm:$0xff] (!%p4433_p5) }
  0xd1   : > { %578 = vmatprep.subr.bf16.mxu0 %v5199_v5  ;;  %4991 = vmatprep.subr.bf16.mxu1 %v5199_v5  ;;  %v458_v22 = vpack.c.bf16 %v435_v20, %v434_v19  ;;  %v459_v28 = vpack.c.bf16 %v437_v26, %v436_v25  ;;  %v422_v29 = vld [vmem:[%s6295_s12 + $0x20] sm:$0xff]  ;;  %v423_v30 = vld [vmem:[%s6295_s12 + $0x28] sm:$0xff]  ;;  %v424_v35 = vld [vmem:[%s6295_s12 + $0x30] sm:$0xff]  ;;  %v486_v4 = vsub.s32 0, %v485_v3 }
  0xd2   : > { %v438_v31 = vld [vmem:[%s6295_s12 + $0xa0] sm:$0xff]  ;;  %v439_v32 = vld [vmem:[%s6295_s12 + $0xa8] sm:$0xff]  ;;  %v452_v33 = vpack.c.bf16 %v423_v30, %v422_v29  ;;  %v425_v36 = vld [vmem:[%s6295_s12 + $0x38] sm:$0xff] }
  0xd3   : > { %v460_v34 = vpack.c.bf16 %v439_v32, %v438_v31  ;;  %v440_v37 = vld [vmem:[%s6295_s12 + $0xb0] sm:$0xff]  ;;  %v441_v38 = vld [vmem:[%s6295_s12 + $0xb8] sm:$0xff]  ;;  %v453_v39 = vpack.c.bf16 %v425_v36, %v424_v35  ;;  %v426_v41 = vld [vmem:[%s6295_s12 + $0x40] sm:$0xff] }
  0xd4   : > { %579 = vmatpush1.bf16.msra.mxu0 %v5201_v6  ;;  %4999 = vmatpush1.bf16.msra.mxu1 %v5201_v6  ;;  %v461_v40 = vpack.c.bf16 %v441_v38, %v440_v37  ;;  %v427_v42 = vld [vmem:[%s6295_s12 + $0x48] sm:$0xff]  ;;  %v442_v43 = vld [vmem:[%s6295_s12 + $0xc0] sm:$0xff]  ;;  %v428_v47 = vld [vmem:[%s6295_s12 + $0x50] sm:$0xff]  ;;  %v490_v6 = vsub.s32 1, %v485_v3 }
  0xd5   : > { %580 = vmatprep.subr.bf16.mxu0 %v5202_v7  ;;  %4992 = vmatprep.subr.bf16.mxu1 %v5202_v7  ;;  %v443_v44 = vld [vmem:[%s6295_s12 + $0xc8] sm:$0xff]  ;;  %v454_v45 = vpack.c.bf16 %v427_v42, %v426_v41  ;;  %v429_v48 = vld [vmem:[%s6295_s12 + $0x58] sm:$0xff]  ;;  %v444_v49 = vld [vmem:[%s6295_s12 + $0xd0] sm:$0xff] }
  0xd6   : > { %v462_v46 = vpack.c.bf16 %v443_v44, %v442_v43  ;;  %v445_v50 = vld [vmem:[%s6295_s12 + $0xd8] sm:$0xff]  ;;  %v455_v51 = vpack.c.bf16 %v429_v48, %v428_v47  ;;  %v430_v53 = vld [vmem:[%s6295_s12 + $0x60] sm:$0xff]  ;;  %v431_v54 = vld [vmem:[%s6295_s12 + $0x68] sm:$0xff] }
  0xd7   : > { %v463_v52 = vpack.c.bf16 %v445_v50, %v444_v49  ;;  %v446_v55 = vld [vmem:[%s6295_s12 + $0xe0] sm:$0xff]  ;;  %v447_v56 = vld [vmem:[%s6295_s12 + $0xe8] sm:$0xff]  ;;  %v456_v57 = vpack.c.bf16 %v431_v54, %v430_v53  ;;  %v432_v59 = vld [vmem:[%s6295_s12 + $0x70] sm:$0xff] }
  0xd8   : > { %581 = vmatpush1.bf16.msra.mxu0 %v5204_v8  ;;  %5000 = vmatpush1.bf16.msra.mxu1 %v5204_v8  ;;  %v464_v58 = vpack.c.bf16 %v447_v56, %v446_v55  ;;  %v433_v60 = vld [vmem:[%s6295_s12 + $0x78] sm:$0xff]  ;;  %v448_v61 = vld [vmem:[%s6295_s12 + $0xf0] sm:$0xff]  ;;  %v482_v5 = vld [vmem:[%s8835_s22 + $0x1] sm:$0x3] }
  0xd9   : > { %582 = vmatprep.subr.bf16.mxu0 %v5205_v9  ;;  %4993 = vmatprep.subr.bf16.mxu1 %v5205_v9  ;;  %v449_v62 = vld [vmem:[%s6295_s12 + $0xf8] sm:$0xff]  ;;  %v457_v63 = vpack.c.bf16 %v433_v60, %v432_v59  ;;  %v6373_v7 = vrot.slane %v482_v5, %v486_v4 }
  0xda   : > { %v465_v0 = vpack.c.bf16 %v449_v62, %v448_v61 }
  0xdc   : > { %583 = vmatpush1.bf16.msra.mxu0 %v5207_v10  ;;  %5001 = vmatpush1.bf16.msra.mxu1 %v5207_v10 }
  0xdd   : > { %584 = vmatprep.subr.bf16.mxu0 %v5208_v11  ;;  %4994 = vmatprep.subr.bf16.mxu1 %v5208_v11 }
  0xe0   : > { %585 = vmatpush1.bf16.msra.mxu0 %v5210_v12  ;;  %5002 = vmatpush1.bf16.msra.mxu1 %v5210_v12 }
  0xe1   : > { %586 = vmatprep.subr.bf16.mxu0 %v5211_v13  ;;  %4995 = vmatprep.subr.bf16.mxu1 %v5211_v13 }
  0xe4   : > { %587 = vmatpush1.bf16.msra.mxu0 %v5213_v14  ;;  %5003 = vmatpush1.bf16.msra.mxu1 %v5213_v14 }
  0xe5   : > { %588 = vmatprep.subr.bf16.mxu0 %v5214_v15  ;;  %4996 = vmatprep.subr.bf16.mxu1 %v5214_v15 }
  0xe8   : > { %589 = vmatpush1.bf16.msra.mxu0 %v5216_v16  ;;  %5004 = vmatpush1.bf16.msra.mxu1 %v5216_v16 }
  0xeb   : > { %607 = vmatmul.mubr.bf16.vlgmr.msra.gmra.mrb[0].mxu0 %v450_v21  ;;  %687 = vmatmul.mubr.bf16.vlgmr.msra.gmra.mrb[0].mxu1 %v458_v22 }
  0xec   : > { %616 = vmatprep.mubr.bf16.mxu0 %v5962_v2  ;;  %696 = vmatprep.mubr.bf16.mxu1 %v5962_v2 }
  0xf3   : > { %617 = vmatmul.mubr.bf16.gmra.mrb[4].mxu0 %v451_v27  ;;  %697 = vmatmul.mubr.bf16.gmra.mrb[4].mxu1 %v459_v28 }
  0xf4   : > { %626 = vmatprep.mubr.bf16.mxu0 %v5962_v2  ;;  %706 = vmatprep.mubr.bf16.mxu1 %v5962_v2 }
  0xfb   : > { %627 = vmatmul.mubr.bf16.gmra.mrb[8].mxu0 %v452_v33  ;;  %707 = vmatmul.mubr.bf16.gmra.mrb[8].mxu1 %v460_v34 }
  0xfc   : > { %636 = vmatprep.mubr.bf16.mxu0 %v5962_v2  ;;  %716 = vmatprep.mubr.bf16.mxu1 %v5962_v2 }
 0x103   : > { %637 = vmatmul.mubr.bf16.gmra.mrb[12].mxu0 %v453_v39  ;;  %717 = vmatmul.mubr.bf16.gmra.mrb[12].mxu1 %v461_v40 }
 0x104   : > { %646 = vmatprep.mubr.bf16.mxu0 %v5962_v2  ;;  %726 = vmatprep.mubr.bf16.mxu1 %v5962_v2 }
 0x10b   : > { %647 = vmatmul.mubr.bf16.gmra.mrb[16].mxu0 %v454_v45  ;;  %727 = vmatmul.mubr.bf16.gmra.mrb[16].mxu1 %v462_v46 }
 0x10c   : > { %656 = vmatprep.mubr.bf16.mxu0 %v5962_v2  ;;  %736 = vmatprep.mubr.bf16.mxu1 %v5962_v2 }
 0x113   : > { %657 = vmatmul.mubr.bf16.gmra.mrb[20].mxu0 %v455_v51  ;;  %737 = vmatmul.mubr.bf16.gmra.mrb[20].mxu1 %v463_v52 }
 0x114   : > { %666 = vmatprep.mubr.bf16.mxu0 %v5962_v2  ;;  %746 = vmatprep.mubr.bf16.mxu1 %v5962_v2 }
 0x11b   : > { %667 = vmatmul.mubr.bf16.gmra.mrb[24].mxu0 %v456_v57  ;;  %747 = vmatmul.mubr.bf16.gmra.mrb[24].mxu1 %v464_v58 }
 0x11c   : > { %676 = vmatprep.mubr.bf16.mxu0 %v5962_v2  ;;  %756 = vmatprep.mubr.bf16.mxu1 %v5962_v2  ;;  %v6375_v2 = vrot.slane %v482_v5, %v490_v6 }
 0x123   : > { %677 = vmatmul.mubr.bf16.gmra.mrb[28].mxu0 %v457_v63  ;;  %757 = vmatmul.mubr.bf16.gmra.mrb[28].mxu1 %v465_v0 }
 0x1be   : > { %v608_v8 = vpop.f32.mrb[0].mxu0  ;;  %v688_v9 = vpop.f32.mrb[0].mxu1 }
 0x1bf   : > { %v610_v10 = vpop.f32.mrb[1].mxu0  ;;  %v690_v11 = vpop.f32.mrb[1].mxu1  ;;  %v609_v14 = vadd.f32 %v608_v8, %v6373_v7  ;;  %v689_v15 = vadd.f32 %v688_v9, %v6373_v7 }
 0x1c0   : > { %v612_v12 = vpop.f32.mrb[2].mxu0  ;;  %v692_v13 = vpop.f32.mrb[2].mxu1  ;;  %v611_v20 = vadd.f32 %v610_v10, %v6375_v2  ;;  %v691_v21 = vadd.f32 %v690_v11, %v6375_v2 }
 0x1c1   : > { %v613_v16 = vadd.f32 %v612_v12, %v6373_v7  ;;  %v693_v17 = vadd.f32 %v692_v13, %v6373_v7  ;;  %v614_v18 = vpop.f32.mrb[3].mxu0  ;;  %v694_v19 = vpop.f32.mrb[3].mxu1 }
 0x1c2   : > { %v615_v22 = vadd.f32 %v614_v18, %v6375_v2  ;;  %v695_v23 = vadd.f32 %v694_v19, %v6375_v2 }
 0x1c3   : > { %v767_v24 = vpack.c.bf16 %v613_v16, %v609_v14  ;;  %v775_v25 = vpack.c.bf16 %v693_v17, %v689_v15 }
 0x1c4   : > { %v799_v26 = vpack.c.bf16 %v615_v22, %v611_v20  ;;  %v807_v27 = vpack.c.bf16 %v695_v23, %v691_v21 }
 0x1c5   : > { %783 = vst [vmem:[#allocation2] sm:$0xff] %v767_v24  ;;  %791 = vst [vmem:[#allocation2 + $0x40] sm:$0xff] %v775_v25 }
 0x1c6   : > { %815 = vst [vmem:[#allocation3] sm:$0xff] %v799_v26  ;;  %823 = vst [vmem:[#allocation3 + $0x40] sm:$0xff] %v807_v27  ;;  %v618_v28 = vpop.f32.mrb[4].mxu0  ;;  %v698_v29 = vpop.f32.mrb[4].mxu1 }
 0x1c7   : > { %v620_v30 = vpop.f32.mrb[5].mxu0  ;;  %v700_v31 = vpop.f32.mrb[5].mxu1  ;;  %v619_v34 = vadd.f32 %v618_v28, %v6373_v7  ;;  %v699_v35 = vadd.f32 %v698_v29, %v6373_v7 }
 0x1c8   : > { %v622_v32 = vpop.f32.mrb[6].mxu0  ;;  %v702_v33 = vpop.f32.mrb[6].mxu1  ;;  %v621_v40 = vadd.f32 %v620_v30, %v6375_v2  ;;  %v701_v41 = vadd.f32 %v700_v31, %v6375_v2 }
 0x1c9   : > { %v623_v36 = vadd.f32 %v622_v32, %v6373_v7  ;;  %v703_v37 = vadd.f32 %v702_v33, %v6373_v7  ;;  %v624_v38 = vpop.f32.mrb[7].mxu0  ;;  %v704_v39 = vpop.f32.mrb[7].mxu1 }
 0x1ca   : > { %v625_v42 = vadd.f32 %v624_v38, %v6375_v2  ;;  %v705_v43 = vadd.f32 %v704_v39, %v6375_v2 }
 0x1cb   : > { %v768_v44 = vpack.c.bf16 %v623_v36, %v619_v34  ;;  %v776_v45 = vpack.c.bf16 %v703_v37, %v699_v35 }
 0x1cc   : > { %v800_v46 = vpack.c.bf16 %v625_v42, %v621_v40  ;;  %v808_v47 = vpack.c.bf16 %v705_v43, %v701_v41 }
 0x1cd   : > { %784 = vst [vmem:[#allocation2 + $0x8] sm:$0xff] %v768_v44  ;;  %792 = vst [vmem:[#allocation2 + $0x48] sm:$0xff] %v776_v45 }
 0x1ce   : > { %816 = vst [vmem:[#allocation3 + $0x8] sm:$0xff] %v800_v46  ;;  %824 = vst [vmem:[#allocation3 + $0x48] sm:$0xff] %v808_v47  ;;  %v628_v48 = vpop.f32.mrb[8].mxu0  ;;  %v708_v49 = vpop.f32.mrb[8].mxu1 }
 0x1cf   : > { %v630_v50 = vpop.f32.mrb[9].mxu0  ;;  %v710_v51 = vpop.f32.mrb[9].mxu1  ;;  %v629_v54 = vadd.f32 %v628_v48, %v6373_v7  ;;  %v709_v55 = vadd.f32 %v708_v49, %v6373_v7 }
 0x1d0   : > { %v632_v52 = vpop.f32.mrb[10].mxu0  ;;  %v712_v53 = vpop.f32.mrb[10].mxu1  ;;  %v631_v60 = vadd.f32 %v630_v50, %v6375_v2  ;;  %v711_v61 = vadd.f32 %v710_v51, %v6375_v2 }
 0x1d1   : > { %v633_v56 = vadd.f32 %v632_v52, %v6373_v7  ;;  %v713_v57 = vadd.f32 %v712_v53, %v6373_v7  ;;  %v634_v58 = vpop.f32.mrb[11].mxu0  ;;  %v714_v59 = vpop.f32.mrb[11].mxu1 }
 0x1d2   : > { %v635_v62 = vadd.f32 %v634_v58, %v6375_v2  ;;  %v715_v63 = vadd.f32 %v714_v59, %v6375_v2 }
 0x1d3   : > { %v769_v0 = vpack.c.bf16 %v633_v56, %v629_v54  ;;  %v777_v1 = vpack.c.bf16 %v713_v57, %v709_v55 }
 0x1d4   : > { %v801_v3 = vpack.c.bf16 %v635_v62, %v631_v60  ;;  %v809_v4 = vpack.c.bf16 %v715_v63, %v711_v61 }
 0x1d5   : > { %785 = vst [vmem:[#allocation2 + $0x10] sm:$0xff] %v769_v0  ;;  %793 = vst [vmem:[#allocation2 + $0x50] sm:$0xff] %v777_v1 }
 0x1d6   : > { %817 = vst [vmem:[#allocation3 + $0x10] sm:$0xff] %v801_v3  ;;  %825 = vst [vmem:[#allocation3 + $0x50] sm:$0xff] %v809_v4  ;;  %v638_v5 = vpop.f32.mrb[12].mxu0  ;;  %v718_v6 = vpop.f32.mrb[12].mxu1 }
 0x1d7   : > { %v640_v8 = vpop.f32.mrb[13].mxu0  ;;  %v720_v9 = vpop.f32.mrb[13].mxu1  ;;  %v639_v12 = vadd.f32 %v638_v5, %v6373_v7  ;;  %v719_v13 = vadd.f32 %v718_v6, %v6373_v7 }
 0x1d8   : > { %v642_v10 = vpop.f32.mrb[14].mxu0  ;;  %v722_v11 = vpop.f32.mrb[14].mxu1  ;;  %v641_v18 = vadd.f32 %v640_v8, %v6375_v2  ;;  %v721_v19 = vadd.f32 %v720_v9, %v6375_v2 }
 0x1d9   : > { %v643_v14 = vadd.f32 %v642_v10, %v6373_v7  ;;  %v723_v15 = vadd.f32 %v722_v11, %v6373_v7  ;;  %v644_v16 = vpop.f32.mrb[15].mxu0  ;;  %v724_v17 = vpop.f32.mrb[15].mxu1 }
 0x1da   : > { %v645_v20 = vadd.f32 %v644_v16, %v6375_v2  ;;  %v725_v21 = vadd.f32 %v724_v17, %v6375_v2 }
 0x1db   : > { %v770_v22 = vpack.c.bf16 %v643_v14, %v639_v12  ;;  %v778_v23 = vpack.c.bf16 %v723_v15, %v719_v13 }
 0x1dc   : > { %v802_v24 = vpack.c.bf16 %v645_v20, %v641_v18  ;;  %v810_v25 = vpack.c.bf16 %v725_v21, %v721_v19 }
 0x1dd   : > { %786 = vst [vmem:[#allocation2 + $0x18] sm:$0xff] %v770_v22  ;;  %794 = vst [vmem:[#allocation2 + $0x58] sm:$0xff] %v778_v23 }
 0x1de   : > { %818 = vst [vmem:[#allocation3 + $0x18] sm:$0xff] %v802_v24  ;;  %826 = vst [vmem:[#allocation3 + $0x58] sm:$0xff] %v810_v25  ;;  %v648_v26 = vpop.f32.mrb[16].mxu0  ;;  %v728_v27 = vpop.f32.mrb[16].mxu1 }
 0x1df   : > { %v650_v28 = vpop.f32.mrb[17].mxu0  ;;  %v730_v29 = vpop.f32.mrb[17].mxu1  ;;  %v649_v32 = vadd.f32 %v648_v26, %v6373_v7  ;;  %v729_v33 = vadd.f32 %v728_v27, %v6373_v7 }
 0x1e0   : > { %v652_v30 = vpop.f32.mrb[18].mxu0  ;;  %v732_v31 = vpop.f32.mrb[18].mxu1  ;;  %v651_v38 = vadd.f32 %v650_v28, %v6375_v2  ;;  %v731_v39 = vadd.f32 %v730_v29, %v6375_v2 }
 0x1e1   : > { %v653_v34 = vadd.f32 %v652_v30, %v6373_v7  ;;  %v733_v35 = vadd.f32 %v732_v31, %v6373_v7  ;;  %v654_v36 = vpop.f32.mrb[19].mxu0  ;;  %v734_v37 = vpop.f32.mrb[19].mxu1 }
 0x1e2   : > { %v655_v40 = vadd.f32 %v654_v36, %v6375_v2  ;;  %v735_v41 = vadd.f32 %v734_v37, %v6375_v2 }
 0x1e3   : > { %v771_v42 = vpack.c.bf16 %v653_v34, %v649_v32  ;;  %v779_v43 = vpack.c.bf16 %v733_v35, %v729_v33 }
 0x1e4   : > { %v803_v44 = vpack.c.bf16 %v655_v40, %v651_v38  ;;  %v811_v45 = vpack.c.bf16 %v735_v41, %v731_v39 }
 0x1e5   : > { %787 = vst [vmem:[#allocation2 + $0x20] sm:$0xff] %v771_v42  ;;  %795 = vst [vmem:[#allocation2 + $0x60] sm:$0xff] %v779_v43 }
 0x1e6   : > { %819 = vst [vmem:[#allocation3 + $0x20] sm:$0xff] %v803_v44  ;;  %827 = vst [vmem:[#allocation3 + $0x60] sm:$0xff] %v811_v45  ;;  %v658_v46 = vpop.f32.mrb[20].mxu0  ;;  %v738_v47 = vpop.f32.mrb[20].mxu1 }
 0x1e7   : > { %v660_v48 = vpop.f32.mrb[21].mxu0  ;;  %v740_v49 = vpop.f32.mrb[21].mxu1  ;;  %v659_v52 = vadd.f32 %v658_v46, %v6373_v7  ;;  %v739_v53 = vadd.f32 %v738_v47, %v6373_v7 }
 0x1e8   : > { %v662_v50 = vpop.f32.mrb[22].mxu0  ;;  %v742_v51 = vpop.f32.mrb[22].mxu1  ;;  %v661_v58 = vadd.f32 %v660_v48, %v6375_v2  ;;  %v741_v59 = vadd.f32 %v740_v49, %v6375_v2 }
 0x1e9   : > { %v663_v54 = vadd.f32 %v662_v50, %v6373_v7  ;;  %v743_v55 = vadd.f32 %v742_v51, %v6373_v7  ;;  %v664_v56 = vpop.f32.mrb[23].mxu0  ;;  %v744_v57 = vpop.f32.mrb[23].mxu1 }
 0x1ea   : > { %v665_v60 = vadd.f32 %v664_v56, %v6375_v2  ;;  %v745_v61 = vadd.f32 %v744_v57, %v6375_v2 }
 0x1eb   : > { %v772_v62 = vpack.c.bf16 %v663_v54, %v659_v52  ;;  %v780_v63 = vpack.c.bf16 %v743_v55, %v739_v53 }
 0x1ec   : > { %v804_v0 = vpack.c.bf16 %v665_v60, %v661_v58  ;;  %v812_v1 = vpack.c.bf16 %v745_v61, %v741_v59 }
 0x1ed   : > { %788 = vst [vmem:[#allocation2 + $0x28] sm:$0xff] %v772_v62  ;;  %796 = vst [vmem:[#allocation2 + $0x68] sm:$0xff] %v780_v63 }
 0x1ee   : > { %820 = vst [vmem:[#allocation3 + $0x28] sm:$0xff] %v804_v0  ;;  %828 = vst [vmem:[#allocation3 + $0x68] sm:$0xff] %v812_v1  ;;  %v668_v3 = vpop.f32.mrb[24].mxu0  ;;  %v748_v4 = vpop.f32.mrb[24].mxu1 }
 0x1ef   : > { %v670_v5 = vpop.f32.mrb[25].mxu0  ;;  %v750_v6 = vpop.f32.mrb[25].mxu1  ;;  %v669_v10 = vadd.f32 %v668_v3, %v6373_v7  ;;  %v749_v11 = vadd.f32 %v748_v4, %v6373_v7 }
 0x1f0   : > { %v672_v8 = vpop.f32.mrb[26].mxu0  ;;  %v752_v9 = vpop.f32.mrb[26].mxu1  ;;  %v671_v16 = vadd.f32 %v670_v5, %v6375_v2  ;;  %v751_v17 = vadd.f32 %v750_v6, %v6375_v2 }
 0x1f1   : > { %v673_v12 = vadd.f32 %v672_v8, %v6373_v7  ;;  %v753_v13 = vadd.f32 %v752_v9, %v6373_v7  ;;  %v674_v14 = vpop.f32.mrb[27].mxu0  ;;  %v754_v15 = vpop.f32.mrb[27].mxu1 }
 0x1f2   : > { %v675_v18 = vadd.f32 %v674_v14, %v6375_v2  ;;  %v755_v19 = vadd.f32 %v754_v15, %v6375_v2 }
 0x1f3   : > { %v773_v20 = vpack.c.bf16 %v673_v12, %v669_v10  ;;  %v781_v21 = vpack.c.bf16 %v753_v13, %v749_v11 }
 0x1f4   : > { %v805_v22 = vpack.c.bf16 %v675_v18, %v671_v16  ;;  %v813_v23 = vpack.c.bf16 %v755_v19, %v751_v17 }
 0x1f5   : > { %789 = vst [vmem:[#allocation2 + $0x30] sm:$0xff] %v773_v20  ;;  %797 = vst [vmem:[#allocation2 + $0x70] sm:$0xff] %v781_v21 }
 0x1f6   : > { %821 = vst [vmem:[#allocation3 + $0x30] sm:$0xff] %v805_v22  ;;  %829 = vst [vmem:[#allocation3 + $0x70] sm:$0xff] %v813_v23  ;;  %v678_v24 = vpop.f32.mrb[28].mxu0  ;;  %v758_v25 = vpop.f32.mrb[28].mxu1 }
 0x1f7   : > { %v680_v26 = vpop.f32.mrb[29].mxu0  ;;  %v760_v27 = vpop.f32.mrb[29].mxu1  ;;  %v679_v30 = vadd.f32 %v678_v24, %v6373_v7  ;;  %v759_v31 = vadd.f32 %v758_v25, %v6373_v7 }
 0x1f8   : > { %v682_v28 = vpop.f32.mrb[30].mxu0  ;;  %v762_v29 = vpop.f32.mrb[30].mxu1  ;;  %v681_v36 = vadd.f32 %v680_v26, %v6375_v2  ;;  %v761_v37 = vadd.f32 %v760_v27, %v6375_v2 }
 0x1f9   : > { %v683_v32 = vadd.f32 %v682_v28, %v6373_v7  ;;  %v763_v33 = vadd.f32 %v762_v29, %v6373_v7  ;;  %v684_v34 = vpop.f32.mrb[31].mxu0  ;;  %v764_v35 = vpop.f32.mrb[31].mxu1 }
 0x1fa   : > { %v685_v38 = vadd.f32 %v684_v34, %v6375_v2  ;;  %v765_v39 = vadd.f32 %v764_v35, %v6375_v2 }
 0x1fb   : > { %v774_v40 = vpack.c.bf16 %v683_v32, %v679_v30  ;;  %v782_v41 = vpack.c.bf16 %v763_v33, %v759_v31 }
 0x1fc   : > { %v806_v42 = vpack.c.bf16 %v685_v38, %v681_v36  ;;  %v814_v43 = vpack.c.bf16 %v765_v39, %v761_v37 }
 0x1fd   : > { %790 = vst [vmem:[#allocation2 + $0x38] sm:$0xff] %v774_v40  ;;  %798 = vst [vmem:[#allocation2 + $0x78] sm:$0xff] %v782_v41 }
 0x1fe   : > { %822 = vst [vmem:[#allocation3 + $0x38] sm:$0xff] %v806_v42  ;;  %830 = vst [vmem:[#allocation3 + $0x78] sm:$0xff] %v814_v43 }
 0x1ff PF: > { %v5217_v7 = vld [vmem:[#allocation10] ss:$12 sps:$4 sm:$0xff]   ;;  %v5218_v44 = vld [vmem:[#allocation10 + $0x18] ss:$12 sps:$4 sm:$0xff]   ;;  %v5219_v45 = vld [vmem:[#allocation10 + $0x30] ss:$12 sps:$4 sm:$0xff]  }
 0x200   : > { %4925 = vmatprep.subr.bf16.mxu0 %v5217_v7  ;;  %v5220_v2 = vld [vmem:[#allocation10 + $0x48] ss:$12 sps:$4 sm:$0xff]   ;;  %v831_v46 = vld [vmem:[%s6305_s20] sm:$0xff]  ;;  %vm1079_vm0 = vcmask 261120   ;;  %v5223_v56 = vld [vmem:[#allocation10 + $0x90] ss:$12 sps:$4 sm:$0xff]  }
 0x201   : > { %4926 = vmatpush3.bf16.msra.mxu0 %v5217_v7  ;;  %v832_v47 = vld [vmem:[%s6305_s20 + $0x8] sm:$0xff]  ;;  %v6443_v50 = vld [vmem:[#allocation2 + $0x40] sm:$0xff]  ;;  %v6459_v58 = vld [vmem:[#allocation2 + $0x50] sm:$0xff]  ;;  %s5963_s25 = smov 96   ;;  %s8838_s24 = sld [smem:[#allocation109_spill]]  ;;  %vm2372_vm1 = vcmask 523520  }
 0x202   : > { %4927 = vmatprep.subr.bf16.mxu0 %v5218_v44  ;;  %v847_v48 = vpack.c.bf16 %v832_v47, %v831_v46  ;;  %v5221_v49 = vld [vmem:[#allocation10 + $0x60] ss:$12 sps:$4 sm:$0xff]   ;;  %5021 = vmatprep.subr.msk.bf16.mxu1 %vm1079_vm0, %v6443_v50  ;;  %v5222_v55 = vld [vmem:[#allocation10 + $0x78] ss:$12 sps:$4 sm:$0xff]   ;;  %v5224_v59 = vld [vmem:[#allocation10 + $0xa8] ss:$12 sps:$4 sm:$0xff]  }
 0x203   : > { %v6445_v51 = vld [vmem:[#allocation2] sm:$0xff]  ;;  %v6451_v53 = vld [vmem:[#allocation2 + $0x48] sm:$0xff]  ;;  %v6463_v60 = vld [vmem:[#allocation2 + $0x10] sm:$0xff]  ;;  %1690 = vrot.lane.b32.xlu1 %v6443_v50, %s5963_s25  ;;  %s5964_s7 = smov 64   ;;  %s5965_s8 = smov 32   ;;  %vm3087_vm2 = vcmask 785920  }
 0x204   : > { %4941 = vmatprep.mubr.bf16.mxu0 %v847_v48  ;;  %v1105_v52 = vsel %vm1079_vm0, %v6445_v51, 0  ;;  %v6453_v54 = vld [vmem:[#allocation2 + $0x8] sm:$0xff]  ;;  %v833_v61 = vld [vmem:[%s6305_s20 + $0x10] sm:$0xff]  ;;  %v834_v62 = vld [vmem:[%s6305_s20 + $0x18] sm:$0xff]  ;;  %v1111_v1 = vsel %vm1079_vm0, %v6463_v60, 0  ;;  %1674 = vrot.lane.b32.xlu0 %v6445_v51, %s5963_s25  ;;  %vm3802_vm3 = vcmask 1048320  }
 0x205   : > { %4928 = vmatpush3.bf16.msra.mxu0 %v5218_v44  ;;  %4526 = vmatpush3.bf16.xpose.msra.mxu1 %v1105_v52  ;;  %v1108_v57 = vsel %vm1079_vm0, %v6453_v54, 0  ;;  %v835_v63 = vld [vmem:[%s6305_s20 + $0x20] sm:$0xff]  ;;  %v836_v0 = vld [vmem:[%s6305_s20 + $0x28] sm:$0xff]  ;;  %v6471_v3 = vld [vmem:[#allocation2 + $0x58] sm:$0xff]  ;;  %v848_v4 = vpack.c.bf16 %v834_v62, %v833_v61  ;;  %s9108_s12 = sld [smem:[#allocation111_spill]]  ;;  %s9109_s21 = sld [smem:[#allocation112_spill]] }
 0x206   : > { %4929 = vmatprep.subr.bf16.mxu0 %v5219_v45  ;;  %5022 = vmatprep.subr.msk.bf16.mxu1 %vm1079_vm0, %v6451_v53  ;;  %v849_v5 = vpack.c.bf16 %v836_v0, %v835_v63  ;;  %v6475_v6 = vld [vmem:[#allocation2 + $0x18] sm:$0xff]  ;;  %v837_v8 = vld [vmem:[%s6305_s20 + $0x30] sm:$0xff]  ;;  %v839_v10 = vld [vmem:[%s6305_s20 + $0x40] sm:$0xff]  ;;  %s9110_s17 = sld [smem:[#allocation113_spill]]  ;;  %s9111_s16 = sld [smem:[#allocation20_spill]] }
 0x207   : > { %v838_v9 = vld [vmem:[%s6305_s20 + $0x38] sm:$0xff]  ;;  %v840_v11 = vld [vmem:[%s6305_s20 + $0x48] sm:$0xff]  ;;  %v1114_v12 = vsel %vm1079_vm0, %v6475_v6, 0  ;;  %v6483_v13 = vld [vmem:[#allocation2 + $0x60] sm:$0xff]  ;;  %1692 = vrot.lane.b32.xlu1 %v6451_v53, %s5963_s25  ;;  %s9112_s23 = sld [smem:[#allocation21_spill]]  ;;  %s9114_s11 = sld [smem:[#allocation114_spill]] }
 0x208   : > { %8836 = vst [vmem:[#allocation26_spill] sm:$0xff] %v6483_v13  ;;  %v850_v14 = vpack.c.bf16 %v838_v9, %v837_v8  ;;  %v851_v15 = vpack.c.bf16 %v840_v11, %v839_v10  ;;  %v6487_v16 = vld [vmem:[#allocation2 + $0x20] sm:$0xff]  ;;  %v841_v17 = vld [vmem:[%s6305_s20 + $0x50] sm:$0xff]  ;;  %v842_v18 = vld [vmem:[%s6305_s20 + $0x58] sm:$0xff]  ;;  %1676 = vrot.lane.b32.xlu0 %v6453_v54, %s5963_s25  ;;  %s8603_s3 = scalar_lea.sflag [#allocation7], %s363_s19  ;;  %s5966_s0 = smov [#allocation13]  }
 0x209   : > { %4930 = vmatpush3.bf16.msra.mxu0 %v5219_v45  ;;  %v843_v19 = vld [vmem:[%s6305_s20 + $0x60] sm:$0xff]  ;;  %v844_v20 = vld [vmem:[%s6305_s20 + $0x68] sm:$0xff]  ;;  %v1117_v21 = vsel %vm1079_vm0, %v6487_v16, 0  ;;  %v852_v23 = vpack.c.bf16 %v842_v18, %v841_v17  ;;  %v845_v26 = vld [vmem:[%s6305_s20 + $0x70] sm:$0xff] }
 0x20a   : > { %4931 = vmatprep.subr.bf16.mxu0 %v5220_v2  ;;  %v6495_v22 = vld [vmem:[#allocation2 + $0x68] sm:$0xff]  ;;  %v853_v24 = vpack.c.bf16 %v844_v20, %v843_v19  ;;  %v846_v27 = vld [vmem:[%s6305_s20 + $0x78] sm:$0xff]  ;;  %v6505_v29 = vld [vmem:[#allocation2 + $0x70] sm:$0xff] }
 0x20b   : > { %v6499_v25 = vld [vmem:[#allocation2 + $0x28] sm:$0xff]  ;;  %v854_v30 = vpack.c.bf16 %v846_v27, %v845_v26  ;;  %v6509_v31 = vld [vmem:[#allocation2 + $0x30] sm:$0xff]  ;;  %v6513_v33 = vld [vmem:[#allocation2 + $0x78] sm:$0xff]  ;;  %1694 = vrot.lane.b32.xlu1 %v6459_v58, %s5963_s25 }
 0x20c   : > { %8837 = vst [vmem:[#allocation27_spill] sm:$0xff] %v6499_v25  ;;  %v1120_v28 = vsel %vm1079_vm0, %v6499_v25, 0  ;;  %v1123_v32 = vsel %vm1079_vm0, %v6509_v31, 0  ;;  %v6515_v34 = vld [vmem:[#allocation2 + $0x38] sm:$0xff]  ;;  %1678 = vrot.lane.b32.xlu0 %v6463_v60, %s5963_s25  ;;  %v4450_v36 = vld [vmem:[%s8838_s24] ss:$0 sm:$0xff] }
 0x20d   : > { %4932 = vmatpush3.bf16.msra.mxu0 %v5220_v2  ;;  %4528 = vmatpush3.bf16.xpose.msra.mxu1 %v1108_v57  ;;  %v1126_v35 = vsel %vm1079_vm0, %v6515_v34, 0  ;;  %s4503_s22 = sshll.u32 %s9111_s16, 4  ;;  %s4282_s24 = sshll.u32 %s6319_s18, 4  ;;  %s8591_s24 = int_to_ptr.vmem [resolvable:$true] %s4282_s24 }
 0x20e   : > { %4933 = vmatprep.subr.bf16.mxu0 %v5221_v49  ;;  %5023 = vmatprep.subr.msk.bf16.mxu1 %vm1079_vm0, %v6459_v58  ;;  %s9115_s6 = smov %s9114_s11 }
 0x20f   : > { %1696 = vrot.lane.b32.xlu1 %v6471_v3, %s5963_s25 }
 0x210   : > { %1680 = vrot.lane.b32.xlu0 %v6475_v6, %s5963_s25 }
 0x211   : > { %4934 = vmatpush3.bf16.msra.mxu0 %v5221_v49 }
 0x212   : > { %4935 = vmatprep.subr.bf16.mxu0 %v5222_v55 }
 0x215   : > { %4936 = vmatpush3.bf16.msra.mxu0 %v5222_v55  ;;  %4530 = vmatpush3.bf16.xpose.msra.mxu1 %v1111_v1 }
 0x216   : > { %4937 = vmatprep.subr.bf16.mxu0 %v5223_v56  ;;  %5024 = vmatprep.subr.msk.bf16.mxu1 %vm1079_vm0, %v6471_v3 }
 0x219   : > { %4938 = vmatpush3.bf16.msra.mxu0 %v5223_v56 }
 0x21a   : > { %4939 = vmatprep.subr.bf16.mxu0 %v5224_v59 }
 0x21d   : > { %4940 = vmatpush3.bf16.msra.mxu0 %v5224_v59  ;;  %4532 = vmatpush3.bf16.xpose.msra.mxu1 %v1114_v12 }
 0x21e   : > { %5025 = vmatprep.subr.msk.bf16.mxu1 %vm1079_vm0, %v6483_v13 }
 0x220   : > { %4942 = vmatmul.mubr.bf16.vlgmr.msra.gmra.mrb[0].mxu0 %v848_v4 }
 0x221   : > { %4945 = vmatprep.mubr.bf16.mxu0 %v849_v5 }
 0x225   : > { %4534 = vmatpush3.bf16.xpose.msra.mxu1 %v1117_v21 }
 0x226   : > { %5026 = vmatprep.subr.msk.bf16.mxu1 %vm1079_vm0, %v6495_v22 }
 0x228   : > { %4946 = vmatmul.mubr.bf16.gmra.mrb[4].mxu0 %v850_v14 }
 0x229   : > { %4949 = vmatprep.mubr.bf16.mxu0 %v851_v15 }
 0x22d   : > { %4536 = vmatpush3.bf16.xpose.msra.mxu1 %v1120_v28 }
 0x22e   : > { %5027 = vmatprep.subr.msk.bf16.mxu1 %vm1079_vm0, %v6505_v29 }
 0x230   : > { %4950 = vmatmul.mubr.bf16.gmra.mrb[8].mxu0 %v852_v23 }
 0x231   : > { %4953 = vmatprep.mubr.bf16.mxu0 %v853_v24 }
 0x235   : > { %4538 = vmatpush3.bf16.xpose.msra.mxu1 %v1123_v32 }
 0x236   : > { %5028 = vmatprep.subr.msk.bf16.mxu1 %vm1079_vm0, %v6513_v33 }
 0x238   : > { %4954 = vmatmul.mubr.bf16.gmra.mrb[12].mxu0 %v854_v30 }
 0x23d   : > { %4540 = vmatpush3.bf16.xpose.msra.mxu1 %v1126_v35 }
 0x2f3   : > { %v4943_v37 = vpop.f32.mrb[0].mxu0 }
 0x2f4   : > { %v969_v38 = vadd.f32 %v4943_v37, %v4450_v36  ;;  %v960_v39 = vpop.f32.mrb[1].mxu0 }
 0x2f5   : > { %v961_v40 = vadd.f32 %v4450_v36, %v960_v39  ;;  %v4944_v41 = vpop.f32.mrb[2].mxu0 }
 0x2f6   : > { %v972_v42 = vadd.f32 %v4944_v41, %v4450_v36  ;;  %v963_v43 = vpop.f32.mrb[3].mxu0  ;;  %v1025_v44 = vmul.f32 0.17677669, %v969_v38 }
 0x2f7   : > { %v964_v7 = vadd.f32 %v4450_v36, %v963_v43  ;;  %v1023_v2 = vmul.f32 0.17677669, %v961_v40 }
 0x2f8   : > { %v1026_v45 = vmul.f32 0.17677669, %v972_v42 }
 0x2f9   : > { %v1024_v46 = vmul.f32 0.17677669, %v964_v7 }
 0x2fa   : > { %v6540_v47 = vpack.c.bf16 %v1026_v45, %v1025_v44  ;;  %v6590_v45 = vld [vmem:[#allocation3] sm:$0xff] }
 0x2fb   : > { %v6542_v48 = vpack.c.bf16 %v1024_v46, %v1023_v2  ;;  %v4947_v49 = vpop.f32.mrb[4].mxu0  ;;  %8843 = vst [vmem:[#allocation32_spill] sm:$0xff] %v6590_v45  ;;  %v6592_v2 = vld [vmem:[#allocation3 + $0x48] sm:$0xff] }
 0x2fc   : > { %v985_v52 = vadd.f32 %v4947_v49, %v4450_v36  ;;  %v976_v55 = vpop.f32.mrb[5].mxu0  ;;  %8844 = vst [vmem:[#allocation33_spill] sm:$0xff] %v6592_v2  ;;  %v6597_v46 = vld [vmem:[#allocation3 + $0x8] sm:$0xff]  ;;  %v6599_v49 = vld [vmem:[#allocation3 + $0x50] sm:$0xff] }
 0x2fd   : > { %4541 = vmatprep.mubr.msk.bf16.mxu1 %vm1079_vm0, %v6542_v48  ;;  %v977_v56 = vadd.f32 %v4450_v36, %v976_v55  ;;  %v4948_v57 = vpop.f32.mrb[6].mxu0  ;;  %8845 = vst [vmem:[#allocation34_spill] sm:$0xff] %v6597_v46  ;;  %8846 = vst [vmem:[#allocation35_spill] sm:$0xff] %v6599_v49  ;;  %v6605_v55 = vld [vmem:[#allocation3 + $0x58] sm:$0xff] }
 0x2fe   : > { %4542 = vmatmul.mubr.msk.bf16.vlgmr.msra.gmra.mrb[0].mxu1 %vm1079_vm0, %v6542_v48  ;;  %v1029_v59 = vmul.f32 0.17677669, %v985_v52  ;;  %v988_v61 = vadd.f32 %v4948_v57, %v4450_v36  ;;  %v979_v62 = vpop.f32.mrb[7].mxu0  ;;  %v6603_v52 = vld [vmem:[#allocation3 + $0x10] sm:$0xff]  ;;  %8848 = vst [vmem:[#allocation37_spill] sm:$0xff] %v6605_v55  ;;  %v6611_v57 = vld [vmem:[#allocation3 + $0x60] sm:$0xff] }
 0x2ff   : > { %4543 = vmatprep.mubr.msk.bf16.mxu1 %vm1079_vm0, %v6540_v47  ;;  %v1027_v63 = vmul.f32 0.17677669, %v977_v56  ;;  %v980_v0 = vadd.f32 %v4450_v36, %v979_v62  ;;  %8847 = vst [vmem:[#allocation36_spill] sm:$0xff] %v6603_v52  ;;  %v6609_v56 = vld [vmem:[#allocation3 + $0x18] sm:$0xff]  ;;  %8850 = vst [vmem:[#allocation39_spill] sm:$0xff] %v6611_v57  ;;  %v6621_v62 = vld [vmem:[#allocation3 + $0x28] sm:$0xff] }
 0x300   : > { %v1030_v1 = vmul.f32 0.17677669, %v988_v61  ;;  %8849 = vst [vmem:[#allocation38_spill] sm:$0xff] %v6609_v56  ;;  %v6617_v61 = vld [vmem:[#allocation3 + $0x68] sm:$0xff]  ;;  %8853 = vst [vmem:[#allocation42_spill] sm:$0xff] %v6621_v62 }
 0x301   : > { %v1028_v4 = vmul.f32 0.17677669, %v980_v0  ;;  %8852 = vst [vmem:[#allocation41_spill] sm:$0xff] %v6617_v61  ;;  %v6627_v0 = vld [vmem:[#allocation3 + $0x30] sm:$0xff] }
 0x302   : > { %v6550_v5 = vpack.c.bf16 %v1030_v1, %v1029_v59  ;;  %v6615_v59 = vld [vmem:[#allocation3 + $0x20] sm:$0xff]  ;;  %8855 = vst [vmem:[#allocation44_spill] sm:$0xff] %v6627_v0  ;;  %v6629_v1 = vld [vmem:[#allocation3 + $0x78] sm:$0xff] }
 0x303   : > { %v6552_v8 = vpack.c.bf16 %v1028_v4, %v1027_v63  ;;  %v4951_v9 = vpop.f32.mrb[8].mxu0  ;;  %8851 = vst [vmem:[#allocation40_spill] sm:$0xff] %v6615_v59  ;;  %v6623_v63 = vld [vmem:[#allocation3 + $0x70] sm:$0xff]  ;;  %8856 = vst [vmem:[#allocation45_spill] sm:$0xff] %v6629_v1  ;;  %v6633_v4 = vld [vmem:[#allocation3 + $0x38] sm:$0xff] }
 0x304   : > { %v1001_v10 = vadd.f32 %v4951_v9, %v4450_v36  ;;  %v992_v11 = vpop.f32.mrb[9].mxu0  ;;  %8854 = vst [vmem:[#allocation43_spill] sm:$0xff] %v6623_v63  ;;  %8857 = vst [vmem:[#allocation46_spill] sm:$0xff] %v6633_v4  ;;  %v1691_v9 = vpop.permute.xlu1 %1690 }
 0x305   : > { %v993_v12 = vadd.f32 %v4450_v36, %v992_v11  ;;  %v4952_v14 = vpop.f32.mrb[10].mxu0 }
 0x306   : > { %4544 = vmatmul.mubr.msk.bf16.gmra.mrb[4].mxu1 %vm1079_vm0, %v6540_v47  ;;  %v1033_v15 = vmul.f32 0.17677669, %v1001_v10  ;;  %v1004_v17 = vadd.f32 %v4952_v14, %v4450_v36  ;;  %v995_v18 = vpop.f32.mrb[11].mxu0 }
 0x307   : > { %4545 = vmatprep.mubr.msk.bf16.mxu1 %vm1079_vm0, %v6552_v8  ;;  %v1031_v19 = vmul.f32 0.17677669, %v993_v12  ;;  %v996_v20 = vadd.f32 %v4450_v36, %v995_v18 }
 0x308   : > { %v1034_v21 = vmul.f32 0.17677669, %v1004_v17 }
 0x309   : > { %v1032_v23 = vmul.f32 0.17677669, %v996_v20 }
 0x30a   : > { %v6558_v24 = vpack.c.bf16 %v1034_v21, %v1033_v15 }
 0x30b   : > { %v6560_v26 = vpack.c.bf16 %v1032_v23, %v1031_v19  ;;  %v4955_v27 = vpop.f32.mrb[12].mxu0 }
 0x30c   : > { %v1017_v28 = vadd.f32 %v4955_v27, %v4450_v36  ;;  %v1008_v30 = vpop.f32.mrb[13].mxu0 }
 0x30d   : > { %8839 = vst [vmem:[#allocation28_spill] sm:$0xff] %v6560_v26  ;;  %v1009_v32 = vadd.f32 %v4450_v36, %v1008_v30  ;;  %v4956_v35 = vpop.f32.mrb[14].mxu0 }
 0x30e   : > { %4546 = vmatmul.mubr.msk.bf16.gmra.mrb[8].mxu1 %vm1079_vm0, %v6552_v8  ;;  %v1037_v37 = vmul.f32 0.17677669, %v1017_v28  ;;  %v1020_v38 = vadd.f32 %v4956_v35, %v4450_v36  ;;  %v1011_v39 = vpop.f32.mrb[15].mxu0 }
 0x30f   : > { %4547 = vmatprep.mubr.msk.bf16.mxu1 %vm1079_vm0, %v6550_v5  ;;  %v1035_v40 = vmul.f32 0.17677669, %v1009_v32  ;;  %v1012_v41 = vadd.f32 %v4450_v36, %v1011_v39  ;;  %v6588_v36 = vld [vmem:[#allocation3 + $0x40] sm:$0xff] }
 0x310   : > { %v1038_v42 = vmul.f32 0.17677669, %v1020_v38  ;;  %8842 = vst [vmem:[#allocation31_spill] sm:$0xff] %v6588_v36  ;;  %4557 = vmatprep.subr.bf16.mxu0 %v6588_v36 }
 0x311   : > { %v1036_v43 = vmul.f32 0.17677669, %v1012_v41  ;;  %4558 = vmatpush3.bf16.msra.mxu0 %v6590_v45 }
 0x312   : > { %v6566_v7 = vpack.c.bf16 %v1038_v42, %v1037_v37  ;;  %4559 = vmatprep.subr.bf16.mxu0 %v6592_v2 }
 0x313   : > { %v6568_v44 = vpack.c.bf16 %v1036_v43, %v1035_v40 }
 0x314   : > { %8840 = vst [vmem:[#allocation29_spill] sm:$0xff] %v6566_v7 }
 0x315   : > { %8841 = vst [vmem:[#allocation30_spill] sm:$0xff] %v6568_v44  ;;  %4560 = vmatpush3.bf16.msra.mxu0 %v6597_v46 }
 0x316   : > { %4548 = vmatmul.mubr.msk.bf16.gmra.mrb[12].mxu1 %vm1079_vm0, %v6550_v5  ;;  %4561 = vmatprep.subr.bf16.mxu0 %v6599_v49 }
 0x317   : > { %4549 = vmatprep.mubr.msk.bf16.mxu1 %vm1079_vm0, %v6560_v26 }
 0x319   : > { %4562 = vmatpush3.bf16.msra.mxu0 %v6603_v52  ;;  %v6747_v52 = vpop.permute.xlu1 %1692 }
 0x31a   : > { %4563 = vmatprep.subr.bf16.mxu0 %v6605_v55  ;;  %8861 = vst [vmem:[#allocation50_spill] sm:$0xff] %v6747_v52 }
 0x31d   : > { %4564 = vmatpush3.bf16.msra.mxu0 %v6609_v56  ;;  %v6751_v46 = vpop.permute.xlu1 %1694 }
 0x31e   : > { %4550 = vmatmul.mubr.msk.bf16.gmra.mrb[16].mxu1 %vm1079_vm0, %v6560_v26  ;;  %4565 = vmatprep.subr.bf16.mxu0 %v6611_v57  ;;  %8863 = vst [vmem:[#allocation52_spill] sm:$0xff] %v6751_v46 }
 0x31f   : > { %4551 = vmatprep.mubr.msk.bf16.mxu1 %vm1079_vm0, %v6558_v24 }
 0x321   : > { %4566 = vmatpush3.bf16.msra.mxu0 %v6615_v59 }
 0x322   : > { %4567 = vmatprep.subr.bf16.mxu0 %v6617_v61 }
 0x325   : > { %4568 = vmatpush3.bf16.msra.mxu0 %v6621_v62 }
 0x326   : > { %4552 = vmatmul.mubr.msk.bf16.gmra.mrb[20].mxu1 %vm1079_vm0, %v6558_v24  ;;  %4569 = vmatprep.subr.bf16.mxu0 %v6623_v63 }
 0x327   : > { %4553 = vmatprep.mubr.msk.bf16.mxu1 %vm1079_vm0, %v6568_v44 }
 0x329   : > { %4570 = vmatpush3.bf16.msra.mxu0 %v6627_v0 }
 0x32a   : > { %4571 = vmatprep.subr.bf16.mxu0 %v6629_v1 }
 0x32d   : > { %4572 = vmatpush3.bf16.msra.mxu0 %v6633_v4 }
 0x32e   : > { %4554 = vmatmul.mubr.msk.bf16.gmra.mrb[24].mxu1 %vm1079_vm0, %v6568_v44  ;;  %5029 = vmatprep.subr.msk.bf16.mxu0 %vm1079_vm0, %v1691_v9 }
 0x32f   : > { %4555 = vmatprep.mubr.msk.bf16.mxu1 %vm1079_vm0, %v6566_v7 }
 0x336   : > { %4556 = vmatmul.mubr.msk.bf16.gmra.mrb[28].mxu1 %vm1079_vm0, %v6566_v7 }
 0x3d1   : > { %v6637_v10 = vpop.f32.mrb[0].mxu1 }
 0x3d2   : > { %v6639_v11 = vpop.f32.mrb[1].mxu1 }
 0x3d3   : > { %v6641_v12 = vpop.f32.mrb[2].mxu1  ;;  %v1265_v14 = vmax.f32 %v6637_v10, %v6639_v11 }
 0x3d4   : > { %v6645_v15 = vpop.f32.mrb[3].mxu1 }
 0x3d5   : > { %1266 = vmax.xlane.f32.xlu0 %v1265_v14  ;;  %v1268_v17 = vmax.f32 %v6641_v12, %v6645_v15 }
 0x3d9   : > { %1269 = vmax.xlane.f32.xlu0 %v1268_v17  ;;  %v6649_v18 = vpop.f32.mrb[4].mxu1 }
 0x3da   : > { %v6651_v19 = vpop.f32.mrb[5].mxu1 }
 0x3db   : > { %v6653_v20 = vpop.f32.mrb[6].mxu1  ;;  %v1271_v21 = vmax.f32 %v6649_v18, %v6651_v19 }
 0x3dc   : > { %v6657_v23 = vpop.f32.mrb[7].mxu1 }
 0x3dd   : > { %1272 = vmax.xlane.f32.xlu1 %v1271_v21  ;;  %v1274_v27 = vmax.f32 %v6653_v20, %v6657_v23 }
 0x3e1   : > { %1275 = vmax.xlane.f32.xlu1 %v1274_v27  ;;  %v6661_v28 = vpop.f32.mrb[8].mxu1 }
 0x3e2   : > { %v6663_v30 = vpop.f32.mrb[9].mxu1 }
 0x3e3   : > { %v6665_v32 = vpop.f32.mrb[10].mxu1  ;;  %v1277_v35 = vmax.f32 %v6661_v28, %v6663_v30 }
 0x3e4   : > { %v6669_v37 = vpop.f32.mrb[11].mxu1 }
 0x3e5   : > { %1278 = vmax.xlane.f32.xlu0 %v1277_v35  ;;  %v1280_v38 = vmax.f32 %v6665_v32, %v6669_v37 }
 0x3e7   : > { %1281 = vmax.xlane.f32.xlu1 %v1280_v38 }
 0x3e9   : > { %v6673_v39 = vpop.f32.mrb[12].mxu1 }
 0x3ea   : > { %v6675_v40 = vpop.f32.mrb[13].mxu1 }
 0x3eb   : > { %v6677_v41 = vpop.f32.mrb[14].mxu1  ;;  %v1283_v42 = vmax.f32 %v6673_v39, %v6675_v40 }
 0x3ec   : > { %v6681_v43 = vpop.f32.mrb[15].mxu1 }
 0x3ed   : > { %1284 = vmax.xlane.f32.xlu0 %v1283_v42  ;;  %v1286_v9 = vmax.f32 %v6677_v41, %v6681_v43 }
 0x3ef   : > { %1287 = vmax.xlane.f32.xlu1 %v1286_v9 }
 0x3f1   : > { %v6685_v14 = vpop.f32.mrb[16].mxu1 }
 0x3f2   : > { %v6687_v17 = vpop.f32.mrb[17].mxu1 }
 0x3f3   : > { %v6689_v21 = vpop.f32.mrb[18].mxu1  ;;  %v1289_v27 = vmax.f32 %v6685_v14, %v6687_v17 }
 0x3f4   : > { %v6693_v35 = vpop.f32.mrb[19].mxu1 }
 0x3f5   : > { %1290 = vmax.xlane.f32.xlu0 %v1289_v27  ;;  %v1292_v38 = vmax.f32 %v6689_v21, %v6693_v35 }
 0x3f7   : > { %1293 = vmax.xlane.f32.xlu1 %v1292_v38 }
 0x3f9   : > { %v6697_v42 = vpop.f32.mrb[20].mxu1 }
 0x3fa   : > { %v6699_v4 = vpop.f32.mrb[21].mxu1 }
 0x3fb   : > { %v6701_v9 = vpop.f32.mrb[22].mxu1  ;;  %v1295_v0 = vmax.f32 %v6697_v42, %v6699_v4 }
 0x3fc   : > { %v6705_v63 = vpop.f32.mrb[23].mxu1 }
 0x3fd   : > { %1296 = vmax.xlane.f32.xlu0 %v1295_v0  ;;  %v1298_v1 = vmax.f32 %v6701_v9, %v6705_v63 }
 0x3ff   : > { %1299 = vmax.xlane.f32.xlu1 %v1298_v1 }
 0x401   : > { %v6709_v27 = vpop.f32.mrb[24].mxu1 }
 0x402   : > { %v6711_v62 = vpop.f32.mrb[25].mxu1 }
 0x403   : > { %v6713_v38 = vpop.f32.mrb[26].mxu1  ;;  %v1301_v61 = vmax.f32 %v6709_v27, %v6711_v62 }
 0x404   : > { %v6717_v59 = vpop.f32.mrb[27].mxu1 }
 0x405   : > { %1302 = vmax.xlane.f32.xlu0 %v1301_v61  ;;  %v1304_v55 = vmax.f32 %v6713_v38, %v6717_v59 }
 0x407   : > { %1305 = vmax.xlane.f32.xlu1 %v1304_v55  ;;  %v6741_v55 = vpop.permute.xlu0 %1674 }
 0x408   : > { %8858 = vst [vmem:[#allocation47_spill] sm:$0xff] %v6741_v55 }
 0x409   : > { %v6721_v0 = vpop.f32.mrb[28].mxu1 }
 0x40a   : > { %v6723_v57 = vpop.f32.mrb[29].mxu1 }
 0x40b   : > { %v6725_v1 = vpop.f32.mrb[30].mxu1  ;;  %v1307_v2 = vmax.f32 %v6721_v0, %v6723_v57  ;;  %v6743_v61 = vpop.permute.xlu0 %1676 }
 0x40c   : > { %v6729_v56 = vpop.f32.mrb[31].mxu1  ;;  %8859 = vst [vmem:[#allocation48_spill] sm:$0xff] %v6743_v61 }
 0x40d   : > { %1308 = vmax.xlane.f32.xlu0 %v1307_v2  ;;  %v1310_v36 = vmax.f32 %v6725_v1, %v6729_v56 }
 0x40f   : > { %v6745_v2 = vpop.permute.xlu0 %1678 }
 0x410   : > { %8860 = vst [vmem:[#allocation49_spill] sm:$0xff] %v6745_v2 }
 0x413   : > { %v6749_v49 = vpop.permute.xlu0 %1680 }
 0x414   : > { %8862 = vst [vmem:[#allocation51_spill] sm:$0xff] %v6749_v49 }
 0x418   : > { %1698 = vrot.lane.b32.xlu1 %v6483_v13, %s5963_s25 }
 0x41c   : > { %1684 = vrot.lane.b32.xlu1 %v6499_v25, %s5963_s25 }
 0x420   : > { %1700 = vrot.lane.b32.xlu1 %v6495_v22, %s5963_s25 }
 0x423   : > { %1682 = vrot.lane.b32.xlu0 %v6487_v16, %s5963_s25 }
 0x444   : > { %1311 = vmax.xlane.f32.xlu1 %v1310_v36  ;;  %v6755_v36 = vpop.permute.xlu1 %1696 }
 0x462   : > { %v1267_v45 = vpop.xlane.xlu0 %1266 }
 0x463   : > { %v1313_v44 = vsub.f32 %v6637_v10, %v1267_v45  ;;  %v1314_v25 = vsub.f32 %v6639_v11, %v1267_v45 }
 0x465   : > { %v1345_v13 = vmul.f32 1.442695, %v1313_v44  ;;  %v1347_v7 = vmul.f32 1.442695, %v1314_v25 }
 0x466   : > { %v1270_v55 = vpop.xlane.xlu0 %1269 }
 0x467   : > { %5233 = vpow2.f32 %v1345_v13  ;;  %v1315_v61 = vsub.f32 %v6641_v12, %v1270_v55  ;;  %v1316_v2 = vsub.f32 %v6645_v15, %v1270_v55 }
 0x468   : > { %5235 = vpow2.f32 %v1347_v7 }
 0x469   : > { %v1349_v52 = vmul.f32 1.442695, %v1315_v61  ;;  %v1351_v49 = vmul.f32 1.442695, %v1316_v2 }
 0x46a   : > { %v1273_v26 = vpop.xlane.xlu1 %1272 }
 0x46b   : > { %5237 = vpow2.f32 %v1349_v52  ;;  %v1317_v46 = vsub.f32 %v6649_v18, %v1273_v26  ;;  %v1318_v10 = vsub.f32 %v6651_v19, %v1273_v26 }
 0x46c   : > { %5239 = vpow2.f32 %v1351_v49 }
 0x46d   : > { %v1353_v44 = vmul.f32 1.442695, %v1317_v46  ;;  %v1355_v25 = vmul.f32 1.442695, %v1318_v10 }
 0x46e   : > { %v1276_v45 = vpop.xlane.xlu1 %1275 }
 0x46f   : > { %5241 = vpow2.f32 %v1353_v44  ;;  %v1319_v13 = vsub.f32 %v6653_v20, %v1276_v45  ;;  %v1320_v11 = vsub.f32 %v6657_v23, %v1276_v45 }
 0x470   : > { %5243 = vpow2.f32 %v1355_v25 }
 0x471   : > { %v6763_v12 = vpop.eup %5233  ;;  %v1357_v7 = vmul.f32 1.442695, %v1319_v13  ;;  %v1359_v15 = vmul.f32 1.442695, %v1320_v11 }
 0x472   : > { %v6765_v55 = vpop.eup %5235  ;;  %v1279_v52 = vpop.xlane.xlu0 %1278 }
 0x473   : > { %5245 = vpow2.f32 %v1357_v7  ;;  %v1321_v26 = vsub.f32 %v6661_v28, %v1279_v52  ;;  %v1322_v46 = vsub.f32 %v6663_v30, %v1279_v52  ;;  %v1409_v49 = vadd.f32 %v6765_v55, %v6763_v12 }
 0x474   : > { %5247 = vpow2.f32 %v1359_v15  ;;  %v1282_v18 = vpop.xlane.xlu1 %1281 }
 0x475   : > { %v6771_v19 = vpop.eup %5237  ;;  %v1361_v20 = vmul.f32 1.442695, %v1321_v26  ;;  %v1363_v23 = vmul.f32 1.442695, %v1322_v46  ;;  %v1323_v61 = vsub.f32 %v6665_v32, %v1282_v18  ;;  %v1324_v2 = vsub.f32 %v6669_v37, %v1282_v18  ;;  %1410 = vadd.xlane.f32.xlu0 %v1409_v49 }
 0x476   : > { %v6775_v10 = vpop.eup %5239 }
 0x477   : > { %5249 = vpow2.f32 %v1361_v20  ;;  %v1365_v28 = vmul.f32 1.442695, %v1323_v61  ;;  %v1367_v44 = vmul.f32 1.442695, %v1324_v2  ;;  %v1412_v30 = vadd.f32 %v6775_v10, %v6771_v19 }
 0x478   : > { %5251 = vpow2.f32 %v1363_v23 }
 0x479   : > { %v6779_v25 = vpop.eup %5241  ;;  %5253 = vpow2.f32 %v1365_v28  ;;  %1413 = vadd.xlane.f32.xlu1 %v1412_v30 }
 0x47a   : > { %v6781_v45 = vpop.eup %5243  ;;  %5255 = vpow2.f32 %v1367_v44  ;;  %v1285_v32 = vpop.xlane.xlu0 %1284 }
 0x47b   : > { %v1325_v37 = vsub.f32 %v6673_v39, %v1285_v32  ;;  %v1326_v13 = vsub.f32 %v6675_v40, %v1285_v32  ;;  %v1415_v11 = vadd.f32 %v6781_v45, %v6779_v25 }
 0x47c   : > { %v1288_v7 = vpop.xlane.xlu1 %1287 }
 0x47d   : > { %v6787_v15 = vpop.eup %5245  ;;  %v1369_v52 = vmul.f32 1.442695, %v1325_v37  ;;  %v1371_v26 = vmul.f32 1.442695, %v1326_v13  ;;  %v1327_v46 = vsub.f32 %v6677_v41, %v1288_v7  ;;  %v1328_v49 = vsub.f32 %v6681_v43, %v1288_v7  ;;  %1416 = vadd.xlane.f32.xlu0 %v1415_v11 }
 0x47e   : > { %v6791_v18 = vpop.eup %5247 }
 0x47f   : > { %5257 = vpow2.f32 %v1369_v52  ;;  %v1373_v20 = vmul.f32 1.442695, %v1327_v46  ;;  %v1375_v39 = vmul.f32 1.442695, %v1328_v49  ;;  %v1418_v40 = vadd.f32 %v6791_v18, %v6787_v15 }
 0x480   : > { %5259 = vpow2.f32 %v1371_v26 }
 0x481   : > { %v6795_v23 = vpop.eup %5249  ;;  %5261 = vpow2.f32 %v1373_v20  ;;  %1419 = vadd.xlane.f32.xlu1 %v1418_v40 }
 0x482   : > { %v6797_v61 = vpop.eup %5251  ;;  %5263 = vpow2.f32 %v1375_v39  ;;  %v1291_v41 = vpop.xlane.xlu0 %1290 }
 0x483   : > { %v6799_v2 = vpop.eup %5253  ;;  %v1329_v43 = vsub.f32 %v6685_v14, %v1291_v41  ;;  %v1330_v28 = vsub.f32 %v6687_v17, %v1291_v41  ;;  %v1421_v44 = vadd.f32 %v6797_v61, %v6795_v23 }
 0x484   : > { %v6805_v30 = vpop.eup %5255  ;;  %v1294_v32 = vpop.xlane.xlu1 %1293 }
 0x485   : > { %v1377_v37 = vmul.f32 1.442695, %v1329_v43  ;;  %v1379_v13 = vmul.f32 1.442695, %v1330_v28  ;;  %v1331_v11 = vsub.f32 %v6689_v21, %v1294_v32  ;;  %v1332_v7 = vsub.f32 %v6693_v35, %v1294_v32  ;;  %1422 = vadd.xlane.f32.xlu0 %v1421_v44 }
 0x486   : > { %v1424_v52 = vadd.f32 %v6805_v30, %v6799_v2 }
 0x487   : > { %5265 = vpow2.f32 %v1377_v37  ;;  %v1381_v14 = vmul.f32 1.442695, %v1331_v11  ;;  %v1383_v26 = vmul.f32 1.442695, %v1332_v7 }
 0x488   : > { %5267 = vpow2.f32 %v1379_v13  ;;  %1425 = vadd.xlane.f32.xlu1 %v1424_v52 }
 0x489   : > { %v6811_v17 = vpop.eup %5257  ;;  %5269 = vpow2.f32 %v1381_v14 }
 0x48a   : > { %v6813_v46 = vpop.eup %5259  ;;  %5271 = vpow2.f32 %v1383_v26  ;;  %v1297_v49 = vpop.xlane.xlu0 %1296 }
 0x48b   : > { %v6815_v20 = vpop.eup %5261  ;;  %v1333_v21 = vsub.f32 %v6697_v42, %v1297_v49  ;;  %v1334_v35 = vsub.f32 %v6699_v4, %v1297_v49  ;;  %v1427_v39 = vadd.f32 %v6813_v46, %v6811_v17 }
 0x48c   : > { %v6821_v40 = vpop.eup %5263  ;;  %v1300_v41 = vpop.xlane.xlu1 %1299 }
 0x48d   : > { %v1385_v43 = vmul.f32 1.442695, %v1333_v21  ;;  %v1387_v28 = vmul.f32 1.442695, %v1334_v35  ;;  %v1335_v44 = vsub.f32 %v6701_v9, %v1300_v41  ;;  %v1336_v32 = vsub.f32 %v6705_v63, %v1300_v41  ;;  %1428 = vadd.xlane.f32.xlu0 %v1427_v39 }
 0x48e   : > { %v1430_v37 = vadd.f32 %v6821_v40, %v6815_v20 }
 0x48f   : > { %5273 = vpow2.f32 %v1385_v43  ;;  %v1389_v42 = vmul.f32 1.442695, %v1335_v44  ;;  %v1391_v13 = vmul.f32 1.442695, %v1336_v32 }
 0x490   : > { %5275 = vpow2.f32 %v1387_v28  ;;  %1431 = vadd.xlane.f32.xlu1 %v1430_v37 }
 0x491   : > { %v6827_v4 = vpop.eup %5265  ;;  %5277 = vpow2.f32 %v1389_v42 }
 0x492   : > { %v6829_v11 = vpop.eup %5267  ;;  %5279 = vpow2.f32 %v1391_v13  ;;  %v1303_v7 = vpop.xlane.xlu0 %1302 }
 0x493   : > { %v6831_v52 = vpop.eup %5269  ;;  %v1337_v63 = vsub.f32 %v6709_v27, %v1303_v7  ;;  %v1338_v9 = vsub.f32 %v6711_v62, %v1303_v7  ;;  %v1433_v14 = vadd.f32 %v6829_v11, %v6827_v4 }
 0x494   : > { %v6837_v26 = vpop.eup %5271  ;;  %v1306_v49 = vpop.xlane.xlu1 %1305 }
 0x495   : > { %v1393_v21 = vmul.f32 1.442695, %v1337_v63  ;;  %v1395_v35 = vmul.f32 1.442695, %v1338_v9  ;;  %v1339_v39 = vsub.f32 %v6713_v38, %v1306_v49  ;;  %v1340_v41 = vsub.f32 %v6717_v59, %v1306_v49  ;;  %1434 = vadd.xlane.f32.xlu1 %v1433_v14 }
 0x496   : > { %v1436_v43 = vadd.f32 %v6837_v26, %v6831_v52 }
 0x497   : > { %5281 = vpow2.f32 %v1393_v21  ;;  %v1397_v27 = vmul.f32 1.442695, %v1339_v39  ;;  %v1399_v28 = vmul.f32 1.442695, %v1340_v41 }
 0x498   : > { %5283 = vpow2.f32 %v1395_v35  ;;  %1437 = vadd.xlane.f32.xlu0 %v1436_v43  ;;  %v6871_v21 = vpop.permute.xlu1 %1698 }
 0x499   : > { %v6843_v62 = vpop.eup %5273  ;;  %5285 = vpow2.f32 %v1397_v27 }
 0x49a   : > { %v6845_v44 = vpop.eup %5275  ;;  %5287 = vpow2.f32 %v1399_v28  ;;  %v1309_v49 = vpop.xlane.xlu0 %1308 }
 0x49b   : > { %v6847_v32 = vpop.eup %5277  ;;  %v1439_v59 = vadd.f32 %v6845_v44, %v6843_v62  ;;  %v1341_v35 = vsub.f32 %v6721_v0, %v1309_v49  ;;  %v1342_v39 = vsub.f32 %v6723_v57, %v1309_v49 }
 0x49c   : > { %v6851_v38 = vpop.eup %5279  ;;  %v6875_v27 = vpop.permute.xlu1 %1684 }
 0x49d   : > { %1440 = vadd.xlane.f32.xlu1 %v1439_v59  ;;  %v1442_v37 = vadd.f32 %v6851_v38, %v6847_v32  ;;  %v1401_v41 = vmul.f32 1.442695, %v1341_v35  ;;  %v1403_v43 = vmul.f32 1.442695, %v1342_v39 }
 0x49f   : > { %1443 = vadd.xlane.f32.xlu0 %v1442_v37  ;;  %5289 = vpow2.f32 %v1401_v41 }
 0x4a0   : > { %5291 = vpow2.f32 %v1403_v43  ;;  %v6877_v28 = vpop.permute.xlu1 %1700 }
 0x4a1   : > { %v6855_v42 = vpop.eup %5281 }
 0x4a2   : > { %8864 = vst [vmem:[#allocation53_spill] sm:$0xff] %v6855_v42  ;;  %v6857_v13 = vpop.eup %5283 }
 0x4a3   : > { %v6859_v7 = vpop.eup %5285  ;;  %v1445_v63 = vadd.f32 %v6857_v13, %v6855_v42 }
 0x4a4   : > { %8865 = vst [vmem:[#allocation54_spill] sm:$0xff] %v6859_v7  ;;  %v6863_v9 = vpop.eup %5287 }
 0x4a5   : > { %1446 = vadd.xlane.f32.xlu1 %v1445_v63  ;;  %v1448_v14 = vadd.f32 %v6863_v9, %v6859_v7 }
 0x4a7   : > { %1449 = vadd.xlane.f32.xlu0 %v1448_v14 }
 0x4a9   : > { %v6881_v14 = vpop.eup %5289 }
 0x4aa   : > { %v6883_v0 = vpop.eup %5291 }
 0x4ab   : > { %v1451_v57 = vadd.f32 %v6883_v0, %v6881_v14 }
 0x4b6   : > { %1702 = vrot.lane.b32.xlu1 %v6505_v29, %s5963_s25 }
 0x4bd   : > { %1686 = vrot.lane.b32.xlu0 %v6509_v31, %s5963_s25 }
 0x4d1   : > { %v1312_v59 = vpop.xlane.xlu1 %1311 }
 0x4d2   : > { %v1343_v37 = vsub.f32 %v6725_v1, %v1312_v59  ;;  %v1344_v63 = vsub.f32 %v6729_v56, %v1312_v59  ;;  %v6905_v56 = vpop.permute.xlu0 %1682  ;;  %v8867_v59 = vld [vmem:[#allocation47_spill] sm:$0xff] }
 0x4d4   : > { %v1405_v42 = vmul.f32 1.442695, %v1343_v37  ;;  %v1407_v7 = vmul.f32 1.442695, %v1344_v63  ;;  %v8870_v63 = vld [vmem:[#allocation26_spill] sm:$0xff] }
 0x4d6   : > { %5293 = vpow2.f32 %v1405_v42 }
 0x4d7   : > { %5295 = vpow2.f32 %v1407_v7 }
 0x4da   : > { %1452 = vadd.xlane.f32.xlu1 %v1451_v57 }
 0x4e0   : > { %v6887_v49 = vpop.eup %5293 }
 0x4e1   : > { %v6889_v35 = vpop.eup %5295 }
 0x4e2   : > { %v1454_v1 = vadd.f32 %v6889_v35, %v6887_v49 }
 0x4e4   : > { %1455 = vadd.xlane.f32.xlu0 %v1454_v1 }
 0x4eb   : > { %1704 = vrot.lane.b32.xlu1 %v6513_v33, %s5963_s25 }
 0x4ef   : > { %2405 = vrot.lane.b32.xlu1 %v6445_v51, %s5964_s7 }
 0x4f3   : > { %1644 = vrot.lane.b32.xlu1 %v6540_v47, %s5963_s25 }
 0x4f7   : > { %2423 = vrot.lane.b32.xlu1 %v6451_v53, %s5964_s7 }
 0x4fa   : > { %1688 = vrot.lane.b32.xlu0 %v6515_v34, %s5963_s25 }
 0x4fb   : > { %2409 = vrot.lane.b32.xlu1 %v6463_v60, %s5964_s7 }
 0x4fe   : > { %1642 = vrot.lane.b32.xlu0 %v6542_v48, %s5963_s25 }
 0x4ff   : > { %1648 = vrot.lane.b32.xlu1 %v6550_v5, %s5963_s25 }
 0x502   : > { %v1411_v51 = vpop.xlane.xlu0 %1410  ;;  %2421 = vrot.lane.b32.xlu0 %v6443_v50, %s5964_s7 }
 0x503   : > { %2427 = vrot.lane.b32.xlu1 %v6471_v3, %s5964_s7  ;;  %5297 = vrcp.f32 %v1411_v51 }
 0x506   : > { %2407 = vrot.lane.b32.xlu0 %v6453_v54, %s5964_s7  ;;  %v1414_v53 = vpop.xlane.xlu1 %1413 }
 0x507   : > { %5299 = vrcp.f32 %v1414_v53  ;;  %2413 = vrot.lane.b32.xlu1 %v6487_v16, %s5964_s7 }
 0x50a   : > { %v1417_v60 = vpop.xlane.xlu0 %1416  ;;  %1646 = vrot.lane.b32.xlu0 %v6552_v8, %s5963_s25 }
 0x50b   : > { %1652 = vrot.lane.b32.xlu1 %v6558_v24, %s5963_s25  ;;  %5301 = vrcp.f32 %v1417_v60 }
 0x50d   : > { %v5298_v3 = vpop.eup %5297 }
 0x50e   : > { %2425 = vrot.lane.b32.xlu0 %v6459_v58, %s5964_s7  ;;  %v1420_v50 = vpop.xlane.xlu1 %1419  ;;  %v1458_v16 = vmul.f32 %v5298_v3, %v6763_v12  ;;  %v1459_v39 = vmul.f32 %v5298_v3, %v6765_v55  ;;  %v8866_v12 = vld [vmem:[#allocation28_spill] sm:$0xff]  ;;  %v8868_v55 = vld [vmem:[#allocation29_spill] sm:$0xff] }
 0x50f   : > { %5303 = vrcp.f32 %v1420_v50  ;;  %2431 = vrot.lane.b32.xlu1 %v6495_v22, %s5964_s7 }
 0x511   : > { %v5300_v54 = vpop.eup %5299 }
 0x512   : > { %v1461_v42 = vmul.f32 %v5300_v54, %v6771_v19  ;;  %v1423_v7 = vpop.xlane.xlu0 %1422  ;;  %2411 = vrot.lane.b32.xlu0 %v6475_v6, %s5964_s7  ;;  %v1462_v41 = vmul.f32 %v5300_v54, %v6775_v10  ;;  %v1731_v6 = vsel %vm1079_vm0, %v8867_v59, 0 }
 0x513   : > { %2417 = vrot.lane.b32.xlu1 %v6509_v31, %s5964_s7  ;;  %5305 = vrcp.f32 %v1423_v7  ;;  %v8869_v31 = vld [vmem:[#allocation50_spill] sm:$0xff] }
 0x514   : > { %v1506_v58 = vpack.c.bf16 %v1462_v41, %v1459_v39  ;;  %v1505_v43 = vpack.c.bf16 %v1461_v42, %v1458_v16  ;;  %v8871_v16 = vld [vmem:[#allocation27_spill] sm:$0xff]  ;;  %v5649_v42 = vld [vmem:[#allocation2] sm:$0xff] }
 0x515   : > { %v1426_v22 = vpop.xlane.xlu1 %1425  ;;  %v5302_v19 = vpop.eup %5301  ;;  %v8874_v41 = vld [vmem:[#allocation30_spill] sm:$0xff] }
 0x516   : > { %5307 = vrcp.f32 %v1426_v22  ;;  %1650 = vrot.lane.b32.xlu0 %v8866_v12, %s5963_s25  ;;  %1553 = vmatprep.mubr.bf16.mxu0 %v1506_v58  ;;  %v1465_v57 = vmul.f32 %v5302_v19, %v6781_v45  ;;  %v1464_v51 = vmul.f32 %v5302_v19, %v6779_v25  ;;  %v8872_v45 = vld [vmem:[#allocation48_spill] sm:$0xff] }
 0x517   : > { %1656 = vrot.lane.b32.xlu1 %v8868_v55, %s5963_s25  ;;  %1554 = vmatmul.mubr.bf16.vlgmr.msra.gmra.mrb[16].mxu0 %v1505_v43 }
 0x518   : > { %4622 = vmatpush3.bf16.xpose.msra.mxu0 %v1731_v6 }
 0x519   : > { %v5304_v10 = vpop.eup %5303  ;;  %5030 = vmatprep.subr.msk.bf16.mxu0 %vm1079_vm0, %v8869_v31 }
 0x51a   : > { %v1429_v37 = vpop.xlane.xlu0 %1428  ;;  %2429 = vrot.lane.b32.xlu0 %v8870_v63, %s5964_s7  ;;  %v1468_v1 = vmul.f32 %v5304_v10, %v6791_v18  ;;  %v1467_v53 = vmul.f32 %v5304_v10, %v6787_v15  ;;  %v1734_v18 = vsel %vm1079_vm0, %v8872_v45, 0  ;;  %v5651_v63 = vld [vmem:[#allocation2 + $0x10] sm:$0xff] }
 0x51b   : > { %2435 = vrot.lane.b32.xlu1 %v6513_v33, %s5964_s7  ;;  %5309 = vrcp.f32 %v1429_v37  ;;  %v8873_v33 = vld [vmem:[#allocation52_spill] sm:$0xff] }
 0x51c   : > { %v1508_v60 = vpack.c.bf16 %v1468_v1, %v1465_v57  ;;  %v1507_v50 = vpack.c.bf16 %v1467_v53, %v1464_v51 }
 0x51d   : > { %v1432_v3 = vpop.xlane.xlu1 %1431  ;;  %v5306_v54 = vpop.eup %5305 }
 0x51e   : > { %5311 = vrcp.f32 %v1432_v3  ;;  %2415 = vrot.lane.b32.xlu0 %v8871_v16, %s5964_s7  ;;  %1561 = vmatprep.mubr.bf16.mxu0 %v1508_v60  ;;  %v1471_v15 = vmul.f32 %v5306_v54, %v6797_v61  ;;  %v1470_v22 = vmul.f32 %v5306_v54, %v6795_v23  ;;  %v8875_v61 = vld [vmem:[#allocation49_spill] sm:$0xff] }
 0x51f   : > { %3120 = vrot.lane.b32.xlu1 %v5649_v42, %s5965_s8  ;;  %1562 = vmatmul.mubr.bf16.gmra.mrb[20].mxu0 %v1507_v50  ;;  %v5652_v50 = vld [vmem:[#allocation2 + $0x40] sm:$0xff]  ;;  %v5653_v54 = vld [vmem:[#allocation2 + $0x58] sm:$0xff] }
 0x520   : > { %v5308_v25 = vpop.eup %5307  ;;  %4624 = vmatpush3.bf16.xpose.msra.mxu0 %v1734_v18 }
 0x521   : > { %5031 = vmatprep.subr.msk.bf16.mxu0 %vm1079_vm0, %v8873_v33  ;;  %v1474_v7 = vmul.f32 %v5308_v25, %v6805_v30  ;;  %v1473_v39 = vmul.f32 %v5308_v25, %v6799_v2  ;;  %v1737_v2 = vsel %vm1079_vm0, %v8875_v61, 0  ;;  %v5650_v30 = vld [vmem:[#allocation2 + $0x48] sm:$0xff]  ;;  %v5655_v25 = vld [vmem:[#allocation2 + $0x20] sm:$0xff] }
 0x522   : > { %1654 = vrot.lane.b32.xlu0 %v8874_v41, %s5963_s25  ;;  %v1435_v58 = vpop.xlane.xlu1 %1434 }
 0x523   : > { %2391 = vrot.lane.b32.xlu1 %v6540_v47, %s5964_s7  ;;  %v1510_v43 = vpack.c.bf16 %v1474_v7, %v1471_v15  ;;  %5313 = vrcp.f32 %v1435_v58  ;;  %v1509_v59 = vpack.c.bf16 %v1473_v39, %v1470_v22 }
 0x525   : > { %v1438_v19 = vpop.xlane.xlu0 %1437  ;;  %1569 = vmatprep.mubr.bf16.mxu0 %v1510_v43  ;;  %v5310_v6 = vpop.eup %5309 }
 0x526   : > { %5315 = vrcp.f32 %v1438_v19  ;;  %2433 = vrot.lane.b32.xlu0 %v6505_v29, %s5964_s7  ;;  %v1477_v23 = vmul.f32 %v5310_v6, %v6813_v46  ;;  %v1476_v1 = vmul.f32 %v5310_v6, %v6811_v17  ;;  %v8877_v19 = vld [vmem:[#allocation54_spill] sm:$0xff]  ;;  %v5658_v6 = vld [vmem:[#allocation2 + $0x18] sm:$0xff] }
 0x527   : > { %3138 = vrot.lane.b32.xlu1 %v5650_v30, %s5965_s8  ;;  %1570 = vmatmul.mubr.bf16.gmra.mrb[24].mxu0 %v1509_v59 }
 0x528   : > { %v5312_v10 = vpop.eup %5311  ;;  %4626 = vmatpush3.bf16.xpose.msra.mxu0 %v1737_v2  ;;  %v5659_v2 = vld [vmem:[#allocation2 + $0x30] sm:$0xff] }
 0x529   : > { %5032 = vmatprep.subr.msk.bf16.mxu0 %vm1079_vm0, %v6755_v36  ;;  %v1480_v31 = vmul.f32 %v5312_v10, %v6821_v40  ;;  %v1479_v37 = vmul.f32 %v5312_v10, %v6815_v20  ;;  %v8876_v20 = vld [vmem:[#allocation51_spill] sm:$0xff] }
 0x52a   : > { %2419 = vrot.lane.b32.xlu0 %v6515_v34, %s5964_s7  ;;  %v1441_v29 = vpop.xlane.xlu1 %1440  ;;  %v1740_v40 = vsel %vm1079_vm0, %v8876_v20, 0 }
 0x52b   : > { %5317 = vrcp.f32 %v1441_v29  ;;  %3124 = vrot.lane.b32.xlu1 %v5651_v63, %s5965_s8  ;;  %v1512_v57 = vpack.c.bf16 %v1480_v31, %v1477_v23  ;;  %v1511_v36 = vpack.c.bf16 %v1479_v37, %v1476_v1  ;;  %v5661_v31 = vld [vmem:[#allocation2 + $0x78] sm:$0xff]  ;;  %v5662_v37 = vld [vmem:[#allocation2 + $0x28] sm:$0xff]  ;;  %v5663_v29 = vld [vmem:[#allocation2 + $0x70] sm:$0xff] }
 0x52c   : > { %v1444_v51 = vpop.xlane.xlu0 %1443  ;;  %v5664_v63 = vld [vmem:[#allocation2 + $0x38] sm:$0xff] }
 0x52d   : > { %5319 = vrcp.f32 %v1444_v51  ;;  %1577 = vmatprep.mubr.bf16.mxu0 %v1512_v57  ;;  %v5314_v46 = vpop.eup %5313  ;;  %v8881_v57 = vld [vmem:[#allocation35_spill] sm:$0xff]  ;;  %v8884_v51 = vld [vmem:[#allocation38_spill] sm:$0xff] }
 0x52e   : > { %2389 = vrot.lane.b32.xlu0 %v6542_v48, %s5964_s7  ;;  %v1483_v17 = vmul.f32 %v5314_v46, %v6829_v11  ;;  %v1482_v45 = vmul.f32 %v5314_v46, %v6827_v4  ;;  %v8886_v46 = vld [vmem:[#allocation39_spill] sm:$0xff] }
 0x52f   : > { %2395 = vrot.lane.b32.xlu1 %v6550_v5, %s5964_s7  ;;  %1578 = vmatmul.mubr.bf16.gmra.mrb[28].mxu0 %v1511_v36  ;;  %v8885_v36 = vld [vmem:[#allocation33_spill] sm:$0xff] }
 0x530   : > { %v5316_v34 = vpop.eup %5315  ;;  %4628 = vmatpush3.bf16.xpose.msra.mxu0 %v1740_v40 }
 0x531   : > { %5033 = vmatprep.subr.msk.bf16.mxu0 %vm1079_vm0, %v6871_v21  ;;  %v1486_v53 = vmul.f32 %v5316_v34, %v6837_v26  ;;  %v1485_v60 = vmul.f32 %v5316_v34, %v6831_v52  ;;  %v5654_v21 = vld [vmem:[#allocation2 + $0x8] sm:$0xff]  ;;  %v1743_v26 = vsel %vm1079_vm0, %v6905_v56, 0  ;;  %v8887_v34 = vld [vmem:[#allocation37_spill] sm:$0xff] }
 0x532   : > { %3136 = vrot.lane.b32.xlu0 %v5652_v50, %s5965_s8  ;;  %v1447_v3 = vpop.xlane.xlu1 %1446 }
 0x533   : > { %5321 = vrcp.f32 %v1447_v3  ;;  %3142 = vrot.lane.b32.xlu1 %v5653_v54, %s5965_s8  ;;  %v1514_v16 = vpack.c.bf16 %v1486_v53, %v1483_v17  ;;  %v1513_v11 = vpack.c.bf16 %v1485_v60, %v1482_v45  ;;  %v8888_v53 = vld [vmem:[#allocation40_spill] sm:$0xff]  ;;  %v8889_v3 = vld [vmem:[#allocation41_spill] sm:$0xff] }
 0x534   : > { %v1450_v18 = vpop.xlane.xlu0 %1449 }
 0x535   : > { %v5318_v42 = vpop.eup %5317  ;;  %5323 = vrcp.f32 %v1450_v18  ;;  %1585 = vmatprep.mubr.bf16.mxu0 %v1514_v16  ;;  %v8890_v16 = vld [vmem:[#allocation42_spill] sm:$0xff] }
 0x536   : > { %3122 = vrot.lane.b32.xlu0 %v5654_v21, %s5965_s8  ;;  %v1489_v33 = vmul.f32 %v5318_v42, %v6845_v44  ;;  %v1488_v56 = vmul.f32 %v5318_v42, %v6843_v62  ;;  %v5656_v44 = vld [vmem:[#allocation2 + $0x50] sm:$0xff]  ;;  %v1703_v43 = vpop.permute.xlu1 %1702 }
 0x537   : > { %v5320_v52 = vpop.eup %5319  ;;  %3128 = vrot.lane.b32.xlu1 %v5655_v25, %s5965_s8  ;;  %1586 = vmatmul.mubr.bf16.gmra.mrb[32].mxu0 %v1513_v11 }
 0x538   : > { %4630 = vmatpush3.bf16.xpose.msra.mxu0 %v1743_v26  ;;  %v1492_v4 = vmul.f32 %v5320_v52, %v6851_v38  ;;  %v1491_v15 = vmul.f32 %v5320_v52, %v6847_v32  ;;  %v5657_v32 = vld [vmem:[#allocation2 + $0x68] sm:$0xff]  ;;  %v1687_v10 = vpop.permute.xlu0 %1686  ;;  %v8891_v26 = vld [vmem:[#allocation45_spill] sm:$0xff] }
 0x539   : > { %5034 = vmatprep.subr.msk.bf16.mxu0 %vm1079_vm0, %v6877_v28  ;;  %v1746_v28 = vsel %vm1079_vm0, %v6875_v27, 0  ;;  %v8878_v27 = vld [vmem:[#allocation53_spill] sm:$0xff] }
 0x53a   : > { %2393 = vrot.lane.b32.xlu0 %v6552_v8, %s5964_s7  ;;  %v1516_v7 = vpack.c.bf16 %v1492_v4, %v1489_v33  ;;  %v1515_v58 = vpack.c.bf16 %v1491_v15, %v1488_v56  ;;  %v8892_v15 = vld [vmem:[#allocation43_spill] sm:$0xff] }
 0x53b   : > { %2399 = vrot.lane.b32.xlu1 %v6558_v24, %s5964_s7  ;;  %v5666_v56 = vld [vmem:[#allocation3 + $0x48] sm:$0xff] }
 0x53c   : > { %1593 = vmatprep.mubr.bf16.mxu0 %v1516_v7 }
 0x53d   : > { %v5322_v39 = vpop.eup %5321 }
 0x53e   : > { %3140 = vrot.lane.b32.xlu0 %v5656_v44, %s5965_s8  ;;  %v1495_v22 = vmul.f32 %v5322_v39, %v6857_v13  ;;  %v1494_v30 = vmul.f32 %v5322_v39, %v8878_v27  ;;  %v1749_v13 = vsel %vm1079_vm0, %v1687_v10, 0  ;;  %v7115_v27 = vld [vmem:[#allocation3 + $0x50] sm:$0xff] }
 0x53f   : > { %v5324_v38 = vpop.eup %5323  ;;  %3146 = vrot.lane.b32.xlu1 %v5657_v32, %s5965_s8  ;;  %1594 = vmatmul.mubr.bf16.gmra.mrb[36].mxu0 %v1515_v58  ;;  %v8894_v58 = vld [vmem:[#allocation46_spill] sm:$0xff] }
 0x540   : > { %4632 = vmatpush3.bf16.xpose.msra.mxu0 %v1746_v28  ;;  %v1498_v62 = vmul.f32 %v5324_v38, %v6863_v9  ;;  %v1497_v59 = vmul.f32 %v5324_v38, %v8877_v19  ;;  %v5660_v9 = vld [vmem:[#allocation2 + $0x60] sm:$0xff]  ;;  %v5667_v28 = vld [vmem:[#allocation3 + $0x58] sm:$0xff] }
 0x541   : > { %5035 = vmatprep.subr.msk.bf16.mxu0 %vm1079_vm0, %v1703_v43  ;;  %v7098_v43 = vld [vmem:[#allocation3] sm:$0xff] }
 0x542   : > { %3126 = vrot.lane.b32.xlu0 %v5658_v6, %s5965_s8  ;;  %v1518_v61 = vpack.c.bf16 %v1498_v62, %v1495_v22  ;;  %v1517_v23 = vpack.c.bf16 %v1497_v59, %v1494_v30  ;;  %v5669_v62 = vld [vmem:[#allocation3 + $0x68] sm:$0xff] }
 0x543   : > { %3132 = vrot.lane.b32.xlu1 %v5659_v2, %s5965_s8  ;;  %v7104_v6 = vld [vmem:[#allocation3 + $0x8] sm:$0xff] }
 0x544   : > { %1601 = vmatprep.mubr.bf16.mxu0 %v1518_v61 }
 0x546   : > { %2397 = vrot.lane.b32.xlu0 %v8866_v12, %s5964_s7 }
 0x547   : > { %2403 = vrot.lane.b32.xlu1 %v8868_v55, %s5964_s7  ;;  %1602 = vmatmul.mubr.bf16.gmra.mrb[40].mxu0 %v1517_v23 }
 0x548   : > { %4634 = vmatpush3.bf16.xpose.msra.mxu0 %v1749_v13  ;;  %v7123_v13 = vld [vmem:[#allocation3 + $0x10] sm:$0xff] }
 0x54a   : > { %3144 = vrot.lane.b32.xlu0 %v5660_v9, %s5965_s8 }
 0x54b   : > { %3150 = vrot.lane.b32.xlu1 %v5661_v31, %s5965_s8 }
 0x54e   : > { %3130 = vrot.lane.b32.xlu0 %v5662_v37, %s5965_s8  ;;  %v7132_v37 = vld [vmem:[#allocation3 + $0x18] sm:$0xff] }
 0x54f   : > { %3106 = vrot.lane.b32.xlu1 %v6540_v47, %s5965_s8  ;;  %v8879_v47 = vld [vmem:[#allocation32_spill] sm:$0xff] }
 0x552   : > { %2401 = vrot.lane.b32.xlu0 %v8874_v41, %s5964_s7 }
 0x553   : > { %3110 = vrot.lane.b32.xlu1 %v6550_v5, %s5965_s8  ;;  %v8880_v5 = vld [vmem:[#allocation34_spill] sm:$0xff] }
 0x556   : > { %3148 = vrot.lane.b32.xlu0 %v5663_v29, %s5965_s8 }
 0x557   : > { %3114 = vrot.lane.b32.xlu1 %v6558_v24, %s5965_s8 }
 0x55a   : > { %3134 = vrot.lane.b32.xlu0 %v5664_v63, %s5965_s8 }
 0x55b   : > { %3118 = vrot.lane.b32.xlu1 %v8868_v55, %s5965_s8  ;;  %v8882_v55 = vld [vmem:[#allocation36_spill] sm:$0xff] }
 0x55e   : > { %3104 = vrot.lane.b32.xlu0 %v6542_v48, %s5965_s8 }
 0x55f   : > { %2163 = vrot.lane.b32.xlu1 %v8879_v47, %s5963_s25 }
 0x562   : > { %3108 = vrot.lane.b32.xlu0 %v6552_v8, %s5965_s8  ;;  %v8883_v8 = vld [vmem:[#allocation31_spill] sm:$0xff] }
 0x563   : > { %2165 = vrot.lane.b32.xlu1 %v8880_v5, %s5963_s25  ;;  %v5674_v5 = vld [vmem:[#allocation3 + $0x60] sm:$0xff] }
 0x566   : > { %3112 = vrot.lane.b32.xlu0 %v8866_v12, %s5965_s8 }
 0x567   : > { %v1453_v24 = vpop.xlane.xlu1 %1452  ;;  %2183 = vrot.lane.b32.xlu1 %v8881_v57, %s5963_s25 }
 0x568   : > { %5325 = vrcp.f32 %v1453_v24 }
 0x56a   : > { %3116 = vrot.lane.b32.xlu0 %v8874_v41, %s5965_s8 }
 0x56b   : > { %v1705_v48 = vpop.permute.xlu1 %1704  ;;  %2167 = vrot.lane.b32.xlu1 %v8882_v55, %s5963_s25 }
 0x56c   : > { %5036 = vmatprep.subr.msk.bf16.mxu0 %vm1079_vm0, %v1705_v48  ;;  %v5675_v48 = vld [vmem:[#allocation3 + $0x20] sm:$0xff] }
 0x56e   : > { %2179 = vrot.lane.b32.xlu0 %v8883_v8, %s5963_s25 }
 0x56f   : > { %v2406_v1 = vpop.permute.xlu1 %2405  ;;  %2169 = vrot.lane.b32.xlu1 %v8884_v51, %s5963_s25  ;;  %v7151_v51 = vld [vmem:[#allocation3 + $0x28] sm:$0xff] }
 0x570   : > { %v2462_v44 = vsel %vm1079_vm0, %v2406_v1, 0 }
 0x571   : > { %v1456_v12 = vpop.xlane.xlu0 %1455 }
 0x572   : > { %5327 = vrcp.f32 %v1456_v12  ;;  %2181 = vrot.lane.b32.xlu0 %v8885_v36, %s5963_s25  ;;  %v5326_v50 = vpop.eup %5325 }
 0x573   : > { %v1645_v41 = vpop.permute.xlu1 %1644  ;;  %2187 = vrot.lane.b32.xlu1 %v8886_v46, %s5963_s25  ;;  %v1501_v42 = vmul.f32 %v5326_v50, %v6883_v0  ;;  %v1500_v21 = vmul.f32 %v5326_v50, %v6881_v14  ;;  %v5665_v0 = vld [vmem:[#allocation3 + $0x40] sm:$0xff] }
 0x575   : > { %v1689_v20 = vpop.permute.xlu0 %1688 }
 0x576   : > { %v1752_v40 = vsel %vm1079_vm0, %v1689_v20, 0  ;;  %2185 = vrot.lane.b32.xlu0 %v8887_v34, %s5963_s25  ;;  %v5678_v34 = vld [vmem:[#allocation3 + $0x30] sm:$0xff] }
 0x577   : > { %v2424_v17 = vpop.permute.xlu1 %2423  ;;  %4636 = vmatpush3.bf16.xpose.msra.mxu0 %v1752_v40  ;;  %2171 = vrot.lane.b32.xlu1 %v8888_v53, %s5963_s25 }
 0x579   : > { %v1643_v60 = vpop.permute.xlu0 %1642 }
 0x57a   : > { %2189 = vrot.lane.b32.xlu0 %v8889_v3, %s5963_s25 }
 0x57b   : > { %v2410_v54 = vpop.permute.xlu1 %2409  ;;  %2173 = vrot.lane.b32.xlu1 %v8890_v16, %s5963_s25 }
 0x57c   : > { %v5328_v45 = vpop.eup %5327  ;;  %v2468_v23 = vsel %vm1079_vm0, %v2410_v54, 0 }
 0x57d   : > { %v2422_v18 = vpop.permute.xlu0 %2421  ;;  %v1504_v11 = vmul.f32 %v5328_v45, %v6889_v35  ;;  %v1503_v52 = vmul.f32 %v5328_v45, %v6887_v49  ;;  %v8893_v49 = vld [vmem:[#allocation44_spill] sm:$0xff] }
 0x57e   : > { %5037 = vmatprep.subr.msk.bf16.mxu0 %vm1079_vm0, %v2422_v18  ;;  %2193 = vrot.lane.b32.xlu0 %v8891_v26, %s5963_s25 }
 0x57f   : > { %v7080_v25 = vpop.permute.xlu1 %1648  ;;  %v1520_v33 = vpack.c.bf16 %v1504_v11, %v1501_v42  ;;  %v1519_v4 = vpack.c.bf16 %v1503_v52, %v1500_v21  ;;  %2191 = vrot.lane.b32.xlu1 %v8892_v15, %s5963_s25 }
 0x581   : > { %v2408_v7 = vpop.permute.xlu0 %2407  ;;  %1609 = vmatprep.mubr.bf16.mxu0 %v1520_v33 }
 0x582   : > { %1610 = vmatmul.mubr.bf16.gmra.mrb[44].mxu0 %v1519_v4  ;;  %2894 = vrot.lane.b32.xlu0 %v5665_v0, %s5964_s7  ;;  %v2465_v59 = vsel %vm1079_vm0, %v2408_v7, 0 }
 0x583   : > { %4637 = vmatprep.mubr.msk.bf16.mxu0 %vm1079_vm0, %v1643_v60  ;;  %v2428_v14 = vpop.permute.xlu1 %2427  ;;  %2175 = vrot.lane.b32.xlu1 %v8893_v49, %s5963_s25 }
 0x585   : > { %v1647_v35 = vpop.permute.xlu0 %1646 }
 0x586   : > { %2896 = vrot.lane.b32.xlu0 %v5666_v56, %s5964_s7 }
 0x587   : > { %v2414_v39 = vpop.permute.xlu1 %2413  ;;  %2177 = vrot.lane.b32.xlu1 %v8894_v58, %s5963_s25 }
 0x588   : > { %v2474_v1 = vsel %vm1079_vm0, %v2414_v39, 0 }
 0x589   : > { %v2426_v38 = vpop.permute.xlu0 %2425 }
 0x58a   : > { %4638 = vmatmul.mubr.msk.bf16.vlgmr.msra.gmra.mrb[48].mxu0 %vm1079_vm0, %v1643_v60  ;;  %2900 = vrot.lane.b32.xlu0 %v5667_v28, %s5964_s7  ;;  %v5679_v60 = vld [vmem:[#allocation3 + $0x38] sm:$0xff] }
 0x58b   : > { %4639 = vmatprep.mubr.msk.bf16.mxu0 %vm1079_vm0, %v1645_v41  ;;  %4718 = vmatpush3.bf16.xpose.msra.mxu0 %v2462_v44  ;;  %v7095_v32 = vpop.permute.xlu1 %1652 }
 0x58c   : > { %5038 = vmatprep.subr.msk.bf16.mxu0 %vm1079_vm0, %v2424_v17  ;;  %2878 = vrot.lane.b32.xlu1 %v7098_v43, %s5964_s7 }
 0x58d   : > { %v2412_v22 = vpop.permute.xlu0 %2411 }
 0x58e   : > { %2904 = vrot.lane.b32.xlu0 %v5669_v62, %s5964_s7  ;;  %v2471_v47 = vsel %vm1079_vm0, %v2412_v22, 0 }
 0x58f   : > { %v2432_v19 = vpop.permute.xlu1 %2431 }
 0x590   : > { %2880 = vrot.lane.b32.xlu1 %v7104_v6, %s5964_s7 }
 0x591   : > { %v1651_v61 = vpop.permute.xlu0 %1650 }
 0x592   : > { %4640 = vmatmul.mubr.msk.bf16.gmra.mrb[52].mxu0 %vm1079_vm0, %v1645_v41  ;;  %2908 = vrot.lane.b32.xlu0 %v8891_v26, %s5964_s7  ;;  %v5677_v41 = vld [vmem:[#allocation3 + $0x70] sm:$0xff] }
 0x593   : > { %4641 = vmatprep.mubr.msk.bf16.mxu0 %vm1079_vm0, %v1647_v35  ;;  %4720 = vmatpush3.bf16.xpose.msra.mxu0 %v2465_v59  ;;  %v7112_v2 = vpop.permute.xlu1 %2417 }
 0x594   : > { %5039 = vmatprep.subr.msk.bf16.mxu0 %vm1079_vm0, %v2426_v38  ;;  %2898 = vrot.lane.b32.xlu1 %v7115_v27, %s5964_s7  ;;  %v2480_v54 = vsel %vm1079_vm0, %v7112_v2, 0 }
 0x595   : > { %v2430_v30 = vpop.permute.xlu0 %2429 }
 0x596   : > { %3609 = vrot.lane.b32.xlu0 %v5665_v0, %s5965_s8 }
 0x597   : > { %v7120_v10 = vpop.permute.xlu1 %1656 }
 0x598   : > { %2882 = vrot.lane.b32.xlu1 %v7123_v13, %s5964_s7 }
 0x599   : > { %v2416_v9 = vpop.permute.xlu0 %2415 }
 0x59a   : > { %4642 = vmatmul.mubr.msk.bf16.gmra.mrb[56].mxu0 %vm1079_vm0, %v1647_v35  ;;  %3611 = vrot.lane.b32.xlu0 %v5666_v56, %s5965_s8  ;;  %v2477_v40 = vsel %vm1079_vm0, %v2416_v9, 0 }
 0x59b   : > { %4643 = vmatprep.mubr.msk.bf16.mxu0 %vm1079_vm0, %v7080_v25  ;;  %4722 = vmatpush3.bf16.xpose.msra.mxu0 %v2468_v23  ;;  %v2436_v31 = vpop.permute.xlu1 %2435 }
 0x59c   : > { %5040 = vmatprep.subr.msk.bf16.mxu0 %vm1079_vm0, %v2428_v14  ;;  %2884 = vrot.lane.b32.xlu1 %v7132_v37, %s5964_s7 }
 0x59d   : > { %v1655_v29 = vpop.permute.xlu0 %1654 }
 0x59e   : > { %3615 = vrot.lane.b32.xlu0 %v5667_v28, %s5965_s8 }
 0x59f   : > { %v7137_v63 = vpop.permute.xlu1 %3120 }
 0x5a0   : > { %2902 = vrot.lane.b32.xlu1 %v5674_v5, %s5964_s7  ;;  %v3177_v33 = vsel %vm1079_vm0, %v7137_v63, 0 }
 0x5a1   : > { %v2434_v24 = vpop.permute.xlu0 %2433 }
 0x5a2   : > { %4644 = vmatmul.mubr.msk.bf16.gmra.mrb[60].mxu0 %vm1079_vm0, %v7080_v25  ;;  %3617 = vrot.lane.b32.xlu0 %v5674_v5, %s5965_s8 }
 0x5a3   : > { %4645 = vmatprep.mubr.msk.bf16.mxu0 %vm1079_vm0, %v1651_v61  ;;  %4724 = vmatpush3.bf16.xpose.msra.mxu0 %v2471_v47  ;;  %v7145_v57 = vpop.permute.xlu1 %2391 }
 0x5a4   : > { %5041 = vmatprep.subr.msk.bf16.mxu0 %vm1079_vm0, %v2430_v30  ;;  %2886 = vrot.lane.b32.xlu1 %v5675_v48, %s5964_s7 }
 0x5a5   : > { %v2420_v55 = vpop.permute.xlu0 %2419 }
 0x5a6   : > { %3619 = vrot.lane.b32.xlu0 %v5669_v62, %s5965_s8  ;;  %v2483_v11 = vsel %vm1079_vm0, %v2420_v55, 0 }
 0x5a7   : > { %v3139_v8 = vpop.permute.xlu1 %3138 }
 0x5a8   : > { %2888 = vrot.lane.b32.xlu1 %v7151_v51, %s5964_s7 }
 0x5a9   : > { %v2390_v12 = vpop.permute.xlu0 %2389 }
 0x5aa   : > { %4646 = vmatmul.mubr.msk.bf16.gmra.mrb[64].mxu0 %vm1079_vm0, %v1651_v61 }
 0x5ab   : > { %4647 = vmatprep.mubr.msk.bf16.mxu0 %vm1079_vm0, %v7095_v32  ;;  %4726 = vmatpush3.bf16.xpose.msra.mxu0 %v2474_v1  ;;  %v3125_v36 = vpop.permute.xlu1 %3124 }
 0x5ac   : > { %5042 = vmatprep.subr.msk.bf16.mxu0 %vm1079_vm0, %v2432_v19  ;;  %2906 = vrot.lane.b32.xlu1 %v5677_v41, %s5964_s7  ;;  %v3183_v58 = vsel %vm1079_vm0, %v3125_v36, 0 }
 0x5ad   : > { %v3137_v46 = vpop.permute.xlu0 %3136 }
 0x5af   : > { %v7160_v20 = vpop.permute.xlu1 %2395 }
 0x5b0   : > { %2890 = vrot.lane.b32.xlu1 %v5678_v34, %s5964_s7 }
 0x5b1   : > { %v3123_v17 = vpop.permute.xlu0 %3122 }
 0x5b2   : > { %4648 = vmatmul.mubr.msk.bf16.gmra.mrb[68].mxu0 %vm1079_vm0, %v7095_v32  ;;  %v3180_v14 = vsel %vm1079_vm0, %v3123_v17, 0 }
 0x5b3   : > { %4649 = vmatprep.mubr.msk.bf16.mxu0 %vm1079_vm0, %v1655_v29  ;;  %4728 = vmatpush3.bf16.xpose.msra.mxu0 %v2477_v40  ;;  %v3143_v53 = vpop.permute.xlu1 %3142 }
 0x5b4   : > { %5043 = vmatprep.subr.msk.bf16.mxu0 %vm1079_vm0, %v2434_v24  ;;  %2892 = vrot.lane.b32.xlu1 %v5679_v60, %s5964_s7 }
 0x5b5   : > { %v2394_v50 = vpop.permute.xlu0 %2393 }
 0x5b7   : > { %v3129_v3 = vpop.permute.xlu1 %3128 }
 0x5b8   : > { %3593 = vrot.lane.b32.xlu1 %v7098_v43, %s5965_s8 }
 0x5b9   : > { %v3141_v16 = vpop.permute.xlu0 %3140 }
 0x5ba   : > { %4650 = vmatmul.mubr.msk.bf16.gmra.mrb[72].mxu0 %vm1079_vm0, %v1655_v29 }
 0x5bb   : > { %4651 = vmatprep.mubr.msk.bf16.mxu0 %vm1079_vm0, %v7120_v10  ;;  %4730 = vmatpush3.bf16.xpose.msra.mxu0 %v2480_v54  ;;  %v7176_v45 = vpop.permute.xlu1 %2399 }
 0x5bc   : > { %5044 = vmatprep.subr.msk.bf16.mxu0 %vm1079_vm0, %v2436_v31  ;;  %3595 = vrot.lane.b32.xlu1 %v7104_v6, %s5965_s8  ;;  %v3189_v6 = vsel %vm1079_vm0, %v3129_v3, 0 }
 0x5bd   : > { %v3127_v18 = vpop.permute.xlu0 %3126 }
 0x5be   : > { %v3186_v43 = vsel %vm1079_vm0, %v3127_v18, 0 }
 0x5bf   : > { %v3147_v42 = vpop.permute.xlu1 %3146 }
 0x5c0   : > { %3613 = vrot.lane.b32.xlu1 %v7115_v27, %s5965_s8 }
 0x5c1   : > { %v2398_v21 = vpop.permute.xlu0 %2397 }
 0x5c2   : > { %4652 = vmatmul.mubr.msk.bf16.gmra.mrb[76].mxu0 %vm1079_vm0, %v7120_v10 }
 0x5c3   : > { %4732 = vmatpush3.bf16.xpose.msra.mxu0 %v2483_v11  ;;  %4733 = vmatprep.mubr.msk.bf16.mxu0 %vm1079_vm0, %v2390_v12  ;;  %v7187_v52 = vpop.permute.xlu1 %3132 }
 0x5c4   : > { %5045 = vmatprep.subr.msk.bf16.mxu0 %vm1079_vm0, %v3137_v46  ;;  %3597 = vrot.lane.b32.xlu1 %v7123_v13, %s5965_s8 }
 0x5c5   : > { %v3145_v26 = vpop.permute.xlu0 %3144 }
 0x5c7   : > { %v7192_v25 = vpop.permute.xlu1 %2403 }
 0x5c8   : > { %3599 = vrot.lane.b32.xlu1 %v7132_v37, %s5965_s8 }
 0x5c9   : > { %v3131_v4 = vpop.permute.xlu0 %3130 }
 0x5ca   : > { %4734 = vmatmul.mubr.msk.bf16.vlgmr.msra.gmra.mrb[80].mxu0 %vm1079_vm0, %v2390_v12  ;;  %v3192_v29 = vsel %vm1079_vm0, %v3131_v4, 0  ;;  %v3195_v12 = vsel %vm1079_vm0, %v7187_v52, 0 }
 0x5cb   : > { %4735 = vmatprep.mubr.msk.bf16.mxu0 %vm1079_vm0, %v7145_v57  ;;  %4814 = vmatpush3.bf16.xpose.msra.mxu0 %v3177_v33  ;;  %v7201_v15 = vpop.permute.xlu1 %3150 }
 0x5cc   : > { %5046 = vmatprep.subr.msk.bf16.mxu0 %vm1079_vm0, %v3139_v8  ;;  %3601 = vrot.lane.b32.xlu1 %v5675_v48, %s5965_s8 }
 0x5cd   : > { %v7205_v7 = vpop.permute.xlu0 %2401 }
 0x5cf   : > { %v7207_v0 = vpop.permute.xlu1 %3106 }
 0x5d1   : > { %v3149_v49 = vpop.permute.xlu0 %3148 }
 0x5d2   : > { %4736 = vmatmul.mubr.msk.bf16.gmra.mrb[84].mxu0 %vm1079_vm0, %v7145_v57 }
 0x5d3   : > { %4737 = vmatprep.mubr.msk.bf16.mxu0 %vm1079_vm0, %v2394_v50  ;;  %4816 = vmatpush3.bf16.xpose.msra.mxu0 %v3180_v14  ;;  %v7213_v35 = vpop.permute.xlu1 %3110 }
 0x5d4   : > { %5047 = vmatprep.subr.msk.bf16.mxu0 %vm1079_vm0, %v3141_v16 }
 0x5d5   : > { %v7216_v56 = vpop.permute.xlu0 %3134 }
 0x5d7   : > { %v7218_v39 = vpop.permute.xlu1 %3114 }
 0x5d9   : > { %v7221_v44 = vpop.permute.xlu0 %3104 }
 0x5da   : > { %4738 = vmatmul.mubr.msk.bf16.gmra.mrb[88].mxu0 %vm1079_vm0, %v2394_v50  ;;  %v3198_v50 = vsel %vm1079_vm0, %v7216_v56, 0 }
 0x5db   : > { %4739 = vmatprep.mubr.msk.bf16.mxu0 %vm1079_vm0, %v7160_v20  ;;  %4818 = vmatpush3.bf16.xpose.msra.mxu0 %v3183_v58  ;;  %v7226_v38 = vpop.permute.xlu1 %3118 }
 0x5dc   : > { %5048 = vmatprep.subr.msk.bf16.mxu0 %vm1079_vm0, %v3143_v53 }
 0x5dd   : > { %v7229_v28 = vpop.permute.xlu0 %3108 }
 0x5df   : > { %v2164_v32 = vpop.permute.xlu1 %2163 }
 0x5e1   : > { %v7232_v22 = vpop.permute.xlu0 %3112 }
 0x5e2   : > { %4740 = vmatmul.mubr.msk.bf16.gmra.mrb[92].mxu0 %vm1079_vm0, %v7160_v20 }
 0x5e3   : > { %4741 = vmatprep.mubr.msk.bf16.mxu0 %vm1079_vm0, %v2398_v21  ;;  %4820 = vmatpush3.bf16.xpose.msra.mxu0 %v3186_v43  ;;  %v2166_v62 = vpop.permute.xlu1 %2165 }
 0x5e4   : > { %5049 = vmatprep.subr.msk.bf16.mxu0 %vm1079_vm0, %v3145_v26 }
 0x5e5   : > { %v7238_v19 = vpop.permute.xlu0 %3116 }
 0x5e7   : > { %v2184_v59 = vpop.permute.xlu1 %2183 }
 0x5e9   : > { %v2180_v61 = vpop.permute.xlu0 %2179 }
 0x5ea   : > { %v4573_v2 = vpop.f32.mrb[16].mxu0  ;;  %4742 = vmatmul.mubr.msk.bf16.gmra.mrb[96].mxu0 %vm1079_vm0, %v2398_v21  ;;  %4653 = vmatprep.subr.bf16.mxu1 %v2180_v61 }
 0x5eb   : > { %v4574_v27 = vpop.f32.mrb[17].mxu0  ;;  %4743 = vmatprep.mubr.msk.bf16.mxu0 %vm1079_vm0, %v7176_v45  ;;  %4822 = vmatpush3.bf16.xpose.msra.mxu0 %v3189_v6  ;;  %v2168_v30 = vpop.permute.xlu1 %2167 }
 0x5ec   : > { %v4575_v10 = vadd.f32 %v4574_v27, %v4573_v2  ;;  %v4576_v23 = vpop.f32.mrb[18].mxu0  ;;  %5050 = vmatprep.subr.msk.bf16.mxu0 %vm1079_vm0, %v3147_v42  ;;  %4654 = vmatpush3.bf16.msra.mxu1 %v2164_v32 }
 0x5ed   : > { %v4577_v13 = vpop.f32.mrb[19].mxu0  ;;  %v2182_v9 = vpop.permute.xlu0 %2181 }
 0x5ee   : > { %1618 = vst.msk [vmem:[#allocation4] sm:$0xff] %vm1079_vm0, %v4575_v10  ;;  %v4578_v31 = vadd.f32 %v4577_v13, %v4576_v23  ;;  %4655 = vmatprep.subr.bf16.mxu1 %v2182_v9 }
 0x5ef   : > { %v2170_v37 = vpop.permute.xlu1 %2169 }
 0x5f0   : > { %1619 = vst.msk [vmem:[#allocation4 + $0x8] sm:$0xff] %vm1079_vm0, %v4578_v31  ;;  %4656 = vmatpush3.bf16.msra.mxu1 %v2166_v62 }
 0x5f1   : > { %4657 = vmatprep.subr.bf16.mxu1 %v2184_v59  ;;  %v2186_v47 = vpop.permute.xlu0 %2185 }
 0x5f2   : > { %v4579_v63 = vpop.f32.mrb[20].mxu0  ;;  %4744 = vmatmul.mubr.msk.bf16.gmra.mrb[100].mxu0 %vm1079_vm0, %v7176_v45 }
 0x5f3   : > { %v4580_v5 = vpop.f32.mrb[21].mxu0  ;;  %4745 = vmatprep.mubr.msk.bf16.mxu0 %vm1079_vm0, %v7205_v7  ;;  %4824 = vmatpush3.bf16.xpose.msra.mxu0 %v3192_v29  ;;  %v2188_v24 = vpop.permute.xlu1 %2187 }
 0x5f4   : > { %v4581_v57 = vadd.f32 %v4580_v5, %v4579_v63  ;;  %v4582_v48 = vpop.f32.mrb[22].mxu0  ;;  %5051 = vmatprep.subr.msk.bf16.mxu0 %vm1079_vm0, %v3149_v49  ;;  %4658 = vmatpush3.bf16.msra.mxu1 %v2168_v30 }
 0x5f5   : > { %v4583_v55 = vpop.f32.mrb[23].mxu0  ;;  %4659 = vmatprep.subr.bf16.mxu1 %v2186_v47  ;;  %v2190_v41 = vpop.permute.xlu0 %2189 }
 0x5f6   : > { %1620 = vst.msk [vmem:[#allocation4 + $0x10] sm:$0xff] %vm1079_vm0, %v4581_v57  ;;  %v4584_v8 = vadd.f32 %v4583_v55, %v4582_v48 }
 0x5f7   : > { %v2172_v1 = vpop.permute.xlu1 %2171 }
 0x5f8   : > { %1621 = vst.msk [vmem:[#allocation4 + $0x18] sm:$0xff] %vm1079_vm0, %v4584_v8  ;;  %4660 = vmatpush3.bf16.msra.mxu1 %v2170_v37 }
 0x5f9   : > { %4661 = vmatprep.subr.bf16.mxu1 %v2188_v24  ;;  %v2194_v54 = vpop.permute.xlu0 %2193 }
 0x5fa   : > { %v4585_v36 = vpop.f32.mrb[24].mxu0  ;;  %4746 = vmatmul.mubr.msk.bf16.gmra.mrb[104].mxu0 %vm1079_vm0, %v7205_v7 }
 0x5fb   : > { %v4586_v46 = vpop.f32.mrb[25].mxu0  ;;  %4747 = vmatprep.mubr.msk.bf16.mxu0 %vm1079_vm0, %v7192_v25  ;;  %4826 = vmatpush3.bf16.xpose.msra.mxu0 %v3195_v12  ;;  %v2174_v20 = vpop.permute.xlu1 %2173 }
 0x5fc   : > { %v4587_v40 = vadd.f32 %v4586_v46, %v4585_v36  ;;  %v4588_v34 = vpop.f32.mrb[26].mxu0  ;;  %5052 = vmatprep.subr.msk.bf16.mxu0 %vm1079_vm0, %v7201_v15  ;;  %4662 = vmatpush3.bf16.msra.mxu1 %v2172_v1 }
 0x5fd   : > { %v4589_v17 = vpop.f32.mrb[27].mxu0  ;;  %4663 = vmatprep.subr.bf16.mxu1 %v2190_v41  ;;  %v2895_v2 = vpop.permute.xlu0 %2894 }
 0x5fe   : > { %1622 = vst.msk [vmem:[#allocation4 + $0x20] sm:$0xff] %vm1079_vm0, %v4587_v40  ;;  %v4590_v53 = vadd.f32 %v4589_v17, %v4588_v34 }
 0x5ff   : > { %v2192_v60 = vpop.permute.xlu1 %2191 }
 0x600   : > { %1623 = vst.msk [vmem:[#allocation4 + $0x28] sm:$0xff] %vm1079_vm0, %v4590_v53  ;;  %4664 = vmatpush3.bf16.msra.mxu1 %v2174_v20 }
 0x601   : > { %4665 = vmatprep.subr.bf16.mxu1 %v2192_v60 }
 0x602   : > { %v4591_v3 = vpop.f32.mrb[28].mxu0  ;;  %4748 = vmatmul.mubr.msk.bf16.gmra.mrb[108].mxu0 %vm1079_vm0, %v7192_v25 }
 0x603   : > { %v4592_v16 = vpop.f32.mrb[29].mxu0  ;;  %4828 = vmatpush3.bf16.xpose.msra.mxu0 %v3198_v50  ;;  %4829 = vmatprep.mubr.msk.bf16.mxu0 %vm1079_vm0, %v7221_v44  ;;  %v2176_v45 = vpop.permute.xlu1 %2175 }
 0x604   : > { %v4593_v18 = vadd.f32 %v4592_v16, %v4591_v3  ;;  %v4594_v42 = vpop.f32.mrb[30].mxu0  ;;  %4666 = vmatpush3.bf16.msra.mxu1 %v2176_v45 }
 0x605   : > { %v4595_v11 = vpop.f32.mrb[31].mxu0  ;;  %4667 = vmatprep.subr.bf16.mxu1 %v2194_v54 }
 0x606   : > { %1624 = vst.msk [vmem:[#allocation4 + $0x30] sm:$0xff] %vm1079_vm0, %v4593_v18  ;;  %v4596_v21 = vadd.f32 %v4595_v11, %v4594_v42 }
 0x607   : > { %v2178_v52 = vpop.permute.xlu1 %2177 }
 0x608   : > { %1625 = vst.msk [vmem:[#allocation4 + $0x38] sm:$0xff] %vm1079_vm0, %v4596_v21  ;;  %4668 = vmatpush3.bf16.msra.mxu1 %v2178_v52 }
 0x609   : > { %4749 = vmatprep.subr.bf16.mxu1 %v2895_v2 }
 0x60a   : > { %v4597_v26 = vpop.f32.mrb[32].mxu0  ;;  %4830 = vmatmul.mubr.msk.bf16.vlgmr.msra.gmra.mrb[112].mxu0 %vm1079_vm0, %v7221_v44 }
 0x60b   : > { %v4598_v25 = vpop.f32.mrb[33].mxu0  ;;  %4831 = vmatprep.mubr.msk.bf16.mxu0 %vm1079_vm0, %v7207_v0  ;;  %v7385_v11 = vpop.permute.xlu1 %2878 }
 0x60c   : > { %v4599_v33 = vadd.f32 %v4598_v25, %v4597_v26  ;;  %v4600_v4 = vpop.f32.mrb[34].mxu0  ;;  %8895 = vst [vmem:[#allocation28_spill] sm:$0xff] %v7385_v11 }
 0x60d   : > { %v4601_v15 = vpop.f32.mrb[35].mxu0 }
 0x60e   : > { %1626 = vst.msk [vmem:[#allocation4 + $0x40] sm:$0xff] %vm1079_vm0, %v4599_v33  ;;  %v4602_v7 = vadd.f32 %v4601_v15, %v4600_v4 }
 0x60f   : > { %v7399_v15 = vpop.permute.xlu1 %2880 }
 0x610   : > { %1627 = vst.msk [vmem:[#allocation4 + $0x48] sm:$0xff] %vm1079_vm0, %v4602_v7  ;;  %8896 = vst [vmem:[#allocation47_spill] sm:$0xff] %v7399_v15 }
 0x612   : > { %v4603_v14 = vpop.f32.mrb[36].mxu0  ;;  %4832 = vmatmul.mubr.msk.bf16.gmra.mrb[116].mxu0 %vm1079_vm0, %v7207_v0 }
 0x613   : > { %v4604_v49 = vpop.f32.mrb[37].mxu0  ;;  %4833 = vmatprep.mubr.msk.bf16.mxu0 %vm1079_vm0, %v7229_v28 }
 0x614   : > { %v4605_v56 = vadd.f32 %v4604_v49, %v4603_v14  ;;  %v4606_v58 = vpop.f32.mrb[38].mxu0 }
 0x615   : > { %v4607_v44 = vpop.f32.mrb[39].mxu0 }
 0x616   : > { %1628 = vst.msk [vmem:[#allocation4 + $0x50] sm:$0xff] %vm1079_vm0, %v4605_v56  ;;  %v4608_v32 = vadd.f32 %v4607_v44, %v4606_v58  ;;  %v7409_v58 = vpop.permute.xlu1 %2898 }
 0x617   : > { %8897 = vst [vmem:[#allocation29_spill] sm:$0xff] %v7409_v58 }
 0x618   : > { %1629 = vst.msk [vmem:[#allocation4 + $0x58] sm:$0xff] %vm1079_vm0, %v4608_v32 }
 0x61a   : > { %v4609_v43 = vpop.f32.mrb[40].mxu0  ;;  %4834 = vmatmul.mubr.msk.bf16.gmra.mrb[120].mxu0 %vm1079_vm0, %v7229_v28 }
 0x61b   : > { %v4610_v62 = vpop.f32.mrb[41].mxu0  ;;  %4835 = vmatprep.mubr.msk.bf16.mxu0 %vm1079_vm0, %v7213_v35 }
 0x61c   : > { %v4611_v0 = vadd.f32 %v4610_v62, %v4609_v43  ;;  %v4612_v59 = vpop.f32.mrb[42].mxu0  ;;  %v7417_v62 = vpop.permute.xlu1 %2882 }
 0x61d   : > { %v4613_v6 = vpop.f32.mrb[43].mxu0  ;;  %8898 = vst [vmem:[#allocation50_spill] sm:$0xff] %v7417_v62 }
 0x61e   : > { %1630 = vst.msk [vmem:[#allocation4 + $0x60] sm:$0xff] %vm1079_vm0, %v4611_v0  ;;  %v4614_v61 = vadd.f32 %v4613_v6, %v4612_v59 }
 0x620   : > { %1631 = vst.msk [vmem:[#allocation4 + $0x68] sm:$0xff] %vm1079_vm0, %v4614_v61 }
 0x622   : > { %4836 = vmatmul.mubr.msk.bf16.gmra.mrb[124].mxu0 %vm1079_vm0, %v7213_v35 }
 0x623   : > { %4837 = vmatprep.mubr.msk.bf16.mxu0 %vm1079_vm0, %v7232_v22 }
 0x62a   : > { %4838 = vmatmul.mubr.msk.bf16.gmra.mrb[128].mxu0 %vm1079_vm0, %v7232_v22 }
 0x62b   : > { %4839 = vmatprep.mubr.msk.bf16.mxu0 %vm1079_vm0, %v7218_v39 }
 0x632   : > { %4840 = vmatmul.mubr.msk.bf16.gmra.mrb[132].mxu0 %vm1079_vm0, %v7218_v39 }
 0x633   : > { %4841 = vmatprep.mubr.msk.bf16.mxu0 %vm1079_vm0, %v7238_v19 }
 0x63a   : > { %4842 = vmatmul.mubr.msk.bf16.gmra.mrb[136].mxu0 %vm1079_vm0, %v7238_v19 }
 0x63b   : > { %4843 = vmatprep.mubr.msk.bf16.mxu0 %vm1079_vm0, %v7226_v38 }
 0x642   : > { %4844 = vmatmul.mubr.msk.bf16.gmra.mrb[140].mxu0 %vm1079_vm0, %v7226_v38 }
 0x655   : > { %v4615_v35 = vpop.f32.mrb[44].mxu0 }
 0x656   : > { %v4616_v28 = vpop.f32.mrb[45].mxu0 }
 0x657   : > { %v4617_v22 = vadd.f32 %v4616_v28, %v4615_v35  ;;  %v4618_v27 = vpop.f32.mrb[46].mxu0  ;;  %v7429_v35 = vpop.permute.xlu1 %2884 }
 0x658   : > { %v4619_v30 = vpop.f32.mrb[47].mxu0  ;;  %8899 = vst [vmem:[#allocation26_spill] sm:$0xff] %v7429_v35 }
 0x659   : > { %1632 = vst.msk [vmem:[#allocation4 + $0x70] sm:$0xff] %vm1079_vm0, %v4617_v22  ;;  %v4620_v39 = vadd.f32 %v4619_v30, %v4618_v27 }
 0x65b   : > { %1633 = vst.msk [vmem:[#allocation4 + $0x78] sm:$0xff] %vm1079_vm0, %v4620_v39 }
 0x65d   : > { %v7311_v10 = vpop.f32.mrb[48].mxu0 }
 0x65e   : > { %v7313_v23 = vpop.f32.mrb[49].mxu0 }
 0x65f   : > { %v1891_v19 = vmax.f32 %v7311_v10, %v7313_v23  ;;  %v7317_v13 = vpop.f32.mrb[50].mxu0 }
 0x660   : > { %v7319_v38 = vpop.f32.mrb[51].mxu0 }
 0x661   : > { %v1894_v9 = vmax.f32 %v7317_v13, %v7319_v38  ;;  %1892 = vmax.xlane.f32.xlu0 %v1891_v19 }
 0x663   : > { %1895 = vmax.xlane.f32.xlu1 %v1894_v9  ;;  %v7443_v9 = vpop.permute.xlu1 %2902 }
 0x664   : > { %8900 = vst [vmem:[#allocation27_spill] sm:$0xff] %v7443_v9 }
 0x665   : > { %v7323_v31 = vpop.f32.mrb[52].mxu0 }
 0x666   : > { %v7325_v37 = vpop.f32.mrb[53].mxu0 }
 0x667   : > { %v1897_v29 = vmax.f32 %v7323_v31, %v7325_v37  ;;  %v7329_v63 = vpop.f32.mrb[54].mxu0 }
 0x668   : > { %v7331_v47 = vpop.f32.mrb[55].mxu0 }
 0x669   : > { %v1900_v5 = vmax.f32 %v7329_v63, %v7331_v47  ;;  %1898 = vmax.xlane.f32.xlu0 %v1897_v29 }
 0x66d   : > { %1901 = vmax.xlane.f32.xlu0 %v1900_v5  ;;  %v7335_v24 = vpop.f32.mrb[56].mxu0 }
 0x66e   : > { %v7337_v57 = vpop.f32.mrb[57].mxu0 }
 0x66f   : > { %v1903_v48 = vmax.f32 %v7335_v24, %v7337_v57  ;;  %v7341_v55 = vpop.f32.mrb[58].mxu0 }
 0x670   : > { %v7343_v8 = vpop.f32.mrb[59].mxu0 }
 0x671   : > { %v1906_v1 = vmax.f32 %v7341_v55, %v7343_v8  ;;  %1904 = vmax.xlane.f32.xlu0 %v1903_v48 }
 0x674   : > { %3603 = vrot.lane.b32.xlu1 %v7151_v51, %s5965_s8 }
 0x675   : > { %v7349_v12 = vpop.f32.mrb[60].mxu0 }
 0x676   : > { %v7351_v36 = vpop.f32.mrb[61].mxu0 }
 0x677   : > { %v1909_v41 = vmax.f32 %v7349_v12, %v7351_v36  ;;  %v7355_v46 = vpop.f32.mrb[62].mxu0 }
 0x678   : > { %v7357_v20 = vpop.f32.mrb[63].mxu0 }
 0x679   : > { %v1912_v40 = vmax.f32 %v7355_v46, %v7357_v20  ;;  %1910 = vmax.xlane.f32.xlu0 %v1909_v41  ;;  %v7453_v41 = vpop.permute.xlu1 %2886 }
 0x67a   : > { %8901 = vst [vmem:[#allocation48_spill] sm:$0xff] %v7453_v41 }
 0x67d   : > { %v7361_v34 = vpop.f32.mrb[64].mxu0 }
 0x67e   : > { %v7363_v17 = vpop.f32.mrb[65].mxu0 }
 0x67f   : > { %v1915_v51 = vmax.f32 %v7361_v34, %v7363_v17  ;;  %v7367_v53 = vpop.f32.mrb[66].mxu0 }
 0x680   : > { %v7369_v60 = vpop.f32.mrb[67].mxu0 }
 0x681   : > { %v1918_v50 = vmax.f32 %v7367_v53, %v7369_v60  ;;  %1916 = vmax.xlane.f32.xlu0 %v1915_v51 }
 0x685   : > { %v7373_v3 = vpop.f32.mrb[68].mxu0 }
 0x686   : > { %v7375_v54 = vpop.f32.mrb[69].mxu0 }
 0x687   : > { %v1921_v16 = vmax.f32 %v7373_v3, %v7375_v54  ;;  %v7379_v45 = vpop.f32.mrb[70].mxu0 }
 0x688   : > { %v7381_v18 = vpop.f32.mrb[71].mxu0 }
 0x689   : > { %v1924_v42 = vmax.f32 %v7379_v45, %v7381_v18  ;;  %1922 = vmax.xlane.f32.xlu0 %v1921_v16  ;;  %v7461_v16 = vpop.permute.xlu1 %2888 }
 0x68a   : > { %8904 = vst [vmem:[#allocation49_spill] sm:$0xff] %v7461_v16 }
 0x68d   : > { %v7387_v21 = vpop.f32.mrb[72].mxu0 }
 0x68e   : > { %v7389_v52 = vpop.f32.mrb[73].mxu0 }
 0x68f   : > { %v1927_v26 = vmax.f32 %v7387_v21, %v7389_v52  ;;  %v7393_v25 = vpop.f32.mrb[74].mxu0 }
 0x690   : > { %v7395_v33 = vpop.f32.mrb[75].mxu0 }
 0x691   : > { %v1930_v4 = vmax.f32 %v7393_v25, %v7395_v33  ;;  %1928 = vmax.xlane.f32.xlu0 %v1927_v26 }
 0x695   : > { %v7401_v7 = vpop.f32.mrb[76].mxu0 }
 0x696   : > { %v7403_v14 = vpop.f32.mrb[77].mxu0 }
 0x697   : > { %v1933_v49 = vmax.f32 %v7401_v7, %v7403_v14  ;;  %v7407_v56 = vpop.f32.mrb[78].mxu0 }
 0x698   : > { %1907 = vmax.xlane.f32.xlu1 %v1906_v1  ;;  %v7411_v44 = vpop.f32.mrb[79].mxu0 }
 0x699   : > { %v1936_v32 = vmax.f32 %v7407_v56, %v7411_v44  ;;  %1934 = vmax.xlane.f32.xlu0 %v1933_v49 }
 0x69c   : > { %1913 = vmax.xlane.f32.xlu1 %v1912_v40 }
 0x69d   : > { %v7415_v43 = vpop.f32.mrb[80].mxu0 }
 0x69e   : > { %v7419_v0 = vpop.f32.mrb[81].mxu0 }
 0x69f   : > { %v2622_v59 = vmax.f32 %v7415_v43, %v7419_v0  ;;  %v7423_v6 = vpop.f32.mrb[82].mxu0 }
 0x6a0   : > { %v7425_v61 = vpop.f32.mrb[83].mxu0  ;;  %1919 = vmax.xlane.f32.xlu1 %v1918_v50 }
 0x6a1   : > { %v2625_v2 = vmax.f32 %v7423_v6, %v7425_v61  ;;  %2623 = vmax.xlane.f32.xlu0 %v2622_v59  ;;  %v7473_v59 = vpop.permute.xlu0 %2896 }
 0x6a2   : > { %8908 = vst [vmem:[#allocation32_spill] sm:$0xff] %v7473_v59 }
 0x6a4   : > { %1925 = vmax.xlane.f32.xlu1 %v1924_v42 }
 0x6a5   : > { %v7431_v28 = vpop.f32.mrb[84].mxu0  ;;  %v7485_v41 = vpop.permute.xlu0 %2900 }
 0x6a6   : > { %v7433_v22 = vpop.f32.mrb[85].mxu0  ;;  %8912 = vst [vmem:[#allocation31_spill] sm:$0xff] %v7485_v41 }
 0x6a7   : > { %v2628_v27 = vmax.f32 %v7431_v28, %v7433_v22  ;;  %v7437_v30 = vpop.f32.mrb[86].mxu0 }
 0x6a8   : > { %v7439_v39 = vpop.f32.mrb[87].mxu0  ;;  %1931 = vmax.xlane.f32.xlu1 %v1930_v4 }
 0x6a9   : > { %v2631_v19 = vmax.f32 %v7437_v30, %v7439_v39  ;;  %2629 = vmax.xlane.f32.xlu0 %v2628_v27 }
 0x6ac   : > { %1937 = vmax.xlane.f32.xlu1 %v1936_v32 }
 0x6ad   : > { %v7445_v29 = vpop.f32.mrb[88].mxu0 }
 0x6ae   : > { %v7447_v5 = vpop.f32.mrb[89].mxu0 }
 0x6af   : > { %v2634_v48 = vmax.f32 %v7445_v29, %v7447_v5  ;;  %v7451_v1 = vpop.f32.mrb[90].mxu0 }
 0x6b0   : > { %v7455_v40 = vpop.f32.mrb[91].mxu0  ;;  %2626 = vmax.xlane.f32.xlu1 %v2625_v2  ;;  %v7475_v2 = vpop.permute.xlu1 %2906 }
 0x6b1   : > { %8902 = vst [vmem:[#allocation52_spill] sm:$0xff] %v7455_v40  ;;  %v2637_v51 = vmax.f32 %v7451_v1, %v7455_v40  ;;  %2635 = vmax.xlane.f32.xlu0 %v2634_v48  ;;  %8909 = vst [vmem:[#allocation34_spill] sm:$0xff] %v7475_v2  ;;  %v7495_v2 = vpop.permute.xlu0 %2904 }
 0x6b2   : > { %8915 = vst [vmem:[#allocation39_spill] sm:$0xff] %v7495_v2 }
 0x6b4   : > { %2632 = vmax.xlane.f32.xlu1 %v2631_v19 }
 0x6b5   : > { %v7459_v50 = vpop.f32.mrb[92].mxu0 }
 0x6b6   : > { %8903 = vst [vmem:[#allocation30_spill] sm:$0xff] %v7459_v50  ;;  %v7463_v42 = vpop.f32.mrb[93].mxu0 }
 0x6b7   : > { %8905 = vst [vmem:[#allocation51_spill] sm:$0xff] %v7463_v42  ;;  %v2640_v26 = vmax.f32 %v7459_v50, %v7463_v42  ;;  %v7467_v4 = vpop.f32.mrb[94].mxu0 }
 0x6b8   : > { %8906 = vst [vmem:[#allocation54_spill] sm:$0xff] %v7467_v4  ;;  %v7469_v49 = vpop.f32.mrb[95].mxu0  ;;  %2638 = vmax.xlane.f32.xlu1 %v2637_v51 }
 0x6b9   : > { %8907 = vst [vmem:[#allocation53_spill] sm:$0xff] %v7469_v49  ;;  %v2643_v32 = vmax.f32 %v7467_v4, %v7469_v49 }
 0x6bb   : > { %2644 = vmax.xlane.f32.xlu0 %v2643_v32  ;;  %v7491_v32 = vpop.permute.xlu1 %2890 }
 0x6bc   : > { %2641 = vmax.xlane.f32.xlu1 %v2640_v26  ;;  %8913 = vst [vmem:[#allocation38_spill] sm:$0xff] %v7491_v32 }
 0x6bd   : > { %v7477_v27 = vpop.f32.mrb[96].mxu0 }
 0x6be   : > { %8910 = vst [vmem:[#allocation35_spill] sm:$0xff] %v7477_v27  ;;  %v7479_v19 = vpop.f32.mrb[97].mxu0 }
 0x6bf   : > { %8911 = vst [vmem:[#allocation36_spill] sm:$0xff] %v7479_v19  ;;  %v2646_v48 = vmax.f32 %v7477_v27, %v7479_v19  ;;  %v7483_v16 = vpop.f32.mrb[98].mxu0  ;;  %v7503_v41 = vpop.permute.xlu1 %2892 }
 0x6c0   : > { %v7487_v51 = vpop.f32.mrb[99].mxu0  ;;  %8917 = vst [vmem:[#allocation40_spill] sm:$0xff] %v7503_v41 }
 0x6c1   : > { %v2649_v9 = vmax.f32 %v7483_v16, %v7487_v51  ;;  %2647 = vmax.xlane.f32.xlu0 %v2646_v48 }
 0x6c3   : > { %2650 = vmax.xlane.f32.xlu1 %v2649_v9  ;;  %v7509_v9 = vpop.permute.xlu0 %2908  ;;  %v7513_v2 = vpop.permute.xlu1 %3593 }
 0x6c4   : > { %8918 = vst [vmem:[#allocation41_spill] sm:$0xff] %v7509_v9  ;;  %8920 = vst [vmem:[#allocation45_spill] sm:$0xff] %v7513_v2 }
 0x6c5   : > { %v7493_v26 = vpop.f32.mrb[100].mxu0 }
 0x6c6   : > { %8914 = vst [vmem:[#allocation33_spill] sm:$0xff] %v7493_v26  ;;  %v7497_v35 = vpop.f32.mrb[101].mxu0 }
 0x6c7   : > { %8916 = vst [vmem:[#allocation37_spill] sm:$0xff] %v7497_v35  ;;  %v2652_v62 = vmax.f32 %v7493_v26, %v7497_v35  ;;  %v7501_v58 = vpop.f32.mrb[102].mxu0 }
 0x6c8   : > { %v7505_v15 = vpop.f32.mrb[103].mxu0 }
 0x6c9   : > { %v2655_v48 = vmax.f32 %v7501_v58, %v7505_v15  ;;  %2653 = vmax.xlane.f32.xlu0 %v2652_v62  ;;  %v7525_v62 = vpop.permute.xlu0 %3609 }
 0x6ca   : > { %8922 = vst [vmem:[#allocation44_spill] sm:$0xff] %v7525_v62 }
 0x6cb   : > { %2656 = vmax.xlane.f32.xlu1 %v2655_v48  ;;  %v7527_v48 = vpop.permute.xlu1 %3595 }
 0x6cc   : > { %8923 = vst [vmem:[#allocation46_spill] sm:$0xff] %v7527_v48 }
 0x6cd   : > { %v7511_v32 = vpop.f32.mrb[104].mxu0  ;;  %v7537_v19 = vpop.permute.xlu0 %3611 }
 0x6ce   : > { %8919 = vst [vmem:[#allocation42_spill] sm:$0xff] %v7511_v32  ;;  %v7515_v59 = vpop.f32.mrb[105].mxu0  ;;  %8926 = vst [vmem:[#allocation57_spill] sm:$0xff] %v7537_v19 }
 0x6cf   : > { %8921 = vst [vmem:[#allocation43_spill] sm:$0xff] %v7515_v59  ;;  %v2658_v11 = vmax.f32 %v7511_v32, %v7515_v59  ;;  %v7519_v35 = vpop.f32.mrb[106].mxu0 }
 0x6d0   : > { %v7521_v41 = vpop.f32.mrb[107].mxu0 }
 0x6d1   : > { %v2661_v26 = vmax.f32 %v7519_v35, %v7521_v41  ;;  %2659 = vmax.xlane.f32.xlu0 %v2658_v11  ;;  %v7547_v62 = vpop.permute.xlu0 %3615 }
 0x6d2   : > { %8929 = vst [vmem:[#allocation60_spill] sm:$0xff] %v7547_v62 }
 0x6d3   : > { %2662 = vmax.xlane.f32.xlu1 %v2661_v26  ;;  %v7543_v26 = vpop.permute.xlu1 %3613 }
 0x6d4   : > { %8927 = vst [vmem:[#allocation58_spill] sm:$0xff] %v7543_v26 }
 0x6d5   : > { %v7529_v9 = vpop.f32.mrb[108].mxu0 }
 0x6d6   : > { %8924 = vst [vmem:[#allocation55_spill] sm:$0xff] %v7529_v9  ;;  %v7531_v2 = vpop.f32.mrb[109].mxu0 }
 0x6d7   : > { %8925 = vst [vmem:[#allocation56_spill] sm:$0xff] %v7531_v2  ;;  %v2664_v59 = vmax.f32 %v7529_v9, %v7531_v2  ;;  %v7535_v32 = vpop.f32.mrb[110].mxu0  ;;  %v7555_v19 = vpop.permute.xlu1 %3597 }
 0x6d8   : > { %v7539_v27 = vpop.f32.mrb[111].mxu0  ;;  %8932 = vst [vmem:[#allocation63_spill] sm:$0xff] %v7555_v19 }
 0x6d9   : > { %v2667_v11 = vmax.f32 %v7535_v32, %v7539_v27  ;;  %2665 = vmax.xlane.f32.xlu1 %v2664_v59 }
 0x6db   : > { %2668 = vmax.xlane.f32.xlu0 %v2667_v11  ;;  %v7561_v11 = vpop.permute.xlu0 %3617  ;;  %v7565_v62 = vpop.permute.xlu1 %3599 }
 0x6dc   : > { %8934 = vst [vmem:[#allocation65_spill] sm:$0xff] %v7561_v11  ;;  %8936 = vst [vmem:[#allocation67_spill] sm:$0xff] %v7565_v62 }
 0x6dd   : > { %v7545_v48 = vpop.f32.mrb[112].mxu0 }
 0x6de   : > { %8928 = vst [vmem:[#allocation59_spill] sm:$0xff] %v7545_v48  ;;  %v7549_v49 = vpop.f32.mrb[113].mxu0 }
 0x6df   : > { %8930 = vst [vmem:[#allocation61_spill] sm:$0xff] %v7549_v49  ;;  %v3337_v2 = vmax.f32 %v7545_v48, %v7549_v49  ;;  %v7553_v9 = vpop.f32.mrb[114].mxu0 }
 0x6e0   : > { %8931 = vst [vmem:[#allocation62_spill] sm:$0xff] %v7553_v9  ;;  %v7557_v42 = vpop.f32.mrb[115].mxu0 }
 0x6e1   : > { %8933 = vst [vmem:[#allocation64_spill] sm:$0xff] %v7557_v42  ;;  %v3340_v59 = vmax.f32 %v7553_v9, %v7557_v42  ;;  %3338 = vmax.xlane.f32.xlu0 %v3337_v2  ;;  %v7577_v2 = vpop.permute.xlu0 %3619 }
 0x6e2   : > { %8940 = vst [vmem:[#allocation71_spill] sm:$0xff] %v7577_v2 }
 0x6e3   : > { %3341 = vmax.xlane.f32.xlu1 %v3340_v59  ;;  %v7579_v59 = vpop.permute.xlu1 %3601 }
 0x6e4   : > { %8941 = vst [vmem:[#allocation72_spill] sm:$0xff] %v7579_v59 }
 0x6e5   : > { %v7563_v26 = vpop.f32.mrb[116].mxu0 }
 0x6e6   : > { %8935 = vst [vmem:[#allocation66_spill] sm:$0xff] %v7563_v26  ;;  %v7567_v50 = vpop.f32.mrb[117].mxu0 }
 0x6e7   : > { %8937 = vst [vmem:[#allocation68_spill] sm:$0xff] %v7567_v50  ;;  %v3343_v4 = vmax.f32 %v7563_v26, %v7567_v50  ;;  %v7571_v40 = vpop.f32.mrb[118].mxu0 }
 0x6e8   : > { %8938 = vst [vmem:[#allocation69_spill] sm:$0xff] %v7571_v40  ;;  %v7573_v19 = vpop.f32.mrb[119].mxu0 }
 0x6e9   : > { %8939 = vst [vmem:[#allocation70_spill] sm:$0xff] %v7573_v19  ;;  %v3346_v42 = vmax.f32 %v7571_v40, %v7573_v19  ;;  %3344 = vmax.xlane.f32.xlu0 %v3343_v4 }
 0x6eb   : > { %3347 = vmax.xlane.f32.xlu1 %v3346_v42 }
 0x6ed   : > { %v7581_v11 = vpop.f32.mrb[120].mxu0 }
 0x6ee   : > { %8942 = vst [vmem:[#allocation73_spill] sm:$0xff] %v7581_v11  ;;  %v1893_v62 = vpop.xlane.xlu0 %1892  ;;  %v7583_v9 = vpop.f32.mrb[121].mxu0 }
 0x6ef   : > { %8943 = vst [vmem:[#allocation74_spill] sm:$0xff] %v7583_v9  ;;  %v1939_v50 = vsub.f32 %v7311_v10, %v1893_v62  ;;  %v1940_v26 = vsub.f32 %v7313_v23, %v1893_v62  ;;  %v3349_v49 = vmax.f32 %v7581_v11, %v7583_v9  ;;  %v7589_v48 = vpop.f32.mrb[122].mxu0 }
 0x6f0   : > { %v7591_v4 = vpop.f32.mrb[123].mxu0  ;;  %v1896_v2 = vpop.xlane.xlu1 %1895 }
 0x6f1   : > { %8944 = vst [vmem:[#allocation75_spill] sm:$0xff] %v7591_v4  ;;  %v1971_v42 = vmul.f32 1.442695, %v1939_v50  ;;  %v1973_v19 = vmul.f32 1.442695, %v1940_v26  ;;  %v3352_v59 = vmax.f32 %v7589_v48, %v7591_v4  ;;  %v1941_v40 = vsub.f32 %v7317_v13, %v1896_v2  ;;  %3350 = vmax.xlane.f32.xlu0 %v3349_v49 }
 0x6f2   : > { %v1942_v10 = vsub.f32 %v7319_v38, %v1896_v2 }
 0x6f3   : > { %5329 = vpow2.f32 %v1971_v42  ;;  %v1975_v23 = vmul.f32 1.442695, %v1941_v40  ;;  %3353 = vmax.xlane.f32.xlu1 %v3352_v59 }
 0x6f4   : > { %5331 = vpow2.f32 %v1973_v19  ;;  %v1977_v62 = vmul.f32 1.442695, %v1942_v10 }
 0x6f5   : > { %5333 = vpow2.f32 %v1975_v23  ;;  %v7597_v9 = vpop.f32.mrb[124].mxu0 }
 0x6f6   : > { %8945 = vst [vmem:[#allocation76_spill] sm:$0xff] %v7597_v9  ;;  %5335 = vpow2.f32 %v1977_v62  ;;  %v1899_v11 = vpop.xlane.xlu0 %1898  ;;  %v7599_v50 = vpop.f32.mrb[125].mxu0 }
 0x6f7   : > { %8946 = vst [vmem:[#allocation77_spill] sm:$0xff] %v7599_v50  ;;  %v1943_v26 = vsub.f32 %v7323_v31, %v1899_v11  ;;  %v1944_v4 = vsub.f32 %v7325_v37, %v1899_v11  ;;  %v3355_v13 = vmax.f32 %v7597_v9, %v7599_v50  ;;  %v7605_v38 = vpop.f32.mrb[126].mxu0 }
 0x6f8   : > { %v7607_v40 = vpop.f32.mrb[127].mxu0 }
 0x6f9   : > { %v1979_v49 = vmul.f32 1.442695, %v1943_v26  ;;  %v1981_v19 = vmul.f32 1.442695, %v1944_v4  ;;  %v3358_v2 = vmax.f32 %v7605_v38, %v7607_v40  ;;  %3356 = vmax.xlane.f32.xlu1 %v3355_v13 }
 0x6fa   : > { %v1902_v59 = vpop.xlane.xlu0 %1901 }
 0x6fb   : > { %5337 = vpow2.f32 %v1979_v49  ;;  %v1945_v42 = vsub.f32 %v7329_v63, %v1902_v59  ;;  %v1946_v31 = vsub.f32 %v7331_v47, %v1902_v59  ;;  %3359 = vmax.xlane.f32.xlu0 %v3358_v2 }
 0x6fc   : > { %5339 = vpow2.f32 %v1981_v19 }
 0x6fd   : > { %v7613_v37 = vpop.eup %5329  ;;  %v7615_v11 = vpop.f32.mrb[128].mxu0  ;;  %v1983_v23 = vmul.f32 1.442695, %v1945_v42  ;;  %v1985_v13 = vmul.f32 1.442695, %v1946_v31 }
 0x6fe   : > { %8947 = vst [vmem:[#allocation78_spill] sm:$0xff] %v7615_v11  ;;  %v7617_v10 = vpop.eup %5331  ;;  %v1905_v4 = vpop.xlane.xlu0 %1904 }
 0x6ff   : > { %v7619_v62 = vpop.f32.mrb[129].mxu0  ;;  %v7621_v26 = vpop.eup %5333  ;;  %v1947_v49 = vsub.f32 %v7335_v24, %v1905_v4  ;;  %v1948_v63 = vsub.f32 %v7337_v57, %v1905_v4  ;;  %v2035_v59 = vadd.f32 %v7617_v10, %v7613_v37  ;;  %5341 = vpow2.f32 %v1983_v23 }
 0x700   : > { %8948 = vst [vmem:[#allocation79_spill] sm:$0xff] %v7619_v62  ;;  %v3361_v47 = vmax.f32 %v7615_v11, %v7619_v62  ;;  %v7627_v19 = vpop.f32.mrb[130].mxu0  ;;  %v7629_v2 = vpop.eup %5335  ;;  %5343 = vpow2.f32 %v1985_v13 }
 0x701   : > { %8949 = vst [vmem:[#allocation80_spill] sm:$0xff] %v7627_v19  ;;  %8950 = vst [vmem:[#allocation81_spill] sm:$0xff] %v7629_v2  ;;  %v7633_v42 = vpop.f32.mrb[131].mxu0  ;;  %v2038_v24 = vadd.f32 %v7629_v2, %v7621_v26  ;;  %v1987_v57 = vmul.f32 1.442695, %v1947_v49  ;;  %2036 = vadd.xlane.f32.xlu0 %v2035_v59 }
 0x702   : > { %8951 = vst [vmem:[#allocation82_spill] sm:$0xff] %v7633_v42  ;;  %v3364_v50 = vmax.f32 %v7627_v19, %v7633_v42  ;;  %v1989_v31 = vmul.f32 1.442695, %v1948_v63 }
 0x703   : > { %2039 = vadd.xlane.f32.xlu1 %v2038_v24  ;;  %5345 = vpow2.f32 %v1987_v57 }
 0x704   : > { %5347 = vpow2.f32 %v1989_v31 }
 0x705   : > { %v7639_v4 = vpop.eup %5337  ;;  %v7641_v62 = vpop.f32.mrb[132].mxu0  ;;  %3362 = vmax.xlane.f32.xlu0 %v3361_v47 }
 0x706   : > { %8952 = vst [vmem:[#allocation83_spill] sm:$0xff] %v7639_v4  ;;  %8953 = vst [vmem:[#allocation84_spill] sm:$0xff] %v7641_v62  ;;  %v7643_v11 = vpop.eup %5339  ;;  %v7645_v9 = vpop.f32.mrb[133].mxu0 }
 0x707   : > { %8954 = vst [vmem:[#allocation85_spill] sm:$0xff] %v7643_v11  ;;  %8955 = vst [vmem:[#allocation86_spill] sm:$0xff] %v7645_v9  ;;  %v3367_v42 = vmax.f32 %v7641_v62, %v7645_v9  ;;  %3365 = vmax.xlane.f32.xlu1 %v3364_v50  ;;  %v7649_v23 = vpop.f32.mrb[134].mxu0  ;;  %v2041_v13 = vadd.f32 %v7643_v11, %v7639_v4 }
 0x708   : > { %8956 = vst [vmem:[#allocation87_spill] sm:$0xff] %v7649_v23  ;;  %v7653_v49 = vpop.f32.mrb[135].mxu0 }
 0x709   : > { %8957 = vst [vmem:[#allocation88_spill] sm:$0xff] %v7653_v49  ;;  %v3370_v63 = vmax.f32 %v7649_v23, %v7653_v49  ;;  %2042 = vadd.xlane.f32.xlu0 %v2041_v13  ;;  %v7657_v47 = vpop.eup %5341 }
 0x70a   : > { %8958 = vst [vmem:[#allocation89_spill] sm:$0xff] %v7657_v47  ;;  %v7659_v59 = vpop.eup %5343 }
 0x70b   : > { %3371 = vmax.xlane.f32.xlu1 %v3370_v63  ;;  %8959 = vst [vmem:[#allocation90_spill] sm:$0xff] %v7659_v59  ;;  %v2044_v13 = vadd.f32 %v7659_v59, %v7657_v47 }
 0x70d   : > { %v7661_v24 = vpop.f32.mrb[136].mxu0  ;;  %3368 = vmax.xlane.f32.xlu0 %v3367_v42  ;;  %v7669_v9 = vpop.eup %5345 }
 0x70e   : > { %8960 = vst [vmem:[#allocation91_spill] sm:$0xff] %v7661_v24  ;;  %v7663_v50 = vpop.f32.mrb[137].mxu0  ;;  %8963 = vst [vmem:[#allocation94_spill] sm:$0xff] %v7669_v9  ;;  %v7675_v49 = vpop.eup %5347 }
 0x70f   : > { %8961 = vst [vmem:[#allocation92_spill] sm:$0xff] %v7663_v50  ;;  %v3373_v57 = vmax.f32 %v7661_v24, %v7663_v50  ;;  %v7667_v31 = vpop.f32.mrb[138].mxu0  ;;  %8965 = vst [vmem:[#allocation96_spill] sm:$0xff] %v7675_v49  ;;  %v2047_v42 = vadd.f32 %v7675_v49, %v7669_v9 }
 0x710   : > { %8962 = vst [vmem:[#allocation93_spill] sm:$0xff] %v7667_v31  ;;  %v7673_v63 = vpop.f32.mrb[139].mxu0 }
 0x711   : > { %8964 = vst [vmem:[#allocation95_spill] sm:$0xff] %v7673_v63  ;;  %v3376_v23 = vmax.f32 %v7667_v31, %v7673_v63  ;;  %2045 = vadd.xlane.f32.xlu0 %v2044_v13  ;;  %v1911_v13 = vpop.xlane.xlu0 %1910 }
 0x712   : > { %v1951_v9 = vsub.f32 %v7349_v12, %v1911_v13 }
 0x713   : > { %3377 = vmax.xlane.f32.xlu1 %v3376_v23  ;;  %v7693_v23 = vpop.permute.xlu1 %3603 }
 0x714   : > { %8968 = vst [vmem:[#allocation99_spill] sm:$0xff] %v7693_v23 }
 0x715   : > { %v7681_v50 = vpop.f32.mrb[140].mxu0  ;;  %2048 = vadd.xlane.f32.xlu0 %v2047_v42  ;;  %v1952_v42 = vsub.f32 %v7351_v36, %v1911_v13  ;;  %v1917_v36 = vpop.xlane.xlu0 %1916 }
 0x716   : > { %8966 = vst [vmem:[#allocation97_spill] sm:$0xff] %v7681_v50  ;;  %v7683_v24 = vpop.f32.mrb[141].mxu0 }
 0x717   : > { %8967 = vst [vmem:[#allocation98_spill] sm:$0xff] %v7683_v24  ;;  %v3379_v62 = vmax.f32 %v7681_v50, %v7683_v24  ;;  %v7687_v19 = vpop.f32.mrb[142].mxu0  ;;  %v1995_v50 = vmul.f32 1.442695, %v1951_v9  ;;  %v1997_v11 = vmul.f32 1.442695, %v1952_v42  ;;  %v1955_v9 = vsub.f32 %v7361_v34, %v1917_v36 }
 0x718   : > { %v7689_v47 = vpop.f32.mrb[143].mxu0 }
 0x719   : > { %3380 = vmax.xlane.f32.xlu1 %v3379_v62  ;;  %3374 = vmax.xlane.f32.xlu0 %v3373_v57 }
 0x725   : > { %v1908_v49 = vpop.xlane.xlu1 %1907 }
 0x726   : > { %v1949_v31 = vsub.f32 %v7341_v55, %v1908_v49  ;;  %v1950_v24 = vsub.f32 %v7343_v8, %v1908_v49 }
 0x728   : > { %v1991_v4 = vmul.f32 1.442695, %v1949_v31  ;;  %v1993_v59 = vmul.f32 1.442695, %v1950_v24 }
 0x729   : > { %v1914_v2 = vpop.xlane.xlu1 %1913 }
 0x72a   : > { %5349 = vpow2.f32 %v1991_v4  ;;  %v1953_v62 = vsub.f32 %v7355_v46, %v1914_v2  ;;  %v1954_v57 = vsub.f32 %v7357_v20, %v1914_v2  ;;  %v1956_v46 = vsub.f32 %v7363_v17, %v1917_v36 }
 0x72b   : > { %5351 = vpow2.f32 %v1993_v59 }
 0x72c   : > { %5353 = vpow2.f32 %v1995_v50  ;;  %v1999_v12 = vmul.f32 1.442695, %v1953_v62  ;;  %v2001_v63 = vmul.f32 1.442695, %v1954_v57  ;;  %v2005_v34 = vmul.f32 1.442695, %v1956_v46 }
 0x72d   : > { %5355 = vpow2.f32 %v1997_v11  ;;  %v1920_v13 = vpop.xlane.xlu1 %1919 }
 0x72e   : > { %v1957_v55 = vsub.f32 %v7367_v53, %v1920_v13  ;;  %v1958_v8 = vsub.f32 %v7369_v60, %v1920_v13  ;;  %5357 = vpow2.f32 %v1999_v12  ;;  %v2003_v53 = vmul.f32 1.442695, %v1955_v9 }
 0x72f   : > { %5359 = vpow2.f32 %v2001_v63 }
 0x730   : > { %v2007_v4 = vmul.f32 1.442695, %v1957_v55  ;;  %v2009_v49 = vmul.f32 1.442695, %v1958_v8 }
 0x731   : > { %v1926_v20 = vpop.xlane.xlu1 %1925 }
 0x732   : > { %5361 = vpow2.f32 %v2007_v4  ;;  %v1961_v2 = vsub.f32 %v7379_v45, %v1926_v20  ;;  %v1962_v11 = vsub.f32 %v7381_v18, %v1926_v20 }
 0x733   : > { %5363 = vpow2.f32 %v2009_v49 }
 0x734   : > { %v7707_v59 = vpop.eup %5349  ;;  %v2015_v24 = vmul.f32 1.442695, %v1961_v2  ;;  %v2017_v60 = vmul.f32 1.442695, %v1962_v11 }
 0x735   : > { %v7709_v50 = vpop.eup %5351  ;;  %v1932_v31 = vpop.xlane.xlu1 %1931 }
 0x736   : > { %v7711_v63 = vpop.eup %5353  ;;  %5365 = vpow2.f32 %v2015_v24  ;;  %v1965_v17 = vsub.f32 %v7393_v25, %v1932_v31  ;;  %v1966_v42 = vsub.f32 %v7395_v33, %v1932_v31  ;;  %v2050_v45 = vadd.f32 %v7709_v50, %v7707_v59 }
 0x737   : > { %v7717_v18 = vpop.eup %5355  ;;  %5367 = vpow2.f32 %v2017_v60 }
 0x738   : > { %5369 = vpow2.f32 %v2003_v53  ;;  %v2023_v62 = vmul.f32 1.442695, %v1965_v17  ;;  %v2025_v57 = vmul.f32 1.442695, %v1966_v42  ;;  %2051 = vadd.xlane.f32.xlu0 %v2050_v45  ;;  %v7719_v12 = vpop.eup %5357  ;;  %v2053_v55 = vadd.f32 %v7717_v18, %v7711_v63 }
 0x739   : > { %5371 = vpow2.f32 %v2005_v34  ;;  %v1938_v36 = vpop.xlane.xlu1 %1937  ;;  %v7721_v13 = vpop.eup %5359  ;;  %v8971_v17 = vmax.f32 %v7687_v19, %v7689_v47 }
 0x73a   : > { %5373 = vpow2.f32 %v2023_v62  ;;  %v1969_v25 = vsub.f32 %v7407_v56, %v1938_v36  ;;  %v1970_v33 = vsub.f32 %v7411_v44, %v1938_v36  ;;  %v2056_v20 = vadd.f32 %v7721_v13, %v7719_v12 }
 0x73b   : > { %5375 = vpow2.f32 %v2025_v57 }
 0x73c   : > { %v7727_v8 = vpop.eup %5361  ;;  %v2031_v9 = vmul.f32 1.442695, %v1969_v25  ;;  %v2033_v4 = vmul.f32 1.442695, %v1970_v33  ;;  %2054 = vadd.xlane.f32.xlu0 %v2053_v55 }
 0x73d   : > { %v7729_v49 = vpop.eup %5363  ;;  %v2627_v46 = vpop.xlane.xlu1 %2626 }
 0x73e   : > { %5377 = vpow2.f32 %v2031_v9  ;;  %v2672_v56 = vsub.f32 %v7423_v6, %v2627_v46  ;;  %v2673_v44 = vsub.f32 %v7425_v61, %v2627_v46  ;;  %v2062_v2 = vadd.f32 %v7729_v49, %v7727_v8  ;;  %v1923_v9 = vpop.xlane.xlu0 %1922 }
 0x73f   : > { %5379 = vpow2.f32 %v2033_v4 }
 0x740   : > { %v7737_v11 = vpop.eup %5365  ;;  %v2706_v53 = vmul.f32 1.442695, %v2672_v56  ;;  %v2708_v24 = vmul.f32 1.442695, %v2673_v44  ;;  %2057 = vadd.xlane.f32.xlu0 %v2056_v20  ;;  %2063 = vadd.xlane.f32.xlu1 %v2062_v2 }
 0x741   : > { %8969 = vst [vmem:[#allocation100_spill] sm:$0xff] %v7737_v11  ;;  %v7739_v60 = vpop.eup %5367  ;;  %v7770_v44 = vpop.xlane.xlu1 %2632 }
 0x742   : > { %v7741_v34 = vpop.eup %5369  ;;  %5381 = vpow2.f32 %v2706_v53  ;;  %v2068_v6 = vadd.f32 %v7739_v60, %v7737_v11  ;;  %v1929_v46 = vpop.xlane.xlu0 %1928  ;;  %v5680_v53 = vld [vmem:[#allocation3 + $0x70] sm:$0xff] }
 0x743   : > { %v7745_v31 = vpop.eup %5371  ;;  %5383 = vpow2.f32 %v2708_v24  ;;  %v1963_v23 = vsub.f32 %v7387_v21, %v1929_v46 }
 0x744   : > { %v7747_v61 = vpop.eup %5373  ;;  %3383 = vmax.xlane.f32.xlu0 %v8971_v17  ;;  %2069 = vadd.xlane.f32.xlu1 %v2068_v6  ;;  %v2059_v45 = vadd.f32 %v7745_v31, %v7741_v34  ;;  %v5681_v6 = vld [vmem:[#allocation3 + $0x30] sm:$0xff] }
 0x745   : > { %8970 = vst [vmem:[#allocation101_spill] sm:$0xff] %v7747_v61  ;;  %v7752_v42 = vpop.eup %5375  ;;  %v7773_v24 = vpop.xlane.xlu1 %2638 }
 0x746   : > { %8972 = vst [vmem:[#allocation102_spill] sm:$0xff] %v7752_v42  ;;  %v2074_v62 = vadd.f32 %v7752_v42, %v7747_v61  ;;  %v1935_v20 = vpop.xlane.xlu0 %1934 }
 0x747   : > { %v1968_v61 = vsub.f32 %v7403_v14, %v1935_v20 }
 0x748   : > { %v7758_v57 = vpop.eup %5377  ;;  %2060 = vadd.xlane.f32.xlu0 %v2059_v45  ;;  %2075 = vadd.xlane.f32.xlu1 %v2074_v62  ;;  %v1959_v45 = vsub.f32 %v7373_v3, %v1923_v9  ;;  %v1960_v62 = vsub.f32 %v7375_v54, %v1923_v9  ;;  %v2019_v3 = vmul.f32 1.442695, %v1963_v23 }
 0x749   : > { %8973 = vst [vmem:[#allocation103_spill] sm:$0xff] %v7758_v57  ;;  %v7760_v36 = vpop.eup %5379 }
 0x74a   : > { %8974 = vst [vmem:[#allocation104_spill] sm:$0xff] %v7760_v36  ;;  %v2080_v25 = vadd.f32 %v7760_v36, %v7758_v57  ;;  %v2624_v56 = vpop.xlane.xlu0 %2623  ;;  %v1967_v57 = vsub.f32 %v7401_v7, %v1935_v20  ;;  %v2029_v7 = vmul.f32 1.442695, %v1968_v61 }
 0x74b   : > { %v2670_v54 = vsub.f32 %v7415_v43, %v2624_v56 }
 0x74c   : > { %v7764_v33 = vpop.eup %5381  ;;  %2081 = vadd.xlane.f32.xlu1 %v2080_v25  ;;  %v2027_v21 = vmul.f32 1.442695, %v1967_v57 }
 0x74d   : > { %8975 = vst [vmem:[#allocation105_spill] sm:$0xff] %v7764_v33  ;;  %v7766_v55 = vpop.eup %5383  ;;  %v2702_v11 = vmul.f32 1.442695, %v2670_v54 }
 0x74e   : > { %8976 = vst [vmem:[#allocation106_spill] sm:$0xff] %v7766_v55  ;;  %v2769_v4 = vadd.f32 %v7766_v55, %v7764_v33  ;;  %v2630_v2 = vpop.xlane.xlu0 %2629  ;;  %v2011_v33 = vmul.f32 1.442695, %v1959_v45  ;;  %v2013_v55 = vmul.f32 1.442695, %v1960_v62  ;;  %v2671_v62 = vsub.f32 %v7419_v0, %v2624_v56 }
 0x74f   : > { %v2674_v14 = vsub.f32 %v7431_v28, %v2630_v2  ;;  %v2675_v61 = vsub.f32 %v7433_v22, %v2630_v2 }
 0x750   : > { %2770 = vadd.xlane.f32.xlu1 %v2769_v4  ;;  %v7782_v4 = vpop.xlane.xlu1 %2641  ;;  %5385 = vpow2.f32 %v2011_v33 }
 0x751   : > { %5387 = vpow2.f32 %v2013_v55  ;;  %v2704_v55 = vmul.f32 1.442695, %v2671_v62  ;;  %v2710_v0 = vmul.f32 1.442695, %v2674_v14  ;;  %v2712_v22 = vmul.f32 1.442695, %v2675_v61 }
 0x752   : > { %v7776_v17 = vpop.xlane.xlu0 %2635  ;;  %5389 = vpow2.f32 %v2019_v3 }
 0x753   : > { %v2678_v28 = vsub.f32 %v7445_v29, %v7776_v17 }
 0x755   : > { %v2718_v29 = vmul.f32 1.442695, %v2678_v28 }
 0x756   : > { %v7780_v25 = vpop.xlane.xlu0 %2644 }
 0x75a   : > { %v7787_v36 = vpop.xlane.xlu0 %2647 }
 0x75e   : > { %3621 = vrot.lane.b32.xlu0 %v5680_v53, %s5965_s8  ;;  %v1964_v53 = vsub.f32 %v7389_v52, %v1929_v46  ;;  %v7793_v52 = vpop.xlane.xlu0 %2653 }
 0x760   : > { %v2021_v9 = vmul.f32 1.442695, %v1964_v53 }
 0x761   : > { %3605 = vrot.lane.b32.xlu1 %v5681_v6, %s5965_s8  ;;  %v2651_v6 = vpop.xlane.xlu1 %2650 }
 0x762   : > { %v2688_v42 = vsub.f32 %v7483_v16, %v2651_v6  ;;  %v2689_v45 = vsub.f32 %v7487_v51, %v2651_v6  ;;  %5391 = vpow2.f32 %v2021_v9  ;;  %v7799_v33 = vpop.xlane.xlu0 %2659  ;;  %v7808_v6 = vpop.eup %5385 }
 0x763   : > { %5393 = vpow2.f32 %v2027_v21  ;;  %v7812_v2 = vpop.eup %5387 }
 0x764   : > { %v2738_v43 = vmul.f32 1.442695, %v2688_v42  ;;  %v2740_v16 = vmul.f32 1.442695, %v2689_v45  ;;  %5395 = vpow2.f32 %v2029_v7  ;;  %v7817_v54 = vpop.eup %5389  ;;  %v2679_v7 = vsub.f32 %v7447_v5, %v7776_v17  ;;  %v8978_v17 = vld [vmem:[#allocation61_spill] sm:$0xff] }
 0x765   : > { %v2657_v46 = vpop.xlane.xlu1 %2656  ;;  %5397 = vpow2.f32 %v2702_v11  ;;  %v2676_v11 = vsub.f32 %v7437_v30, %v7770_v44 }
 0x766   : > { %v2692_v23 = vsub.f32 %v7501_v58, %v2657_v46  ;;  %v2693_v57 = vsub.f32 %v7505_v15, %v2657_v46  ;;  %5399 = vpow2.f32 %v2738_v43 }
 0x767   : > { %5401 = vpow2.f32 %v2740_v16 }
 0x768   : > { %v2746_v42 = vmul.f32 1.442695, %v2692_v23  ;;  %v2748_v20 = vmul.f32 1.442695, %v2693_v57  ;;  %v2669_v53 = vpop.xlane.xlu0 %2668  ;;  %5403 = vpow2.f32 %v2704_v55  ;;  %v8977_v23 = vld [vmem:[#allocation59_spill] sm:$0xff] }
 0x769   : > { %v2663_v51 = vpop.xlane.xlu1 %2662  ;;  %5405 = vpow2.f32 %v2710_v0  ;;  %v2701_v21 = vsub.f32 %v7539_v27, %v2669_v53  ;;  %v2680_v27 = vsub.f32 %v7451_v1, %v7773_v24  ;;  %v2720_v0 = vmul.f32 1.442695, %v2679_v7  ;;  %v8980_v1 = vld [vmem:[#allocation52_spill] sm:$0xff] }
 0x76a   : > { %v2696_v58 = vsub.f32 %v7519_v35, %v2663_v51  ;;  %v2697_v15 = vsub.f32 %v7521_v41, %v2663_v51  ;;  %v2677_v35 = vsub.f32 %v7439_v39, %v7770_v44  ;;  %5407 = vpow2.f32 %v2746_v42 }
 0x76b   : > { %v2700_v41 = vsub.f32 %v7535_v32, %v2669_v53  ;;  %5409 = vpow2.f32 %v2748_v20  ;;  %v2714_v39 = vmul.f32 1.442695, %v2676_v11  ;;  %v2065_v44 = vadd.f32 %v7812_v2, %v7808_v6 }
 0x76c   : > { %v2754_v3 = vmul.f32 1.442695, %v2696_v58  ;;  %v2756_v9 = vmul.f32 1.442695, %v2697_v15  ;;  %v7822_v30 = vpop.eup %5391  ;;  %5411 = vpow2.f32 %v2712_v22  ;;  %v2716_v62 = vmul.f32 1.442695, %v2677_v35 }
 0x76d   : > { %v7806_v56 = vpop.xlane.xlu1 %2665  ;;  %v7828_v32 = vpop.eup %5393  ;;  %5413 = vpow2.f32 %v2718_v29  ;;  %v2762_v43 = vmul.f32 1.442695, %v2700_v41  ;;  %v2764_v5 = vmul.f32 1.442695, %v2701_v21  ;;  %v2681_v28 = vsub.f32 %v8980_v1, %v7773_v24  ;;  %v8982_v15 = vld [vmem:[#allocation54_spill] sm:$0xff]  ;;  %v8983_v35 = vld [vmem:[#allocation69_spill] sm:$0xff] }
 0x76e   : > { %v3339_v45 = vpop.xlane.xlu0 %3338  ;;  %v7832_v14 = vpop.eup %5395  ;;  %5415 = vpow2.f32 %v2754_v3  ;;  %v2071_v42 = vadd.f32 %v7822_v30, %v7817_v54  ;;  %v2722_v20 = vmul.f32 1.442695, %v2680_v27  ;;  %v2684_v53 = vsub.f32 %v8982_v15, %v7780_v25  ;;  %v8989_v15 = vld [vmem:[#allocation75_spill] sm:$0xff] }
 0x76f   : > { %v3385_v16 = vsub.f32 %v8977_v23, %v3339_v45  ;;  %v7835_v57 = vpop.eup %5397  ;;  %5417 = vpow2.f32 %v2756_v9  ;;  %v3386_v51 = vsub.f32 %v8978_v17, %v3339_v45  ;;  %v8984_v9 = vld [vmem:[#allocation70_spill] sm:$0xff]  ;;  %v2077_v7 = vadd.f32 %v7832_v14, %v7828_v32 }
 0x770   : > { %v7838_v61 = vpop.eup %5399  ;;  %5419 = vpow2.f32 %v2714_v39 }
 0x771   : > { %v7820_v46 = vpop.xlane.xlu1 %3341  ;;  %8979 = vst [vmem:[#allocation59_spill] sm:$0xff] %v7838_v61  ;;  %v7844_v58 = vpop.eup %5401  ;;  %5421 = vpow2.f32 %v2716_v62  ;;  %v3417_v29 = vmul.f32 1.442695, %v3385_v16  ;;  %v3419_v41 = vmul.f32 1.442695, %v3386_v51  ;;  %v8986_v62 = vld [vmem:[#allocation30_spill] sm:$0xff] }
 0x772   : > { %8981 = vst [vmem:[#allocation61_spill] sm:$0xff] %v7844_v58  ;;  %v7850_v11 = vpop.eup %5403  ;;  %5423 = vpow2.f32 %v2762_v43  ;;  %v2682_v27 = vsub.f32 %v8986_v62, %v7782_v4  ;;  %v2793_v43 = vadd.f32 %v7844_v58, %v7838_v61  ;;  %v2730_v16 = vmul.f32 1.442695, %v2684_v53 }
 0x773   : > { %v7853_v24 = vpop.eup %5405  ;;  %5425 = vpow2.f32 %v2764_v5  ;;  %v8988_v5 = vld [vmem:[#allocation51_spill] sm:$0xff]  ;;  %v2766_v53 = vadd.f32 %v7850_v11, %v7835_v57 }
 0x774   : > { %v7858_v39 = vpop.eup %5407  ;;  %5427 = vpow2.f32 %v2720_v0  ;;  %v2683_v17 = vsub.f32 %v8988_v5, %v7782_v4 }
 0x775   : > { %8985 = vst [vmem:[#allocation52_spill] sm:$0xff] %v7858_v39  ;;  %v7864_v23 = vpop.eup %5409  ;;  %5429 = vpow2.f32 %v2722_v20 }
 0x776   : > { %v7848_v22 = vpop.xlane.xlu0 %3344  ;;  %8987 = vst [vmem:[#allocation54_spill] sm:$0xff] %v7864_v23  ;;  %5431 = vpow2.f32 %v3417_v29 }
 0x777   : > { %5433 = vpow2.f32 %v3419_v41  ;;  %v2728_v41 = vmul.f32 1.442695, %v2683_v17 }
 0x778   : > { %v3348_v55 = vpop.xlane.xlu1 %3347 }
 0x779   : > { %v3391_v3 = vsub.f32 %v8983_v35, %v3348_v55  ;;  %v3392_v21 = vsub.f32 %v8984_v9, %v3348_v55  ;;  %v7870_v55 = vpop.eup %5411  ;;  %v8991_v35 = vld [vmem:[#allocation53_spill] sm:$0xff] }
 0x77a   : > { %v2685_v29 = vsub.f32 %v8991_v35, %v7780_v25 }
 0x77b   : > { %v3429_v0 = vmul.f32 1.442695, %v3391_v3  ;;  %v2726_v3 = vmul.f32 1.442695, %v2682_v27  ;;  %v2772_v27 = vadd.f32 %v7870_v55, %v7853_v24 }
 0x77d   : > { %2066 = vadd.xlane.f32.xlu0 %v2065_v44  ;;  %v2724_v44 = vmul.f32 1.442695, %v2681_v28  ;;  %v7873_v28 = vpop.eup %5413 }
 0x77e   : > { %v7868_v51 = vpop.xlane.xlu0 %3350  ;;  %v7878_v4 = vpop.eup %5415 }
 0x77f   : > { %8990 = vst [vmem:[#allocation69_spill] sm:$0xff] %v7878_v4  ;;  %5435 = vpow2.f32 %v2724_v44  ;;  %v7884_v9 = vpop.eup %5417 }
 0x780   : > { %v3354_v45 = vpop.xlane.xlu1 %3353  ;;  %8992 = vst [vmem:[#allocation70_spill] sm:$0xff] %v7884_v9  ;;  %5437 = vpow2.f32 %v2730_v16  ;;  %v2732_v16 = vmul.f32 1.442695, %v2685_v29  ;;  %v2805_v17 = vadd.f32 %v7884_v9, %v7878_v4 }
 0x781   : > { %2072 = vadd.xlane.f32.xlu0 %v2071_v42  ;;  %v3395_v1 = vsub.f32 %v7589_v48, %v3354_v45  ;;  %v3431_v42 = vmul.f32 1.442695, %v3392_v21  ;;  %v3396_v20 = vsub.f32 %v8989_v15, %v3354_v45  ;;  %v2799_v48 = vadd.f32 %v7864_v23, %v7858_v39 }
 0x782   : > { %5439 = vpow2.f32 %v3429_v0 }
 0x783   : > { %v3437_v45 = vmul.f32 1.442695, %v3395_v1  ;;  %5441 = vpow2.f32 %v3431_v42  ;;  %v3439_v44 = vmul.f32 1.442695, %v3396_v20 }
 0x784   : > { %5443 = vpow2.f32 %v2726_v3 }
 0x785   : > { %2078 = vadd.xlane.f32.xlu0 %v2077_v7  ;;  %2794 = vadd.xlane.f32.xlu1 %v2793_v43  ;;  %v7886_v7 = vpop.eup %5419  ;;  %5445 = vpow2.f32 %v2728_v41 }
 0x786   : > { %v7888_v62 = vpop.eup %5421  ;;  %v7900_v1 = vpop.xlane.xlu1 %3356  ;;  %5447 = vpow2.f32 %v3437_v45 }
 0x787   : > { %v7893_v43 = vpop.eup %5423  ;;  %5449 = vpow2.f32 %v3439_v44  ;;  %v2775_v41 = vadd.f32 %v7888_v62, %v7886_v7  ;;  %v8999_v44 = vld [vmem:[#allocation33_spill] sm:$0xff] }
 0x788   : > { %v3360_v21 = vpop.xlane.xlu0 %3359  ;;  %8993 = vst [vmem:[#allocation30_spill] sm:$0xff] %v7893_v43  ;;  %v7898_v0 = vpop.eup %5425  ;;  %5451 = vpow2.f32 %v2732_v16 }
 0x789   : > { %2767 = vadd.xlane.f32.xlu0 %v2766_v53  ;;  %2800 = vadd.xlane.f32.xlu1 %v2799_v48  ;;  %v3399_v25 = vsub.f32 %v7605_v38, %v3360_v21  ;;  %v3400_v5 = vsub.f32 %v7607_v40, %v3360_v21  ;;  %8994 = vst [vmem:[#allocation51_spill] sm:$0xff] %v7898_v0  ;;  %v7902_v42 = vpop.eup %5427  ;;  %v8995_v38 = vld [vmem:[#allocation35_spill] sm:$0xff]  ;;  %v8996_v40 = vld [vmem:[#allocation36_spill] sm:$0xff] }
 0x78a   : > { %v2686_v15 = vsub.f32 %v8995_v38, %v7787_v36  ;;  %v7906_v20 = vpop.eup %5429  ;;  %v2687_v53 = vsub.f32 %v8996_v40, %v7787_v36  ;;  %v2811_v21 = vadd.f32 %v7898_v0, %v7893_v43  ;;  %v9000_v38 = vld [vmem:[#allocation37_spill] sm:$0xff] }
 0x78b   : > { %v3445_v35 = vmul.f32 1.442695, %v3399_v25  ;;  %v7910_v29 = vpop.eup %5431  ;;  %v3447_v3 = vmul.f32 1.442695, %v3400_v5  ;;  %v2690_v25 = vsub.f32 %v8999_v44, %v7793_v52  ;;  %v2691_v40 = vsub.f32 %v9000_v38, %v7793_v52  ;;  %v9004_v38 = vld [vmem:[#allocation43_spill] sm:$0xff] }
 0x78c   : > { %8997 = vst [vmem:[#allocation75_spill] sm:$0xff] %v7910_v29  ;;  %v7916_v45 = vpop.eup %5433  ;;  %v2734_v36 = vmul.f32 1.442695, %v2686_v15  ;;  %v2736_v5 = vmul.f32 1.442695, %v2687_v53  ;;  %v2778_v15 = vadd.f32 %v7902_v42, %v7873_v28  ;;  %v2695_v0 = vsub.f32 %v9004_v38, %v7799_v33 }
 0x78d   : > { %2773 = vadd.xlane.f32.xlu0 %v2772_v27  ;;  %2806 = vadd.xlane.f32.xlu1 %v2805_v17  ;;  %8998 = vst [vmem:[#allocation53_spill] sm:$0xff] %v7916_v45  ;;  %v7918_v17 = vpop.eup %5435  ;;  %v2742_v52 = vmul.f32 1.442695, %v2690_v25 }
 0x78e   : > { %v2037_v48 = vpop.xlane.xlu0 %2036  ;;  %v7922_v16 = vpop.eup %5437 }
 0x78f   : > { %5453 = vrcp.f32 %v2037_v48  ;;  %v7926_v43 = vpop.eup %5439 }
 0x790   : > { %v2040_v27 = vpop.xlane.xlu1 %2039  ;;  %9001 = vst [vmem:[#allocation35_spill] sm:$0xff] %v7926_v43 }
 0x791   : > { %5455 = vrcp.f32 %v2040_v27  ;;  %2776 = vadd.xlane.f32.xlu0 %v2775_v41  ;;  %2812 = vadd.xlane.f32.xlu1 %v2811_v21  ;;  %v3481_v27 = vadd.f32 %v7916_v45, %v7910_v29  ;;  %v7934_v41 = vpop.eup %5441  ;;  %v9003_v21 = vld [vmem:[#allocation42_spill] sm:$0xff]  ;;  %v9006_v29 = vld [vmem:[#allocation55_spill] sm:$0xff] }
 0x792   : > { %5457 = vpow2.f32 %v3445_v35  ;;  %v7928_v48 = vpop.xlane.xlu0 %3362  ;;  %9002 = vst [vmem:[#allocation36_spill] sm:$0xff] %v7934_v41  ;;  %v2694_v53 = vsub.f32 %v9003_v21, %v7799_v33  ;;  %v7938_v44 = vpop.eup %5443  ;;  %v2698_v45 = vsub.f32 %v9006_v29, %v7806_v56  ;;  %v2781_v21 = vadd.f32 %v7918_v17, %v7906_v20  ;;  %v9008_v33 = vld [vmem:[#allocation56_spill] sm:$0xff] }
 0x793   : > { %5459 = vpow2.f32 %v3447_v3  ;;  %v7940_v35 = vpop.eup %5445  ;;  %v2744_v3 = vmul.f32 1.442695, %v2691_v40  ;;  %v2699_v40 = vsub.f32 %v9008_v33, %v7806_v56  ;;  %v2752_v29 = vmul.f32 1.442695, %v2695_v0  ;;  %v9012_v33 = vld [vmem:[#allocation81_spill] sm:$0xff] }
 0x794   : > { %5461 = vpow2.f32 %v2734_v36  ;;  %v7944_v4 = vpop.eup %5447  ;;  %v3490_v36 = vadd.f32 %v7934_v41, %v7926_v43  ;;  %v2758_v39 = vmul.f32 1.442695, %v2698_v45  ;;  %v2784_v43 = vadd.f32 %v7940_v35, %v7938_v44  ;;  %v9011_v45 = vld [vmem:[#allocation62_spill] sm:$0xff] }
 0x795   : > { %2779 = vadd.xlane.f32.xlu0 %v2778_v15  ;;  %3482 = vadd.xlane.f32.xlu1 %v3481_v27  ;;  %5463 = vpow2.f32 %v2736_v5  ;;  %9005 = vst [vmem:[#allocation33_spill] sm:$0xff] %v7944_v4  ;;  %v7952_v25 = vpop.eup %5449  ;;  %v2750_v15 = vmul.f32 1.442695, %v2694_v53  ;;  %v2760_v0 = vmul.f32 1.442695, %v2699_v40 }
 0x796   : > { %v2043_v9 = vpop.xlane.xlu0 %2042  ;;  %9007 = vst [vmem:[#allocation37_spill] sm:$0xff] %v7952_v25  ;;  %v7954_v5 = vpop.eup %5451  ;;  %5465 = vpow2.f32 %v2742_v52  ;;  %v3496_v53 = vadd.f32 %v7952_v25, %v7944_v4  ;;  %v9013_v4 = vld [vmem:[#allocation64_spill] sm:$0xff] }
 0x797   : > { %5467 = vpow2.f32 %v2744_v3  ;;  %v3387_v3 = vsub.f32 %v9011_v45, %v7820_v46  ;;  %v2787_v40 = vadd.f32 %v7954_v5, %v7922_v16 }
 0x798   : > { %5469 = vpow2.f32 %v2750_v15  ;;  %v3388_v15 = vsub.f32 %v9013_v4, %v7820_v46 }
 0x799   : > { %2782 = vadd.xlane.f32.xlu0 %v2781_v21  ;;  %3491 = vadd.xlane.f32.xlu1 %v3490_v36  ;;  %v5454_v27 = vpop.eup %5453  ;;  %5471 = vpow2.f32 %v2752_v29 }
 0x79a   : > { %v7958_v23 = vpop.xlane.xlu0 %3368  ;;  %v2084_v56 = vmul.f32 %v5454_v27, %v7613_v37  ;;  %v2085_v36 = vmul.f32 %v5454_v27, %v7617_v10  ;;  %5473 = vpow2.f32 %v2758_v39  ;;  %v9014_v27 = vld [vmem:[#allocation66_spill] sm:$0xff]  ;;  %v3423_v4 = vmul.f32 1.442695, %v3388_v15  ;;  %v9015_v39 = vld [vmem:[#allocation68_spill] sm:$0xff] }
 0x79b   : > { %v5456_v38 = vpop.eup %5455  ;;  %5475 = vrcp.f32 %v2043_v9  ;;  %v3389_v46 = vsub.f32 %v9014_v27, %v7848_v22  ;;  %v9016_v9 = vld [vmem:[#allocation28_spill] sm:$0xff]  ;;  %v9022_v27 = vld [vmem:[#allocation29_spill] sm:$0xff] }
 0x79c   : > { %v7964_v41 = vpop.eup %5457  ;;  %v2087_v52 = vmul.f32 %v5456_v38, %v7621_v26  ;;  %v2088_v61 = vmul.f32 %v5456_v38, %v9012_v33  ;;  %5477 = vpow2.f32 %v2760_v0  ;;  %v9020_v33 = vld [vmem:[#allocation47_spill] sm:$0xff] }
 0x79d   : > { %9009 = vst [vmem:[#allocation42_spill] sm:$0xff] %v7964_v41  ;;  %v7968_v21 = vpop.eup %5459  ;;  %2785 = vadd.xlane.f32.xlu0 %v2784_v43  ;;  %3497 = vadd.xlane.f32.xlu1 %v3496_v53  ;;  %v3421_v43 = vmul.f32 1.442695, %v3387_v3  ;;  %v3425_v0 = vmul.f32 1.442695, %v3389_v46  ;;  %v9019_v3 = vld [vmem:[#allocation74_spill] sm:$0xff] }
 0x79e   : > { %9010 = vst [vmem:[#allocation43_spill] sm:$0xff] %v7968_v21  ;;  %v2131_v25 = vpack.c.bf16 %v2087_v52, %v2084_v56  ;;  %v7976_v37 = vpop.eup %5461  ;;  %v2046_v26 = vpop.xlane.xlu0 %2045  ;;  %v2132_v58 = vpack.c.bf16 %v2088_v61, %v2085_v36  ;;  %v3502_v10 = vadd.f32 %v7968_v21, %v7964_v41  ;;  %v3390_v61 = vsub.f32 %v9015_v39, %v7848_v22  ;;  %v9017_v56 = vld [vmem:[#allocation73_spill] sm:$0xff]  ;;  %v9018_v52 = vld [vmem:[#allocation32_spill] sm:$0xff]  ;;  %v9032_v41 = vld [vmem:[#allocation26_spill] sm:$0xff] }
 0x79f   : > { %v7980_v45 = vpop.eup %5463  ;;  %5479 = vrcp.f32 %v2046_v26  ;;  %v3394_v36 = vsub.f32 %v9019_v3, %v7868_v51  ;;  %v9024_v39 = vld [vmem:[#allocation77_spill] sm:$0xff]  ;;  %v9026_v3 = vld [vmem:[#allocation31_spill] sm:$0xff] }
 0x7a0   : > { %2243 = vmatprep.mubr.bf16.mxu1 %v2132_v58  ;;  %v7988_v29 = vpop.eup %5465  ;;  %v2790_v38 = vadd.f32 %v7980_v45, %v7976_v37  ;;  %v3393_v58 = vsub.f32 %v9017_v56, %v7868_v51  ;;  %5481 = vpow2.f32 %v3421_v43 }
 0x7a1   : > { %2788 = vadd.xlane.f32.xlu0 %v2787_v40  ;;  %3503 = vadd.xlane.f32.xlu1 %v3502_v10  ;;  %v7993_v53 = vpop.eup %5467  ;;  %5483 = vpow2.f32 %v3423_v4  ;;  %v9021_v10 = vld [vmem:[#allocation76_spill] sm:$0xff]  ;;  %v3435_v51 = vmul.f32 1.442695, %v3394_v36 }
 0x7a2   : > { %2244 = vmatmul.mubr.bf16.vlgmr.msra.gmra.mrb[32].mxu1 %v2131_v25  ;;  %v7998_v22 = vpop.eup %5469  ;;  %v3427_v25 = vmul.f32 1.442695, %v3390_v61  ;;  %v2796_v15 = vadd.f32 %v7993_v53, %v7988_v29  ;;  %v3433_v40 = vmul.f32 1.442695, %v3393_v58  ;;  %v3397_v43 = vsub.f32 %v9021_v10, %v7900_v1 }
 0x7a3   : > { %4750 = vmatpush3.bf16.msra.mxu1 %v9016_v9  ;;  %v8005_v26 = vpop.eup %5471  ;;  %5485 = vpow2.f32 %v3425_v0  ;;  %v3398_v61 = vsub.f32 %v9024_v39, %v7900_v1  ;;  %v9027_v0 = vld [vmem:[#allocation85_spill] sm:$0xff] }
 0x7a4   : > { %4751 = vmatprep.subr.bf16.mxu1 %v9018_v52  ;;  %v8010_v46 = vpop.eup %5473  ;;  %5487 = vpow2.f32 %v3427_v25  ;;  %v2802_v56 = vadd.f32 %v8005_v26, %v7998_v22  ;;  %v3441_v52 = vmul.f32 1.442695, %v3397_v43  ;;  %v9028_v25 = vld [vmem:[#allocation90_spill] sm:$0xff]  ;;  %v9030_v1 = vld [vmem:[#allocation89_spill] sm:$0xff] }
 0x7a5   : > { %2791 = vadd.xlane.f32.xlu0 %v2790_v38  ;;  %9023 = vst [vmem:[#allocation55_spill] sm:$0xff] %v8010_v46  ;;  %v5476_v4 = vpop.eup %5475  ;;  %v9025_v38 = vld [vmem:[#allocation50_spill] sm:$0xff]  ;;  %5489 = vpow2.f32 %v3433_v40  ;;  %v3443_v39 = vmul.f32 1.442695, %v3398_v61  ;;  %v5682_v61 = vld [vmem:[#allocation3 + $0x38] sm:$0xff] }
 0x7a6   : > { %v8014_v9 = vpop.eup %5477  ;;  %5491 = vpow2.f32 %v3435_v51  ;;  %v9036_v51 = vld [vmem:[#allocation48_spill] sm:$0xff] }
 0x7a7   : > { %4752 = vmatpush3.bf16.msra.mxu1 %v9020_v33  ;;  %v2091_v33 = vmul.f32 %v5476_v4, %v9027_v0  ;;  %v2808_v43 = vadd.f32 %v8014_v9, %v8010_v46  ;;  %5493 = vpow2.f32 %v3441_v52  ;;  %v9038_v0 = vld [vmem:[#allocation39_spill] sm:$0xff]  ;;  %v9040_v52 = vld [vmem:[#allocation49_spill] sm:$0xff] }
 0x7a8   : > { %4753 = vmatprep.subr.bf16.mxu1 %v9022_v27  ;;  %5495 = vpow2.f32 %v3443_v39  ;;  %v9044_v39 = vld [vmem:[#allocation38_spill] sm:$0xff] }
 0x7a9   : > { %2797 = vadd.xlane.f32.xlu0 %v2796_v15  ;;  %v5480_v58 = vpop.eup %5479  ;;  %v9029_v15 = vld [vmem:[#allocation83_spill] sm:$0xff] }
 0x7aa   : > { %v2094_v36 = vmul.f32 %v5480_v58, %v9028_v25  ;;  %v2090_v10 = vmul.f32 %v5476_v4, %v9029_v15  ;;  %v2093_v27 = vmul.f32 %v5480_v58, %v9030_v1  ;;  %v9042_v15 = vld [vmem:[#allocation34_spill] sm:$0xff] }
 0x7ab   : > { %4754 = vmatpush3.bf16.msra.mxu1 %v9025_v38  ;;  %v8024_v38 = vpop.eup %5481 }
 0x7ac   : > { %4755 = vmatprep.subr.bf16.mxu1 %v9026_v3  ;;  %9031 = vst [vmem:[#allocation56_spill] sm:$0xff] %v8024_v38  ;;  %v2134_v21 = vpack.c.bf16 %v2094_v36, %v2091_v33  ;;  %v2133_v40 = vpack.c.bf16 %v2093_v27, %v2090_v10  ;;  %v9034_v3 = vld [vmem:[#allocation27_spill] sm:$0xff]  ;;  %v3366_v33 = vpop.xlane.xlu1 %3365  ;;  %v2049_v27 = vpop.xlane.xlu0 %2048 }
 0x7ad   : > { %2803 = vadd.xlane.f32.xlu0 %v2802_v56  ;;  %v8029_v56 = vpop.eup %5483  ;;  %5497 = vrcp.f32 %v2049_v27  ;;  %v9053_v27 = vld [vmem:[#allocation96_spill] sm:$0xff] }
 0x7ae   : > { %9033 = vst [vmem:[#allocation62_spill] sm:$0xff] %v8029_v56  ;;  %2251 = vmatprep.mubr.bf16.mxu1 %v2134_v21  ;;  %v8032_v4 = vpop.eup %5485 }
 0x7af   : > { %4756 = vmatpush3.bf16.msra.mxu1 %v9032_v41  ;;  %9035 = vst [vmem:[#allocation81_spill] sm:$0xff] %v8032_v4  ;;  %v3484_v41 = vadd.f32 %v8029_v56, %v8024_v38  ;;  %v8038_v58 = vpop.eup %5487 }
 0x7b0   : > { %4757 = vmatprep.subr.bf16.mxu1 %v9034_v3  ;;  %2252 = vmatmul.mubr.bf16.gmra.mrb[36].mxu1 %v2133_v40  ;;  %9037 = vst [vmem:[#allocation64_spill] sm:$0xff] %v8038_v58  ;;  %v8041_v21 = vpop.eup %5489  ;;  %v3487_v25 = vadd.f32 %v8038_v58, %v8032_v4  ;;  %v8051_v1 = vpop.xlane.xlu1 %3371  ;;  %v9046_v3 = vld [vmem:[#allocation41_spill] sm:$0xff]  ;;  %v9050_v4 = vld [vmem:[#allocation44_spill] sm:$0xff] }
 0x7b1   : > { %2809 = vadd.xlane.f32.xlu0 %v2808_v43  ;;  %9039 = vst [vmem:[#allocation66_spill] sm:$0xff] %v8041_v21  ;;  %v8046_v36 = vpop.eup %5491 }
 0x7b2   : > { %3607 = vrot.lane.b32.xlu1 %v5682_v61, %s5965_s8  ;;  %9041 = vst [vmem:[#allocation68_spill] sm:$0xff] %v8046_v36  ;;  %v8049_v10 = vpop.eup %5493  ;;  %v3493_v40 = vadd.f32 %v8046_v36, %v8041_v21  ;;  %v9051_v21 = vld [vmem:[#allocation93_spill] sm:$0xff] }
 0x7b3   : > { %4758 = vmatpush3.bf16.msra.mxu1 %v9036_v51  ;;  %9043 = vst [vmem:[#allocation28_spill] sm:$0xff] %v8049_v10  ;;  %v8056_v43 = vpop.eup %5495  ;;  %v9047_v51 = vld [vmem:[#allocation80_spill] sm:$0xff] }
 0x7b4   : > { %4759 = vmatprep.subr.bf16.mxu1 %v9038_v0  ;;  %9045 = vst [vmem:[#allocation73_spill] sm:$0xff] %v8056_v43  ;;  %v3403_v61 = vsub.f32 %v9047_v51, %v3366_v33  ;;  %v9048_v0 = vld [vmem:[#allocation40_spill] sm:$0xff] }
 0x7b5   : > { %3485 = vadd.xlane.f32.xlu0 %v3484_v41  ;;  %v3378_v41 = vpop.xlane.xlu1 %3377 }
 0x7b6   : > { %v3411_v36 = vsub.f32 %v9051_v21, %v3378_v41  ;;  %v3453_v58 = vmul.f32 1.442695, %v3403_v61 }
 0x7b7   : > { %4760 = vmatpush3.bf16.msra.mxu1 %v9040_v52  ;;  %v3499_v52 = vadd.f32 %v8056_v43, %v8049_v10 }
 0x7b8   : > { %4761 = vmatprep.subr.bf16.mxu1 %v9042_v15  ;;  %v3469_v56 = vmul.f32 1.442695, %v3411_v36 }
 0x7b9   : > { %3488 = vadd.xlane.f32.xlu0 %v3487_v25  ;;  %v9049_v25 = vld [vmem:[#allocation82_spill] sm:$0xff] }
 0x7ba   : > { %v3404_v15 = vsub.f32 %v9049_v25, %v3366_v33  ;;  %v5498_v33 = vpop.eup %5497 }
 0x7bb   : > { %4762 = vmatpush3.bf16.msra.mxu1 %v9044_v39  ;;  %v8065_v39 = vpop.xlane.xlu0 %3374  ;;  %v2097_v25 = vmul.f32 %v5498_v33, %v9053_v27 }
 0x7bc   : > { %4763 = vmatprep.subr.bf16.mxu1 %v9046_v3  ;;  %v9052_v3 = vld [vmem:[#allocation95_spill] sm:$0xff]  ;;  %v3455_v38 = vmul.f32 1.442695, %v3404_v15 }
 0x7bd   : > { %3494 = vadd.xlane.f32.xlu0 %v3493_v40  ;;  %v3412_v40 = vsub.f32 %v9052_v3, %v3378_v41 }
 0x7bf   : > { %4764 = vmatpush3.bf16.msra.mxu1 %v9048_v0  ;;  %v3471_v0 = vmul.f32 1.442695, %v3412_v40 }
 0x7c0   : > { %4845 = vmatprep.subr.bf16.mxu1 %v9050_v4 }
 0x7c1   : > { %3500 = vadd.xlane.f32.xlu0 %v3499_v52  ;;  %v8069_v52 = vpop.xlane.xlu1 %3380 }
 0x7c5   : > { %v2052_v51 = vpop.xlane.xlu0 %2051 }
 0x7c6   : > { %5499 = vrcp.f32 %v2052_v51 }
 0x7c7   : > { %5501 = vpow2.f32 %v3453_v58  ;;  %v9054_v58 = vld [vmem:[#allocation94_spill] sm:$0xff] }
 0x7c8   : > { %5503 = vpow2.f32 %v3455_v38  ;;  %v2096_v15 = vmul.f32 %v5498_v33, %v9054_v58 }
 0x7c9   : > { %v2055_v10 = vpop.xlane.xlu0 %2054  ;;  %5505 = vpow2.f32 %v3469_v56 }
 0x7ca   : > { %5507 = vpow2.f32 %v3471_v0 }
 0x7cb   : > { %5509 = vrcp.f32 %v2055_v10 }
 0x7cd   : > { %v2058_v4 = vpop.xlane.xlu0 %2057  ;;  %v2064_v10 = vpop.xlane.xlu1 %2063 }
 0x7ce   : > { %5511 = vrcp.f32 %v2058_v4 }
 0x7cf   : > { %5513 = vrcp.f32 %v2064_v10  ;;  %v9056_v10 = vld [vmem:[#allocation79_spill] sm:$0xff] }
 0x7d0   : > { %v5500_v21 = vpop.eup %5499 }
 0x7d1   : > { %v8071_v61 = vpop.eup %5501  ;;  %v3384_v41 = vpop.xlane.xlu0 %3383  ;;  %v2100_v36 = vmul.f32 %v5500_v21, %v7709_v50  ;;  %v2099_v38 = vmul.f32 %v5500_v21, %v7707_v59 }
 0x7d2   : > { %v8077_v56 = vpop.eup %5503  ;;  %v3415_v3 = vsub.f32 %v7687_v19, %v3384_v41  ;;  %v3416_v40 = vsub.f32 %v7689_v47, %v3384_v41  ;;  %v5683_v19 = vld [vmem:[#allocation3 + $0x78] sm:$0xff] }
 0x7d3   : > { %v2136_v51 = vpack.c.bf16 %v2100_v36, %v2097_v25  ;;  %v2135_v0 = vpack.c.bf16 %v2099_v38, %v2096_v15  ;;  %v8081_v4 = vpop.eup %5505  ;;  %v3508_v59 = vadd.f32 %v8077_v56, %v8071_v61  ;;  %v9055_v15 = vld [vmem:[#allocation78_spill] sm:$0xff] }
 0x7d4   : > { %v3477_v43 = vmul.f32 1.442695, %v3415_v3  ;;  %v3479_v46 = vmul.f32 1.442695, %v3416_v40  ;;  %v8083_v27 = vpop.eup %5507  ;;  %v3401_v38 = vsub.f32 %v9055_v15, %v7928_v48  ;;  %v3402_v3 = vsub.f32 %v9056_v10, %v7928_v48  ;;  %v9062_v10 = vld [vmem:[#allocation92_spill] sm:$0xff] }
 0x7d5   : > { %v2061_v50 = vpop.xlane.xlu0 %2060  ;;  %2259 = vmatprep.mubr.bf16.mxu1 %v2136_v51  ;;  %v5510_v33 = vpop.eup %5509  ;;  %v3520_v21 = vadd.f32 %v8083_v27, %v8081_v4 }
 0x7d6   : > { %5515 = vpow2.f32 %v3477_v43  ;;  %2260 = vmatmul.mubr.bf16.gmra.mrb[40].mxu1 %v2135_v0  ;;  %3509 = vadd.xlane.f32.xlu1 %v3508_v59  ;;  %v2103_v41 = vmul.f32 %v5510_v33, %v7717_v18  ;;  %v2102_v36 = vmul.f32 %v5510_v33, %v7711_v63  ;;  %v3451_v0 = vmul.f32 1.442695, %v3402_v3  ;;  %v9058_v59 = vld [vmem:[#allocation86_spill] sm:$0xff] }
 0x7d7   : > { %5517 = vpow2.f32 %v3479_v46  ;;  %3623 = vrot.lane.b32.xlu0 %v5683_v19, %s5965_s8  ;;  %v3406_v33 = vsub.f32 %v9058_v59, %v7958_v23  ;;  %v3410_v3 = vsub.f32 %v9062_v10, %v8065_v39 }
 0x7d8   : > { %v5512_v47 = vpop.eup %5511  ;;  %5519 = vrcp.f32 %v2061_v50 }
 0x7d9   : > { %v2106_v25 = vmul.f32 %v5512_v47, %v7721_v13  ;;  %v2105_v58 = vmul.f32 %v5512_v47, %v7719_v12  ;;  %v5514_v40 = vpop.eup %5513  ;;  %v3449_v13 = vmul.f32 1.442695, %v3401_v38  ;;  %v9057_v12 = vld [vmem:[#allocation84_spill] sm:$0xff]  ;;  %v3459_v38 = vmul.f32 1.442695, %v3406_v33 }
 0x7da   : > { %3521 = vadd.xlane.f32.xlu1 %v3520_v21  ;;  %v3405_v50 = vsub.f32 %v9057_v12, %v7958_v23  ;;  %v2112_v47 = vmul.f32 %v5514_v40, %v7729_v49  ;;  %v9060_v23 = vld [vmem:[#allocation88_spill] sm:$0xff] }
 0x7db   : > { %v2138_v43 = vpack.c.bf16 %v2106_v25, %v2103_v41  ;;  %v2137_v46 = vpack.c.bf16 %v2105_v58, %v2102_v36  ;;  %v2111_v41 = vmul.f32 %v5514_v40, %v7727_v8  ;;  %5521 = vpow2.f32 %v3449_v13  ;;  %v9059_v58 = vld [vmem:[#allocation87_spill] sm:$0xff]  ;;  %v9063_v13 = vld [vmem:[#allocation97_spill] sm:$0xff] }
 0x7dc   : > { %5523 = vpow2.f32 %v3451_v0  ;;  %v3408_v15 = vsub.f32 %v9060_v23, %v8051_v1  ;;  %v9064_v0 = vld [vmem:[#allocation98_spill] sm:$0xff] }
 0x7dd   : > { %2267 = vmatprep.mubr.bf16.mxu1 %v2138_v43  ;;  %v3407_v43 = vsub.f32 %v9059_v58, %v8051_v1  ;;  %v3467_v1 = vmul.f32 1.442695, %v3410_v3  ;;  %v3414_v12 = vsub.f32 %v9064_v0, %v8069_v52 }
 0x7de   : > { %2268 = vmatmul.mubr.bf16.gmra.mrb[44].mxu1 %v2137_v46  ;;  %v3457_v46 = vmul.f32 1.442695, %v3405_v50 }
 0x7df   : > { %v3461_v49 = vmul.f32 1.442695, %v3407_v43 }
 0x7e0   : > { %v8098_v51 = vpop.eup %5515  ;;  %5525 = vpow2.f32 %v3457_v46 }
 0x7e1   : > { %v8100_v18 = vpop.eup %5517  ;;  %5527 = vpow2.f32 %v3459_v38 }
 0x7e2   : > { %v5520_v63 = vpop.eup %5519  ;;  %v3526_v19 = vadd.f32 %v8100_v18, %v8098_v51  ;;  %5529 = vpow2.f32 %v3461_v49  ;;  %v8154_v49 = vpop.permute.xlu0 %3621 }
 0x7e3   : > { %v2109_v48 = vmul.f32 %v5520_v63, %v7745_v31  ;;  %v2108_v21 = vmul.f32 %v5520_v63, %v7741_v34  ;;  %v9061_v34 = vld [vmem:[#allocation91_spill] sm:$0xff]  ;;  %v3463_v31 = vmul.f32 1.442695, %v3408_v15  ;;  %v3413_v63 = vsub.f32 %v9063_v13, %v8069_v52  ;;  %v2070_v15 = vpop.xlane.xlu1 %2069 }
 0x7e4   : > { %3527 = vadd.xlane.f32.xlu1 %v3526_v19  ;;  %v3409_v8 = vsub.f32 %v9061_v34, %v8065_v39  ;;  %v3475_v19 = vmul.f32 1.442695, %v3414_v12 }
 0x7e5   : > { %v2140_v25 = vpack.c.bf16 %v2112_v47, %v2109_v48  ;;  %v2139_v36 = vpack.c.bf16 %v2111_v41, %v2108_v21  ;;  %5531 = vpow2.f32 %v3463_v31  ;;  %v8124_v50 = vpop.eup %5521  ;;  %v3473_v33 = vmul.f32 1.442695, %v3413_v63 }
 0x7e6   : > { %v3465_v40 = vmul.f32 1.442695, %v3409_v8  ;;  %v8126_v59 = vpop.eup %5523 }
 0x7e7   : > { %2275 = vmatprep.mubr.bf16.mxu1 %v2140_v25  ;;  %v3505_v39 = vadd.f32 %v8126_v59, %v8124_v50  ;;  %v2076_v34 = vpop.xlane.xlu1 %2075 }
 0x7e8   : > { %2276 = vmatmul.mubr.bf16.gmra.mrb[48].mxu1 %v2139_v36  ;;  %5533 = vpow2.f32 %v3465_v40 }
 0x7e9   : > { %5535 = vpow2.f32 %v3467_v1 }
 0x7ea   : > { %v8128_v48 = vpop.eup %5525  ;;  %5537 = vpow2.f32 %v3473_v33  ;;  %v9065_v33 = vld [vmem:[#allocation100_spill] sm:$0xff] }
 0x7eb   : > { %v8132_v47 = vpop.eup %5527  ;;  %5539 = vpow2.f32 %v3475_v19  ;;  %v2082_v10 = vpop.xlane.xlu1 %2081 }
 0x7ec   : > { %v8134_v21 = vpop.eup %5529  ;;  %v3511_v52 = vadd.f32 %v8132_v47, %v8128_v48  ;;  %5541 = vrcp.f32 %v2070_v15 }
 0x7ef   : > { %v8138_v41 = vpop.eup %5531 }
 0x7f0   : > { %v3514_v36 = vadd.f32 %v8138_v41, %v8134_v21 }
 0x7f2   : > { %v8140_v25 = vpop.eup %5533 }
 0x7f3   : > { %v8144_v58 = vpop.eup %5535 }
 0x7f4   : > { %v8146_v43 = vpop.eup %5537  ;;  %v3517_v46 = vadd.f32 %v8144_v58, %v8140_v25 }
 0x7f5   : > { %v8150_v23 = vpop.eup %5539 }
 0x7f6   : > { %3506 = vadd.xlane.f32.xlu0 %v3505_v39  ;;  %v3523_v38 = vadd.f32 %v8150_v23, %v8146_v43  ;;  %v5542_v40 = vpop.eup %5541 }
 0x7f7   : > { %v2118_v0 = vmul.f32 %v5542_v40, %v7739_v60  ;;  %v2117_v19 = vmul.f32 %v5542_v40, %v9065_v33 }
 0x7fa   : > { %3512 = vadd.xlane.f32.xlu0 %v3511_v52  ;;  %v2771_v52 = vpop.xlane.xlu1 %2770 }
 0x7fe   : > { %3515 = vadd.xlane.f32.xlu0 %v3514_v36 }
 0x802   : > { %3518 = vadd.xlane.f32.xlu0 %v3517_v46 }
 0x806   : > { %3524 = vadd.xlane.f32.xlu0 %v3523_v38 }
 0x80a   : > { %v2067_v8 = vpop.xlane.xlu0 %2066 }
 0x80b   : > { %5543 = vrcp.f32 %v2067_v8  ;;  %v9066_v8 = vld [vmem:[#allocation102_spill] sm:$0xff] }
 0x80c   : > { %5545 = vrcp.f32 %v2076_v34 }
 0x80e   : > { %v2073_v31 = vpop.xlane.xlu0 %2072 }
 0x80f   : > { %5547 = vrcp.f32 %v2073_v31 }
 0x810   : > { %5549 = vrcp.f32 %v2082_v10 }
 0x812   : > { %v2079_v3 = vpop.xlane.xlu0 %2078 }
 0x813   : > { %5551 = vrcp.f32 %v2079_v3 }
 0x815   : > { %v5544_v13 = vpop.eup %5543 }
 0x816   : > { %v2768_v63 = vpop.xlane.xlu0 %2767  ;;  %v2115_v1 = vmul.f32 %v5544_v13, %v7812_v2  ;;  %v2114_v12 = vmul.f32 %v5544_v13, %v7808_v6  ;;  %v5546_v39 = vpop.eup %5545  ;;  %v9067_v13 = vld [vmem:[#allocation101_spill] sm:$0xff] }
 0x817   : > { %5553 = vrcp.f32 %v2768_v63  ;;  %v2124_v31 = vmul.f32 %v5546_v39, %v9066_v8  ;;  %v9068_v63 = vld [vmem:[#allocation104_spill] sm:$0xff]  ;;  %v9070_v8 = vld [vmem:[#allocation106_spill] sm:$0xff] }
 0x818   : > { %v2142_v36 = vpack.c.bf16 %v2118_v0, %v2115_v1  ;;  %v2141_v46 = vpack.c.bf16 %v2117_v19, %v2114_v12  ;;  %5555 = vrcp.f32 %v2771_v52  ;;  %v2123_v1 = vmul.f32 %v5546_v39, %v9067_v13  ;;  %v8166_v12 = vpop.permute.xlu1 %3605  ;;  %v9069_v39 = vld [vmem:[#allocation103_spill] sm:$0xff] }
 0x819   : > { %v5548_v15 = vpop.eup %5547 }
 0x81a   : > { %v2774_v38 = vpop.xlane.xlu0 %2773  ;;  %2283 = vmatprep.mubr.bf16.mxu1 %v2142_v36  ;;  %v2121_v34 = vmul.f32 %v5548_v15, %v7822_v30  ;;  %v5550_v2 = vpop.eup %5549  ;;  %v2120_v6 = vmul.f32 %v5548_v15, %v7817_v54 }
 0x81b   : > { %2284 = vmatmul.mubr.bf16.gmra.mrb[52].mxu1 %v2141_v46  ;;  %v2130_v0 = vmul.f32 %v5550_v2, %v9068_v63 }
 0x81c   : > { %v2144_v60 = vpack.c.bf16 %v2124_v31, %v2121_v34  ;;  %v2143_v30 = vpack.c.bf16 %v2123_v1, %v2120_v6  ;;  %v2795_v54 = vpop.xlane.xlu1 %2794  ;;  %v2129_v34 = vmul.f32 %v5550_v2, %v9069_v39 }
 0x81d   : > { %v5552_v10 = vpop.eup %5551 }
 0x81e   : > { %v2777_v3 = vpop.xlane.xlu0 %2776  ;;  %2291 = vmatprep.mubr.bf16.mxu1 %v2144_v60  ;;  %v2127_v40 = vmul.f32 %v5552_v10, %v7832_v14  ;;  %v2126_v46 = vmul.f32 %v5552_v10, %v7828_v32 }
 0x81f   : > { %5557 = vrcp.f32 %v2777_v3 }
 0x820   : > { %v2146_v19 = vpack.c.bf16 %v2130_v0, %v2127_v40  ;;  %5559 = vrcp.f32 %v2774_v38  ;;  %v2145_v60 = vpack.c.bf16 %v2129_v34, %v2126_v46  ;;  %v2801_v13 = vpop.xlane.xlu1 %2800  ;;  %v9074_v34 = vld [vmem:[#allocation46_spill] sm:$0xff] }
 0x821   : > { %v5554_v52 = vpop.eup %5553 }
 0x822   : > { %v2780_v33 = vpop.xlane.xlu0 %2779  ;;  %v5556_v36 = vpop.eup %5555  ;;  %v2816_v14 = vmul.f32 %v5554_v52, %v7850_v11  ;;  %v2815_v1 = vmul.f32 %v5554_v52, %v7835_v57  ;;  %v9071_v11 = vld [vmem:[#allocation105_spill] sm:$0xff] }
 0x823   : > { %2292 = vmatmul.mubr.bf16.gmra.mrb[56].mxu1 %v2143_v30  ;;  %v2819_v31 = vmul.f32 %v5556_v36, %v9070_v8  ;;  %v2818_v63 = vmul.f32 %v5556_v36, %v9071_v11  ;;  %v9073_v52 = vld [vmem:[#allocation57_spill] sm:$0xff]  ;;  %v9078_v11 = vld [vmem:[#allocation67_spill] sm:$0xff] }
 0x824   : > { %2299 = vmatprep.mubr.bf16.mxu1 %v2146_v19  ;;  %v8176_v0 = vpop.xlane.xlu1 %2806 }
 0x825   : > { %v2863_v3 = vpack.c.bf16 %v2819_v31, %v2816_v14  ;;  %v2862_v30 = vpack.c.bf16 %v2818_v63, %v2815_v1  ;;  %v9075_v31 = vld [vmem:[#allocation58_spill] sm:$0xff]  ;;  %v9079_v63 = vld [vmem:[#allocation65_spill] sm:$0xff] }
 0x826   : > { %v2783_v15 = vpop.xlane.xlu0 %2782 }
 0x827   : > { %5561 = vrcp.f32 %v2783_v15 }
 0x828   : > { %5563 = vrcp.f32 %v2780_v33  ;;  %v9072_v33 = vld [vmem:[#allocation45_spill] sm:$0xff]  ;;  %v8182_v14 = vpop.xlane.xlu1 %2812 }
 0x829   : > { %v5558_v40 = vpop.eup %5557 }
 0x82a   : > { %v2786_v6 = vpop.xlane.xlu0 %2785  ;;  %v5560_v38 = vpop.eup %5559  ;;  %v2825_v10 = vmul.f32 %v5558_v40, %v7888_v62  ;;  %v2824_v62 = vmul.f32 %v5558_v40, %v7886_v7  ;;  %v9076_v7 = vld [vmem:[#allocation63_spill] sm:$0xff] }
 0x82b   : > { %2300 = vmatmul.mubr.bf16.gmra.mrb[60].mxu1 %v2145_v60  ;;  %v2822_v2 = vmul.f32 %v5560_v38, %v7870_v55  ;;  %v2821_v39 = vmul.f32 %v5560_v38, %v7853_v24  ;;  %v9077_v24 = vld [vmem:[#allocation60_spill] sm:$0xff] }
 0x82c   : > { %2958 = vmatprep.mubr.bf16.mxu1 %v2863_v3  ;;  %v8189_v40 = vpop.xlane.xlu1 %3482 }
 0x82d   : > { %v2865_v46 = vpack.c.bf16 %v2825_v10, %v2822_v2  ;;  %v2864_v60 = vpack.c.bf16 %v2824_v62, %v2821_v39  ;;  %v9082_v62 = vld [vmem:[#allocation99_spill] sm:$0xff] }
 0x82e   : > { %v2789_v32 = vpop.xlane.xlu0 %2788 }
 0x82f   : > { %5565 = vrcp.f32 %v2789_v32 }
 0x830   : > { %5567 = vrcp.f32 %v2786_v6 }
 0x831   : > { %v5562_v15 = vpop.eup %5561 }
 0x832   : > { %v2792_v19 = vpop.xlane.xlu0 %2791  ;;  %v5564_v57 = vpop.eup %5563  ;;  %v2831_v55 = vmul.f32 %v5562_v15, %v7918_v17  ;;  %v2830_v38 = vmul.f32 %v5562_v15, %v7906_v20  ;;  %v9080_v20 = vld [vmem:[#allocation72_spill] sm:$0xff]  ;;  %v9081_v15 = vld [vmem:[#allocation71_spill] sm:$0xff] }
 0x833   : > { %2959 = vmatmul.mubr.bf16.vlgmr.msra.gmra.mrb[64].mxu1 %v2862_v30  ;;  %v2828_v8 = vmul.f32 %v5564_v57, %v7902_v42  ;;  %5569 = vrcp.f32 %v2792_v19  ;;  %v2827_v10 = vmul.f32 %v5564_v57, %v7873_v28 }
 0x834   : > { %4846 = vmatpush3.bf16.msra.mxu1 %v9072_v33  ;;  %2966 = vmatprep.mubr.bf16.mxu1 %v2865_v46  ;;  %5571 = vrcp.f32 %v2795_v54  ;;  %v3492_v33 = vpop.xlane.xlu1 %3491 }
 0x835   : > { %4847 = vmatprep.subr.bf16.mxu1 %v9073_v52  ;;  %v2867_v3 = vpack.c.bf16 %v2831_v55, %v2828_v8  ;;  %v2866_v2 = vpack.c.bf16 %v2830_v38, %v2827_v10  ;;  %v9086_v10 = vld [vmem:[#allocation52_spill] sm:$0xff] }
 0x836   : > { %v2798_v36 = vpop.xlane.xlu0 %2797 }
 0x837   : > { %5573 = vrcp.f32 %v2798_v36  ;;  %v9083_v36 = vld [vmem:[#allocation61_spill] sm:$0xff] }
 0x838   : > { %4848 = vmatpush3.bf16.msra.mxu1 %v9074_v34  ;;  %5575 = vrcp.f32 %v2801_v13  ;;  %v3498_v13 = vpop.xlane.xlu1 %3497 }
 0x839   : > { %4849 = vmatprep.subr.bf16.mxu1 %v9075_v31  ;;  %v5566_v1 = vpop.eup %5565 }
 0x83a   : > { %v2804_v6 = vpop.xlane.xlu0 %2803  ;;  %v5568_v17 = vpop.eup %5567  ;;  %v2837_v32 = vmul.f32 %v5566_v1, %v7954_v5  ;;  %v2836_v28 = vmul.f32 %v5566_v1, %v7922_v16 }
 0x83b   : > { %2967 = vmatmul.mubr.bf16.gmra.mrb[68].mxu1 %v2864_v60  ;;  %v2834_v54 = vmul.f32 %v5568_v17, %v7940_v35  ;;  %v2833_v52 = vmul.f32 %v5568_v17, %v7938_v44  ;;  %5577 = vrcp.f32 %v2804_v6  ;;  %v9084_v6 = vld [vmem:[#allocation59_spill] sm:$0xff] }
 0x83c   : > { %4850 = vmatpush3.bf16.msra.mxu1 %v9076_v7  ;;  %2974 = vmatprep.mubr.bf16.mxu1 %v2867_v3  ;;  %5579 = vrcp.f32 %v8176_v0  ;;  %v3504_v3 = vpop.xlane.xlu1 %3503 }
 0x83d   : > { %4851 = vmatprep.subr.bf16.mxu1 %v9077_v24  ;;  %v2869_v19 = vpack.c.bf16 %v2837_v32, %v2834_v54  ;;  %v5570_v46 = vpop.eup %5569  ;;  %v2868_v39 = vpack.c.bf16 %v2836_v28, %v2833_v52  ;;  %v9087_v54 = vld [vmem:[#allocation70_spill] sm:$0xff] }
 0x83e   : > { %v2810_v42 = vpop.xlane.xlu0 %2809  ;;  %v5572_v5 = vpop.eup %5571  ;;  %v2840_v35 = vmul.f32 %v5570_v46, %v7980_v45  ;;  %v2839_v44 = vmul.f32 %v5570_v46, %v7976_v37 }
 0x83f   : > { %v2843_v55 = vmul.f32 %v5572_v5, %v9083_v36  ;;  %v2842_v1 = vmul.f32 %v5572_v5, %v9084_v6  ;;  %5581 = vrcp.f32 %v2810_v42  ;;  %v9091_v36 = vld [vmem:[#allocation62_spill] sm:$0xff]  ;;  %v9095_v6 = vld [vmem:[#allocation64_spill] sm:$0xff] }
 0x840   : > { %4852 = vmatpush3.bf16.msra.mxu1 %v9078_v11  ;;  %5583 = vrcp.f32 %v8182_v14 }
 0x841   : > { %4853 = vmatprep.subr.bf16.mxu1 %v9079_v63  ;;  %v2871_v8 = vpack.c.bf16 %v2843_v55, %v2840_v35  ;;  %v5574_v31 = vpop.eup %5573  ;;  %v2870_v17 = vpack.c.bf16 %v2842_v1, %v2839_v44 }
 0x842   : > { %v3486_v30 = vpop.xlane.xlu0 %3485  ;;  %v5576_v16 = vpop.eup %5575  ;;  %v2846_v60 = vmul.f32 %v5574_v31, %v7993_v53  ;;  %v2845_v53 = vmul.f32 %v5574_v31, %v7988_v29  ;;  %v9088_v29 = vld [vmem:[#allocation69_spill] sm:$0xff] }
 0x843   : > { %2975 = vmatmul.mubr.bf16.gmra.mrb[72].mxu1 %v2866_v2  ;;  %v2848_v11 = vmul.f32 %v5576_v16, %v9086_v10  ;;  %5585 = vrcp.f32 %v3486_v30  ;;  %v9099_v10 = vld [vmem:[#allocation68_spill] sm:$0xff] }
 0x844   : > { %4854 = vmatpush3.bf16.msra.mxu1 %v9080_v20  ;;  %2982 = vmatprep.mubr.bf16.mxu1 %v2869_v19  ;;  %5587 = vrcp.f32 %v8189_v40  ;;  %v9090_v40 = vld [vmem:[#allocation55_spill] sm:$0xff] }
 0x845   : > { %4855 = vmatprep.subr.bf16.mxu1 %v9081_v15  ;;  %v5578_v0 = vpop.eup %5577  ;;  %v2872_v63 = vpack.c.bf16 %v2848_v11, %v2845_v53 }
 0x846   : > { %v3489_v57 = vpop.xlane.xlu0 %3488  ;;  %v5580_v37 = vpop.eup %5579  ;;  %v2852_v32 = vmul.f32 %v5578_v0, %v8005_v26  ;;  %v2851_v46 = vmul.f32 %v5578_v0, %v7998_v22  ;;  %v9089_v26 = vld [vmem:[#allocation51_spill] sm:$0xff] }
 0x847   : > { %v2855_v42 = vmul.f32 %v5580_v37, %v9087_v54  ;;  %v2854_v5 = vmul.f32 %v5580_v37, %v9088_v29  ;;  %5589 = vrcp.f32 %v3489_v57  ;;  %v9098_v37 = vld [vmem:[#allocation81_spill] sm:$0xff] }
 0x848   : > { %4856 = vmatpush3.bf16.msra.mxu1 %v9082_v62  ;;  %5591 = vrcp.f32 %v3492_v33  ;;  %v9094_v33 = vld [vmem:[#allocation56_spill] sm:$0xff] }
 0x849   : > { %4857 = vmatprep.subr.bf16.mxu1 %v8154_v49  ;;  %v9085_v49 = vld [vmem:[#allocation54_spill] sm:$0xff]  ;;  %v2875_v2 = vpack.c.bf16 %v2855_v42, %v2852_v32  ;;  %v5582_v19 = vpop.eup %5581  ;;  %v2874_v28 = vpack.c.bf16 %v2854_v5, %v2851_v46 }
 0x84a   : > { %v3495_v34 = vpop.xlane.xlu0 %3494  ;;  %v2849_v7 = vmul.f32 %v5576_v16, %v9085_v49  ;;  %v5584_v14 = vpop.eup %5583  ;;  %v2858_v20 = vmul.f32 %v5582_v19, %v8014_v9  ;;  %v2857_v62 = vmul.f32 %v5582_v19, %v9090_v40  ;;  %v9096_v49 = vld [vmem:[#allocation75_spill] sm:$0xff] }
 0x84b   : > { %2983 = vmatmul.mubr.bf16.gmra.mrb[76].mxu1 %v2868_v39  ;;  %v2861_v15 = vmul.f32 %v5584_v14, %v9089_v26  ;;  %v9092_v39 = vld [vmem:[#allocation30_spill] sm:$0xff]  ;;  %5593 = vrcp.f32 %v3495_v34 }
 0x84c   : > { %4858 = vmatpush3.bf16.msra.mxu1 %v8166_v12  ;;  %2990 = vmatprep.mubr.bf16.mxu1 %v2871_v8  ;;  %v2873_v38 = vpack.c.bf16 %v2849_v7, %v2846_v60  ;;  %v3608_v12 = vpop.permute.xlu1 %3607  ;;  %v2860_v22 = vmul.f32 %v5584_v14, %v9092_v39  ;;  %v9093_v8 = vld [vmem:[#allocation53_spill] sm:$0xff]  ;;  %5595 = vrcp.f32 %v3498_v13  ;;  %v9102_v26 = vld [vmem:[#allocation66_spill] sm:$0xff] }
 0x84d   : > { %v2877_v35 = vpack.c.bf16 %v2861_v15, %v2858_v20  ;;  %v5586_v30 = vpop.eup %5585  ;;  %v9101_v14 = vld [vmem:[#allocation37_spill] sm:$0xff] }
 0x84e   : > { %v3501_v45 = vpop.xlane.xlu0 %3500  ;;  %v5588_v52 = vpop.eup %5587  ;;  %v3534_v55 = vmul.f32 %v5586_v30, %v9091_v36  ;;  %v2876_v31 = vpack.c.bf16 %v2860_v22, %v2857_v62  ;;  %v3533_v60 = vmul.f32 %v5586_v30, %v9094_v33  ;;  %v9105_v62 = vld [vmem:[#allocation43_spill] sm:$0xff] }
 0x84f   : > { %v3531_v9 = vmul.f32 %v5588_v52, %v9093_v8  ;;  %v3530_v7 = vmul.f32 %v5588_v52, %v9096_v49  ;;  %5597 = vrcp.f32 %v3501_v45  ;;  %v9104_v52 = vld [vmem:[#allocation33_spill] sm:$0xff] }
 0x850   : > { %5599 = vrcp.f32 %v3504_v3 }
 0x851   : > { %v3578_v16 = vpack.c.bf16 %v3534_v55, %v3531_v9  ;;  %v5590_v44 = vpop.eup %5589  ;;  %v9106_v9 = vld [vmem:[#allocation28_spill] sm:$0xff] }
 0x852   : > { %v3624_v24 = vpop.permute.xlu0 %3623  ;;  %v5592_v57 = vpop.eup %5591  ;;  %v3537_v1 = vmul.f32 %v5590_v44, %v9095_v6  ;;  %v3536_v53 = vmul.f32 %v5590_v44, %v9098_v37 }
 0x853   : > { %2991 = vmatmul.mubr.bf16.gmra.mrb[80].mxu1 %v2870_v17  ;;  %4859 = vmatprep.subr.bf16.mxu1 %v3624_v24  ;;  %v9097_v17 = vld [vmem:[#allocation36_spill] sm:$0xff] }
 0x854   : > { %2998 = vmatprep.mubr.bf16.mxu1 %v2873_v38  ;;  %4860 = vmatpush3.bf16.msra.mxu1 %v3608_v12  ;;  %v3540_v24 = vmul.f32 %v5592_v57, %v9097_v17  ;;  %v3577_v38 = vpack.c.bf16 %v3533_v60, %v3530_v7  ;;  %v9107_v60 = vld [vmem:[#allocation42_spill] sm:$0xff] }
 0x855   : > { %v5594_v12 = vpop.eup %5593 }
 0x856   : > { %v3580_v0 = vpack.c.bf16 %v3540_v24, %v3537_v1  ;;  %v5596_v34 = vpop.eup %5595  ;;  %v3543_v11 = vmul.f32 %v5594_v12, %v9099_v10  ;;  %v3542_v15 = vmul.f32 %v5594_v12, %v9102_v26 }
 0x857   : > { %v3546_v45 = vmul.f32 %v5596_v34, %v9101_v14  ;;  %v3545_v40 = vmul.f32 %v5596_v34, %v9104_v52 }
 0x859   : > { %v3582_v20 = vpack.c.bf16 %v3546_v45, %v3543_v11  ;;  %v5598_v29 = vpop.eup %5597  ;;  %v3581_v55 = vpack.c.bf16 %v3545_v40, %v3542_v15 }
 0x85a   : > { %v5600_v5 = vpop.eup %5599 }
 0x85b   : > { %2999 = vmatmul.mubr.bf16.gmra.mrb[84].mxu1 %v2872_v63  ;;  %v9100_v63 = vld [vmem:[#allocation35_spill] sm:$0xff]  ;;  %v3552_v36 = vmul.f32 %v5600_v5, %v9105_v62  ;;  %v3551_v6 = vmul.f32 %v5600_v5, %v9107_v60 }
 0x85c   : > { %3006 = vmatprep.mubr.bf16.mxu1 %v2875_v2  ;;  %v3539_v2 = vmul.f32 %v5592_v57, %v9100_v63 }
 0x85e   : > { %v3579_v3 = vpack.c.bf16 %v3539_v2, %v3536_v53 }
 0x863   : > { %3007 = vmatmul.mubr.bf16.gmra.mrb[88].mxu1 %v2874_v28  ;;  %v9103_v28 = vld [vmem:[#allocation73_spill] sm:$0xff]  ;;  %v3510_v30 = vpop.xlane.xlu1 %3509 }
 0x864   : > { %3014 = vmatprep.mubr.bf16.mxu1 %v2877_v35  ;;  %v3549_v35 = vmul.f32 %v5598_v29, %v9103_v28  ;;  %5601 = vrcp.f32 %v3510_v30 }
 0x866   : > { %v3584_v39 = vpack.c.bf16 %v3552_v36, %v3549_v35 }
 0x867   : > { %v3522_v17 = vpop.xlane.xlu1 %3521 }
 0x86b   : > { %3015 = vmatmul.mubr.bf16.gmra.mrb[92].mxu1 %v2876_v31  ;;  %v3548_v31 = vmul.f32 %v5598_v29, %v9106_v9 }
 0x86c   : > { %3673 = vmatprep.mubr.bf16.mxu1 %v3578_v16 }
 0x86d   : > { %v3583_v7 = vpack.c.bf16 %v3551_v6, %v3548_v31 }
 0x873   : > { %3674 = vmatmul.mubr.bf16.vlgmr.msra.gmra.mrb[96].mxu1 %v3577_v38  ;;  %v5602_v38 = vpop.eup %5601 }
 0x874   : > { %3681 = vmatprep.mubr.bf16.mxu1 %v3580_v0  ;;  %v3557_v53 = vmul.f32 %v5602_v38, %v8071_v61 }
 0x875   : > { %v4669_v13 = vpop.f32.mrb[32].mxu1 }
 0x876   : > { %v4670_v32 = vpop.f32.mrb[33].mxu1 }
 0x877   : > { %v4671_v54 = vadd.f32 %v4670_v32, %v4669_v13  ;;  %v4672_v42 = vpop.f32.mrb[34].mxu1  ;;  %v3558_v13 = vmul.f32 %v5602_v38, %v8077_v56  ;;  %v3528_v32 = vpop.xlane.xlu1 %3527 }
 0x878   : > { %v4673_v19 = vpop.f32.mrb[35].mxu1 }
 0x879   : > { %v4674_v46 = vadd.f32 %v4673_v19, %v4672_v42  ;;  %2324 = vrot.lane.b32.xlu0 %v4671_v54, %s5965_s8 }
 0x87b   : > { %2326 = vrot.lane.b32.xlu1 %v4674_v46, %s5965_s8  ;;  %3682 = vmatmul.mubr.bf16.gmra.mrb[100].mxu1 %v3579_v3 }
 0x87c   : > { %3689 = vmatprep.mubr.bf16.mxu1 %v3582_v20 }
 0x883   : > { %v3507_v22 = vpop.xlane.xlu0 %3506  ;;  %3690 = vmatmul.mubr.bf16.gmra.mrb[104].mxu1 %v3581_v55  ;;  %v4675_v8 = vpop.f32.mrb[36].mxu1 }
 0x884   : > { %5603 = vrcp.f32 %v3507_v22  ;;  %3697 = vmatprep.mubr.bf16.mxu1 %v3584_v39  ;;  %v4676_v16 = vpop.f32.mrb[37].mxu1 }
 0x885   : > { %v4677_v44 = vadd.f32 %v4676_v16, %v4675_v8  ;;  %v4678_v57 = vpop.f32.mrb[38].mxu1 }
 0x886   : > { %v4679_v1 = vpop.f32.mrb[39].mxu1 }
 0x887   : > { %v3513_v33 = vpop.xlane.xlu0 %3512  ;;  %v4680_v49 = vadd.f32 %v4679_v1, %v4678_v57  ;;  %2328 = vrot.lane.b32.xlu0 %v4677_v44, %s5965_s8 }
 0x888   : > { %5605 = vrcp.f32 %v3513_v33 }
 0x889   : > { %2330 = vrot.lane.b32.xlu1 %v4680_v49, %s5965_s8 }
 0x88b   : > { %v3516_v24 = vpop.xlane.xlu0 %3515  ;;  %3698 = vmatmul.mubr.bf16.gmra.mrb[108].mxu1 %v3583_v7 }
 0x88c   : > { %5607 = vrcp.f32 %v3516_v24 }
 0x88d   : > { %5609 = vrcp.f32 %v3522_v17 }
 0x88e   : > { %v5604_v0 = vpop.eup %5603 }
 0x88f   : > { %v3519_v12 = vpop.xlane.xlu0 %3518  ;;  %v3555_v34 = vmul.f32 %v5604_v0, %v8126_v59  ;;  %v3554_v37 = vmul.f32 %v5604_v0, %v8124_v50 }
 0x890   : > { %5611 = vrcp.f32 %v3519_v12 }
 0x891   : > { %v3586_v10 = vpack.c.bf16 %v3558_v13, %v3555_v34  ;;  %v3585_v11 = vpack.c.bf16 %v3557_v53, %v3554_v37  ;;  %5613 = vrcp.f32 %v3528_v32 }
 0x892   : > { %v5606_v42 = vpop.eup %5605 }
 0x893   : > { %v3525_v54 = vpop.xlane.xlu0 %3524  ;;  %3705 = vmatprep.mubr.bf16.mxu1 %v3586_v10  ;;  %v3561_v2 = vmul.f32 %v5606_v42, %v8132_v47  ;;  %v3560_v56 = vmul.f32 %v5606_v42, %v8128_v48 }
 0x894   : > { %5615 = vrcp.f32 %v3525_v54  ;;  %3706 = vmatmul.mubr.bf16.gmra.mrb[112].mxu1 %v3585_v11 }
 0x896   : > { %v5608_v63 = vpop.eup %5607 }
 0x897   : > { %v3564_v59 = vmul.f32 %v5608_v63, %v8138_v41  ;;  %v3563_v50 = vmul.f32 %v5608_v63, %v8134_v21  ;;  %v5610_v61 = vpop.eup %5609 }
 0x898   : > { %v3570_v3 = vmul.f32 %v5610_v61, %v8083_v27  ;;  %v3569_v21 = vmul.f32 %v5610_v61, %v8081_v4 }
 0x899   : > { %v3588_v19 = vpack.c.bf16 %v3564_v59, %v3561_v2  ;;  %v3587_v14 = vpack.c.bf16 %v3563_v50, %v3560_v56 }
 0x89a   : > { %v5612_v45 = vpop.eup %5611 }
 0x89b   : > { %3713 = vmatprep.mubr.bf16.mxu1 %v3588_v19  ;;  %v3567_v46 = vmul.f32 %v5612_v45, %v8144_v58  ;;  %v5614_v20 = vpop.eup %5613  ;;  %v3566_v47 = vmul.f32 %v5612_v45, %v8140_v25 }
 0x89c   : > { %3714 = vmatmul.mubr.bf16.gmra.mrb[116].mxu1 %v3587_v14  ;;  %v3576_v41 = vmul.f32 %v5614_v20, %v8100_v18  ;;  %v3575_v27 = vmul.f32 %v5614_v20, %v8098_v51 }
 0x89d   : > { %v3590_v29 = vpack.c.bf16 %v3570_v3, %v3567_v46  ;;  %v3589_v26 = vpack.c.bf16 %v3569_v21, %v3566_v47 }
 0x89e   : > { %v5616_v5 = vpop.eup %5615 }
 0x89f   : > { %3721 = vmatprep.mubr.bf16.mxu1 %v3590_v29  ;;  %v3573_v48 = vmul.f32 %v5616_v5, %v8150_v23  ;;  %v3572_v58 = vmul.f32 %v5616_v5, %v8146_v43 }
 0x8a1   : > { %v3592_v15 = vpack.c.bf16 %v3576_v41, %v3573_v48  ;;  %v3591_v30 = vpack.c.bf16 %v3575_v27, %v3572_v58  ;;  %v5225_v58 = vld [vmem:[#allocation11] sm:$0xff]  }
 0x8a2   : > { %4957 = vmatprep.subr.bf16.mxu0 %v5225_v58  ;;  %5005 = vmatprep.subr.bf16.mxu1 %v5225_v58 }
 0x8a3   : > { %4958 = vmatpush3.bf16.msra.mxu0 %v5225_v58  ;;  %5013 = vmatpush3.bf16.msra.mxu1 %v5225_v58 }
 0x8a4   : > { %3722 = vmatmul.mubr.bf16.gmra.mrb[120].mxu1 %v3589_v26 }
 0x8a5   : > { %3729 = vmatprep.mubr.bf16.mxu1 %v3592_v15 }
 0x8a9   : > { %v4681_v28 = vpop.f32.mrb[40].mxu1 }
 0x8aa   : > { %v4682_v35 = vpop.f32.mrb[41].mxu1 }
 0x8ab   : > { %v4683_v52 = vadd.f32 %v4682_v35, %v4681_v28  ;;  %v4684_v25 = vpop.f32.mrb[42].mxu1 }
 0x8ac   : > { %v4685_v40 = vpop.f32.mrb[43].mxu1  ;;  %3730 = vmatmul.mubr.bf16.gmra.mrb[124].mxu1 %v3591_v30 }
 0x8ad   : > { %v4686_v23 = vadd.f32 %v4685_v40, %v4684_v25  ;;  %2332 = vrot.lane.b32.xlu0 %v4683_v52, %s5965_s8 }
 0x8af   : > { %2334 = vrot.lane.b32.xlu1 %v4686_v23, %s5965_s8 }
 0x8b1   : > { %v4687_v4 = vpop.f32.mrb[44].mxu1 }
 0x8b2   : > { %v4688_v18 = vpop.f32.mrb[45].mxu1 }
 0x8b3   : > { %v4689_v62 = vadd.f32 %v4688_v18, %v4687_v4  ;;  %v4690_v36 = vpop.f32.mrb[46].mxu1  ;;  %v5226_v4 = vld [vmem:[#allocation11 + $0x8] sm:$0xff]  }
 0x8b4   : > { %v4691_v55 = vpop.f32.mrb[47].mxu1  ;;  %4959 = vmatprep.subr.bf16.mxu0 %v5226_v4  ;;  %5006 = vmatprep.subr.bf16.mxu1 %v5226_v4 }
 0x8b5   : > { %v4692_v43 = vadd.f32 %v4691_v55, %v4690_v36  ;;  %2336 = vrot.lane.b32.xlu0 %v4689_v62, %s5965_s8  ;;  %4960 = vmatpush3.bf16.msra.mxu0 %v5226_v4 }
 0x8b6   : > { %5014 = vmatpush3.bf16.msra.mxu1 %v5226_v4 }
 0x8b7   : > { %2338 = vrot.lane.b32.xlu1 %v4692_v43, %s5965_s8 }
 0x8bb   : > { %v4693_v51 = vpop.f32.mrb[48].mxu1 }
 0x8bc   : > { %v4694_v39 = vpop.f32.mrb[49].mxu1 }
 0x8bd   : > { %v4695_v22 = vadd.f32 %v4694_v39, %v4693_v51  ;;  %v4696_v8 = vpop.f32.mrb[50].mxu1 }
 0x8be   : > { %v4697_v9 = vpop.f32.mrb[51].mxu1 }
 0x8bf   : > { %v4698_v31 = vadd.f32 %v4697_v9, %v4696_v8  ;;  %2340 = vrot.lane.b32.xlu1 %v4695_v22, %s5965_s8  ;;  %v5227_v22 = vld [vmem:[#allocation11 + $0x10] sm:$0xff]  }
 0x8c0   : > { %4961 = vmatprep.subr.bf16.mxu0 %v5227_v22  ;;  %5007 = vmatprep.subr.bf16.mxu1 %v5227_v22 }
 0x8c1   : > { %4962 = vmatpush3.bf16.msra.mxu0 %v5227_v22  ;;  %5015 = vmatpush3.bf16.msra.mxu1 %v5227_v22 }
 0x8c3   : > { %2342 = vrot.lane.b32.xlu1 %v4698_v31, %s5965_s8 }
 0x8eb   : > { %v2325_v16 = vpop.permute.xlu0 %2324 }
 0x8ec   : > { %2373 = vst.msk [vmem:[#allocation4] sm:$0xff] %vm2372_vm1, %v2325_v16 }
 0x8ed   : > { %v2327_v44 = vpop.permute.xlu1 %2326 }
 0x8ee   : > { %2374 = vst.msk [vmem:[#allocation4 + $0x8] sm:$0xff] %vm2372_vm1, %v2327_v44  ;;  %v4699_v57 = vpop.f32.mrb[52].mxu1 }
 0x8ef   : > { %v4700_v33 = vpop.f32.mrb[53].mxu1 }
 0x8f0   : > { %v4701_v60 = vadd.f32 %v4700_v33, %v4699_v57  ;;  %v4702_v6 = vpop.f32.mrb[54].mxu1 }
 0x8f1   : > { %v4703_v1 = vpop.f32.mrb[55].mxu1 }
 0x8f2   : > { %v4704_v49 = vadd.f32 %v4703_v1, %v4702_v6  ;;  %2344 = vrot.lane.b32.xlu0 %v4701_v60, %s5965_s8  ;;  %v5228_v6 = vld [vmem:[#allocation11 + $0x18] sm:$0xff]  }
 0x8f3   : > { %4963 = vmatprep.subr.bf16.mxu0 %v5228_v6  ;;  %5008 = vmatprep.subr.bf16.mxu1 %v5228_v6 }
 0x8f4   : > { %2346 = vrot.lane.b32.xlu1 %v4704_v49, %s5965_s8  ;;  %4964 = vmatpush3.bf16.msra.mxu0 %v5228_v6 }
 0x8f5   : > { %5016 = vmatpush3.bf16.msra.mxu1 %v5228_v6 }
 0x8f6   : > { %v4705_v7 = vpop.f32.mrb[56].mxu1 }
 0x8f7   : > { %v4706_v17 = vpop.f32.mrb[57].mxu1 }
 0x8f8   : > { %v4707_v24 = vadd.f32 %v4706_v17, %v4705_v7  ;;  %v4708_v38 = vpop.f32.mrb[58].mxu1 }
 0x8f9   : > { %v4709_v0 = vpop.f32.mrb[59].mxu1  ;;  %v2329_v34 = vpop.permute.xlu0 %2328 }
 0x8fa   : > { %v4710_v12 = vadd.f32 %v4709_v0, %v4708_v38  ;;  %2348 = vrot.lane.b32.xlu0 %v4707_v24, %s5965_s8  ;;  %2375 = vst.msk [vmem:[#allocation4 + $0x10] sm:$0xff] %vm2372_vm1, %v2329_v34  ;;  %v5229_v0 = vld [vmem:[#allocation11 + $0x20] sm:$0xff]  }
 0x8fb   : > { %v2331_v13 = vpop.permute.xlu1 %2330  ;;  %4965 = vmatprep.subr.bf16.mxu0 %v5229_v0  ;;  %5009 = vmatprep.subr.bf16.mxu1 %v5229_v0 }
 0x8fc   : > { %2350 = vrot.lane.b32.xlu1 %v4710_v12, %s5965_s8  ;;  %2376 = vst.msk [vmem:[#allocation4 + $0x18] sm:$0xff] %vm2372_vm1, %v2331_v13  ;;  %4966 = vmatpush3.bf16.msra.mxu0 %v5229_v0 }
 0x8fd   : > { %5017 = vmatpush3.bf16.msra.mxu1 %v5229_v0 }
 0x8fe   : > { %v4711_v37 = vpop.f32.mrb[60].mxu1 }
 0x8ff   : > { %v4712_v53 = vpop.f32.mrb[61].mxu1 }
 0x900   : > { %v4713_v32 = vadd.f32 %v4712_v53, %v4711_v37  ;;  %v4714_v10 = vpop.f32.mrb[62].mxu1  ;;  %v5230_v53 = vld [vmem:[#allocation11 + $0x28] sm:$0xff]  }
 0x901   : > { %v4715_v11 = vpop.f32.mrb[63].mxu1  ;;  %4967 = vmatprep.subr.bf16.mxu0 %v5230_v53  ;;  %5010 = vmatprep.subr.bf16.mxu1 %v5230_v53 }
 0x902   : > { %v4716_v54 = vadd.f32 %v4715_v11, %v4714_v10  ;;  %2352 = vrot.lane.b32.xlu0 %v4713_v32, %s5965_s8  ;;  %v5231_v11 = vld [vmem:[#allocation11 + $0x30] sm:$0xff]   ;;  %4968 = vmatpush3.bf16.msra.mxu0 %v5230_v53 }
 0x903   : > { %5018 = vmatpush3.bf16.msra.mxu1 %v5230_v53  ;;  %4969 = vmatprep.subr.bf16.mxu0 %v5231_v11 }
 0x904   : > { %2354 = vrot.lane.b32.xlu1 %v4716_v54, %s5965_s8  ;;  %5011 = vmatprep.subr.bf16.mxu1 %v5231_v11 }
 0x906   : > { %v4765_v42 = vpop.f32.mrb[64].mxu1  ;;  %4970 = vmatpush3.bf16.msra.mxu0 %v5231_v11 }
 0x907   : > { %v4766_v63 = vpop.f32.mrb[65].mxu1  ;;  %5019 = vmatpush3.bf16.msra.mxu1 %v5231_v11 }
 0x908   : > { %v4767_v2 = vadd.f32 %v4766_v63, %v4765_v42  ;;  %v4768_v59 = vpop.f32.mrb[66].mxu1 }
 0x909   : > { %v4769_v56 = vpop.f32.mrb[67].mxu1 }
 0x90a   : > { %v4770_v50 = vadd.f32 %v4769_v56, %v4768_v59  ;;  %3039 = vrot.lane.b32.xlu0 %v4767_v2, %s5964_s7  ;;  %v5232_v59 = vld [vmem:[#allocation11 + $0x38] sm:$0xff]  }
 0x90b   : > { %4971 = vmatprep.subr.bf16.mxu0 %v5232_v59  ;;  %5012 = vmatprep.subr.bf16.mxu1 %v5232_v59 }
 0x90c   : > { %3041 = vrot.lane.b32.xlu1 %v4770_v50, %s5964_s7  ;;  %4972 = vmatpush3.bf16.msra.mxu0 %v5232_v59 }
 0x90d   : > { %5020 = vmatpush3.bf16.msra.mxu1 %v5232_v59 }
 0x90e   : > { %v4771_v61 = vpop.f32.mrb[68].mxu1 }
 0x90f   : > { %v4772_v19 = vpop.f32.mrb[69].mxu1 }
 0x910   : > { %v4773_v14 = vadd.f32 %v4772_v19, %v4771_v61  ;;  %v4774_v45 = vpop.f32.mrb[70].mxu1 }
 0x911   : > { %v4775_v46 = vpop.f32.mrb[71].mxu1 }
 0x912   : > { %v4776_v3 = vadd.f32 %v4775_v46, %v4774_v45  ;;  %3043 = vrot.lane.b32.xlu0 %v4773_v14, %s5964_s7 }
 0x914   : > { %3045 = vrot.lane.b32.xlu1 %v4776_v3, %s5964_s7 }
 0x916   : > { %v4777_v20 = vpop.f32.mrb[72].mxu1 }
 0x917   : > { %v4778_v29 = vpop.f32.mrb[73].mxu1 }
 0x918   : > { %v4779_v5 = vadd.f32 %v4778_v29, %v4777_v20  ;;  %v4780_v47 = vpop.f32.mrb[74].mxu1 }
 0x919   : > { %v4781_v48 = vpop.f32.mrb[75].mxu1 }
 0x91a   : > { %v4782_v21 = vadd.f32 %v4781_v48, %v4780_v47  ;;  %3047 = vrot.lane.b32.xlu0 %v4779_v5, %s5964_s7 }
 0x91c   : > { %3049 = vrot.lane.b32.xlu1 %v4782_v21, %s5964_s7 }
 0x91e   : > { %v4783_v41 = vpop.f32.mrb[76].mxu1 }
 0x91f   : > { %v2333_v26 = vpop.permute.xlu0 %2332  ;;  %v4784_v15 = vpop.f32.mrb[77].mxu1 }
 0x920   : > { %2377 = vst.msk [vmem:[#allocation4 + $0x20] sm:$0xff] %vm2372_vm1, %v2333_v26  ;;  %v4785_v27 = vadd.f32 %v4784_v15, %v4783_v41  ;;  %v4786_v28 = vpop.f32.mrb[78].mxu1 }
 0x921   : > { %v4787_v35 = vpop.f32.mrb[79].mxu1  ;;  %v2335_v30 = vpop.permute.xlu1 %2334 }
 0x922   : > { %v4788_v52 = vadd.f32 %v4787_v35, %v4786_v28  ;;  %2378 = vst.msk [vmem:[#allocation4 + $0x28] sm:$0xff] %vm2372_vm1, %v2335_v30  ;;  %3051 = vrot.lane.b32.xlu0 %v4785_v27, %s5964_s7 }
 0x924   : > { %3053 = vrot.lane.b32.xlu1 %v4788_v52, %s5964_s7 }
 0x926   : > { %v4789_v25 = vpop.f32.mrb[80].mxu1 }
 0x927   : > { %v2337_v40 = vpop.permute.xlu0 %2336  ;;  %v4790_v23 = vpop.f32.mrb[81].mxu1 }
 0x928   : > { %2379 = vst.msk [vmem:[#allocation4 + $0x30] sm:$0xff] %vm2372_vm1, %v2337_v40  ;;  %v4791_v18 = vadd.f32 %v4790_v23, %v4789_v25  ;;  %v4792_v62 = vpop.f32.mrb[82].mxu1 }
 0x929   : > { %v4793_v36 = vpop.f32.mrb[83].mxu1  ;;  %v2339_v55 = vpop.permute.xlu1 %2338 }
 0x92a   : > { %v4794_v43 = vadd.f32 %v4793_v36, %v4792_v62  ;;  %2380 = vst.msk [vmem:[#allocation4 + $0x38] sm:$0xff] %vm2372_vm1, %v2339_v55  ;;  %3055 = vrot.lane.b32.xlu0 %v4791_v18, %s5964_s7 }
 0x92c   : > { %3057 = vrot.lane.b32.xlu1 %v4794_v43, %s5964_s7 }
 0x92e   : > { %v4795_v51 = vpop.f32.mrb[84].mxu1 }
 0x92f   : > { %v4796_v39 = vpop.f32.mrb[85].mxu1 }
 0x930   : > { %v4797_v8 = vadd.f32 %v4796_v39, %v4795_v51  ;;  %v4798_v9 = vpop.f32.mrb[86].mxu1 }
 0x931   : > { %v2341_v31 = vpop.permute.xlu1 %2340  ;;  %v4799_v16 = vpop.f32.mrb[87].mxu1 }
 0x932   : > { %2381 = vst.msk [vmem:[#allocation4 + $0x40] sm:$0xff] %vm2372_vm1, %v2341_v31  ;;  %v4800_v44 = vadd.f32 %v4799_v16, %v4798_v9  ;;  %3059 = vrot.lane.b32.xlu0 %v4797_v8, %s5964_s7 }
 0x934   : > { %3061 = vrot.lane.b32.xlu1 %v4800_v44, %s5964_s7 }
 0x935   : > { %v2343_v57 = vpop.permute.xlu1 %2342 }
 0x936   : > { %2382 = vst.msk [vmem:[#allocation4 + $0x48] sm:$0xff] %vm2372_vm1, %v2343_v57  ;;  %v4801_v33 = vpop.f32.mrb[88].mxu1 }
 0x937   : > { %v4802_v60 = vpop.f32.mrb[89].mxu1 }
 0x938   : > { %v4803_v1 = vadd.f32 %v4802_v60, %v4801_v33  ;;  %v4804_v49 = vpop.f32.mrb[90].mxu1 }
 0x939   : > { %v4805_v7 = vpop.f32.mrb[91].mxu1 }
 0x93a   : > { %v4806_v17 = vadd.f32 %v4805_v7, %v4804_v49  ;;  %3063 = vrot.lane.b32.xlu0 %v4803_v1, %s5964_s7 }
 0x93c   : > { %3065 = vrot.lane.b32.xlu1 %v4806_v17, %s5964_s7 }
 0x93e   : > { %v4807_v24 = vpop.f32.mrb[92].mxu1 }
 0x93f   : > { %v4808_v38 = vpop.f32.mrb[93].mxu1 }
 0x940   : > { %v4809_v12 = vadd.f32 %v4808_v38, %v4807_v24  ;;  %v4810_v34 = vpop.f32.mrb[94].mxu1 }
 0x941   : > { %v4811_v13 = vpop.f32.mrb[95].mxu1 }
 0x942   : > { %v4812_v37 = vadd.f32 %v4811_v13, %v4810_v34  ;;  %3067 = vrot.lane.b32.xlu0 %v4809_v12, %s5964_s7 }
 0x944   : > { %3069 = vrot.lane.b32.xlu1 %v4812_v37, %s5964_s7 }
 0x946   : > { %v4861_v32 = vpop.f32.mrb[96].mxu1 }
 0x947   : > { %v4862_v10 = vpop.f32.mrb[97].mxu1 }
 0x948   : > { %v4863_v54 = vadd.f32 %v4862_v10, %v4861_v32  ;;  %v4864_v42 = vpop.f32.mrb[98].mxu1 }
 0x949   : > { %v4865_v63 = vpop.f32.mrb[99].mxu1 }
 0x94a   : > { %v4866_v2 = vadd.f32 %v4865_v63, %v4864_v42  ;;  %3754 = vrot.lane.b32.xlu0 %v4863_v54, %s5963_s25 }
 0x94c   : > { %3756 = vrot.lane.b32.xlu1 %v4866_v2, %s5963_s25 }
 0x94e   : > { %v4867_v56 = vpop.f32.mrb[100].mxu1 }
 0x94f   : > { %v4868_v50 = vpop.f32.mrb[101].mxu1 }
 0x950   : > { %v4869_v61 = vadd.f32 %v4868_v50, %v4867_v56  ;;  %v4870_v19 = vpop.f32.mrb[102].mxu1 }
 0x951   : > { %v4871_v14 = vpop.f32.mrb[103].mxu1 }
 0x952   : > { %v4872_v45 = vadd.f32 %v4871_v14, %v4870_v19  ;;  %3758 = vrot.lane.b32.xlu0 %v4869_v61, %s5963_s25 }
 0x954   : > { %3760 = vrot.lane.b32.xlu1 %v4872_v45, %s5963_s25 }
 0x956   : > { %v4873_v46 = vpop.f32.mrb[104].mxu1 }
 0x957   : > { %v4874_v3 = vpop.f32.mrb[105].mxu1 }
 0x958   : > { %v4875_v20 = vadd.f32 %v4874_v3, %v4873_v46  ;;  %v4876_v29 = vpop.f32.mrb[106].mxu1 }
 0x959   : > { %v4877_v5 = vpop.f32.mrb[107].mxu1 }
 0x95a   : > { %v4878_v47 = vadd.f32 %v4877_v5, %v4876_v29  ;;  %3762 = vrot.lane.b32.xlu0 %v4875_v20, %s5963_s25 }
 0x95c   : > { %3764 = vrot.lane.b32.xlu1 %v4878_v47, %s5963_s25 }
 0x95e   : > { %v4879_v48 = vpop.f32.mrb[108].mxu1 }
 0x95f   : > { %v4880_v21 = vpop.f32.mrb[109].mxu1 }
 0x960   : > { %v4881_v41 = vadd.f32 %v4880_v21, %v4879_v48  ;;  %v4882_v26 = vpop.f32.mrb[110].mxu1 }
 0x961   : > { %v4883_v15 = vpop.f32.mrb[111].mxu1 }
 0x962   : > { %v4884_v58 = vadd.f32 %v4883_v15, %v4882_v26  ;;  %3766 = vrot.lane.b32.xlu0 %v4881_v41, %s5963_s25 }
 0x964   : > { %v2345_v27 = vpop.permute.xlu0 %2344  ;;  %3768 = vrot.lane.b32.xlu1 %v4884_v58, %s5963_s25 }
 0x965   : > { %2383 = vst.msk [vmem:[#allocation4 + $0x50] sm:$0xff] %vm2372_vm1, %v2345_v27 }
 0x966   : > { %v2347_v28 = vpop.permute.xlu1 %2346 }
 0x967   : > { %2384 = vst.msk [vmem:[#allocation4 + $0x58] sm:$0xff] %vm2372_vm1, %v2347_v28  ;;  %v4885_v35 = vpop.f32.mrb[112].mxu1 }
 0x968   : > { %v4886_v30 = vpop.f32.mrb[113].mxu1 }
 0x969   : > { %v4887_v52 = vadd.f32 %v4886_v30, %v4885_v35  ;;  %v4888_v25 = vpop.f32.mrb[114].mxu1 }
 0x96a   : > { %v4889_v40 = vpop.f32.mrb[115].mxu1 }
 0x96b   : > { %v4890_v23 = vadd.f32 %v4889_v40, %v4888_v25  ;;  %3770 = vrot.lane.b32.xlu0 %v4887_v52, %s5963_s25 }
 0x96c   : > { %v2349_v4 = vpop.permute.xlu0 %2348 }
 0x96d   : > { %2385 = vst.msk [vmem:[#allocation4 + $0x60] sm:$0xff] %vm2372_vm1, %v2349_v4  ;;  %3772 = vrot.lane.b32.xlu1 %v4890_v23, %s5963_s25 }
 0x96e   : > { %v2351_v18 = vpop.permute.xlu1 %2350 }
 0x96f   : > { %2386 = vst.msk [vmem:[#allocation4 + $0x68] sm:$0xff] %vm2372_vm1, %v2351_v18  ;;  %v4891_v62 = vpop.f32.mrb[116].mxu1 }
 0x970   : > { %v4892_v36 = vpop.f32.mrb[117].mxu1 }
 0x971   : > { %v4893_v55 = vadd.f32 %v4892_v36, %v4891_v62  ;;  %v4894_v43 = vpop.f32.mrb[118].mxu1 }
 0x972   : > { %v4895_v51 = vpop.f32.mrb[119].mxu1 }
 0x973   : > { %v4896_v39 = vadd.f32 %v4895_v51, %v4894_v43  ;;  %3774 = vrot.lane.b32.xlu0 %v4893_v55, %s5963_s25 }
 0x974   : > { %v2353_v22 = vpop.permute.xlu0 %2352 }
 0x975   : > { %2387 = vst.msk [vmem:[#allocation4 + $0x70] sm:$0xff] %vm2372_vm1, %v2353_v22  ;;  %3776 = vrot.lane.b32.xlu1 %v4896_v39, %s5963_s25 }
 0x976   : > { %v2355_v8 = vpop.permute.xlu1 %2354 }
 0x977   : > { %2388 = vst.msk [vmem:[#allocation4 + $0x78] sm:$0xff] %vm2372_vm1, %v2355_v8  ;;  %v4897_v9 = vpop.f32.mrb[120].mxu1 }
 0x978   : > { %v4898_v31 = vpop.f32.mrb[121].mxu1 }
 0x979   : > { %v4899_v16 = vadd.f32 %v4898_v31, %v4897_v9  ;;  %v4900_v44 = vpop.f32.mrb[122].mxu1 }
 0x97a   : > { %v4901_v57 = vpop.f32.mrb[123].mxu1 }
 0x97b   : > { %v4902_v33 = vadd.f32 %v4901_v57, %v4900_v44  ;;  %3778 = vrot.lane.b32.xlu0 %v4899_v16, %s5963_s25  ;;  %v8355_v57 = vld [vmem:[%s9108_s12] ss:$0 sm:$0xff] }
 0x97c   : > { %v3040_v60 = vpop.permute.xlu0 %3039 }
 0x97d   : > { %3088 = vst.msk [vmem:[#allocation4] sm:$0xff] %vm3087_vm2, %v3040_v60  ;;  %3780 = vrot.lane.b32.xlu1 %v4902_v33, %s5963_s25 }
 0x97e   : > { %v3042_v6 = vpop.permute.xlu1 %3041 }
 0x97f   : > { %3089 = vst.msk [vmem:[#allocation4 + $0x8] sm:$0xff] %vm3087_vm2, %v3042_v6  ;;  %v4903_v1 = vpop.f32.mrb[124].mxu1 }
 0x980   : > { %v4904_v49 = vpop.f32.mrb[125].mxu1 }
 0x981   : > { %v4905_v7 = vadd.f32 %v4904_v49, %v4903_v1  ;;  %v4906_v17 = vpop.f32.mrb[126].mxu1  ;;  %v5684_v49 = vld [vmem:[%s6305_s20 + $0x10] sm:$0xff] }
 0x982   : > { %v4907_v24 = vpop.f32.mrb[127].mxu1 }
 0x983   : > { %v4908_v38 = vadd.f32 %v4907_v24, %v4906_v17  ;;  %3782 = vrot.lane.b32.xlu0 %v4905_v7, %s5963_s25 }
 0x984   : > { %v3044_v0 = vpop.permute.xlu0 %3043 }
 0x985   : > { %3090 = vst.msk [vmem:[#allocation4 + $0x10] sm:$0xff] %vm3087_vm2, %v3044_v0  ;;  %3784 = vrot.lane.b32.xlu1 %v4908_v38, %s5963_s25  ;;  %v5685_v0 = vld [vmem:[%s6305_s20 + $0x8] sm:$0xff]  ;;  %s4504_s25 = sshll.u32 %s9112_s23, 5 }
 0x986   : > { %v3046_v12 = vpop.permute.xlu1 %3045  ;;  %s4279_s26 = sadd.s32 %s4504_s25, %s4503_s22 }
 0x987   : > { %3091 = vst.msk [vmem:[#allocation4 + $0x18] sm:$0xff] %vm3087_vm2, %v3046_v12  ;;  %s4505_s7 = sshll.u32 %s4279_s26, 7 }
 0x988   : > { %s8598_s12 = scalar_lea.hbm %s9114_s11, %s4505_s7 }
 0x98c   : > { %v3048_v34 = vpop.permute.xlu0 %3047 }
 0x98d   : > { %3092 = vst.msk [vmem:[#allocation4 + $0x20] sm:$0xff] %vm3087_vm2, %v3048_v34  ;;  %v5686_v34 = vld [vmem:[%s6305_s20] sm:$0xff] }
 0x98e   : > { %v3050_v13 = vpop.permute.xlu1 %3049 }
 0x98f   : > { %3093 = vst.msk [vmem:[#allocation4 + $0x28] sm:$0xff] %vm3087_vm2, %v3050_v13 }
 0x994   : > { %v3052_v37 = vpop.permute.xlu0 %3051 }
 0x995   : > { %3094 = vst.msk [vmem:[#allocation4 + $0x30] sm:$0xff] %vm3087_vm2, %v3052_v37 }
 0x996   : > { %v3054_v53 = vpop.permute.xlu1 %3053 }
 0x997   : > { %3095 = vst.msk [vmem:[#allocation4 + $0x38] sm:$0xff] %vm3087_vm2, %v3054_v53  ;;  %v5687_v53 = vld [vmem:[%s6305_s20 + $0x18] sm:$0xff] }
 0x99c   : > { %v3056_v32 = vpop.permute.xlu0 %3055 }
 0x99d   : > { %3096 = vst.msk [vmem:[#allocation4 + $0x40] sm:$0xff] %vm3087_vm2, %v3056_v32 }
 0x99e   : > { %v3058_v10 = vpop.permute.xlu1 %3057 }
 0x99f   : > { %3097 = vst.msk [vmem:[#allocation4 + $0x48] sm:$0xff] %vm3087_vm2, %v3058_v10 }
 0x9a4   : > { %v3060_v11 = vpop.permute.xlu0 %3059 }
 0x9a5   : > { %3098 = vst.msk [vmem:[#allocation4 + $0x50] sm:$0xff] %vm3087_vm2, %v3060_v11 }
 0x9a6   : > { %v3062_v54 = vpop.permute.xlu1 %3061 }
 0x9a7   : > { %3099 = vst.msk [vmem:[#allocation4 + $0x58] sm:$0xff] %vm3087_vm2, %v3062_v54 }
 0x9ac   : > { %v3064_v42 = vpop.permute.xlu0 %3063 }
 0x9ad   : > { %3100 = vst.msk [vmem:[#allocation4 + $0x60] sm:$0xff] %vm3087_vm2, %v3064_v42 }
 0x9ae   : > { %v3066_v63 = vpop.permute.xlu1 %3065 }
 0x9af   : > { %3101 = vst.msk [vmem:[#allocation4 + $0x68] sm:$0xff] %vm3087_vm2, %v3066_v63  ;;  %v5688_v63 = vld [vmem:[%s6305_s20 + $0x30] sm:$0xff] }
 0x9b4   : > { %v3068_v2 = vpop.permute.xlu0 %3067 }
 0x9b5   : > { %3102 = vst.msk [vmem:[#allocation4 + $0x70] sm:$0xff] %vm3087_vm2, %v3068_v2 }
 0x9b6   : > { %v3070_v59 = vpop.permute.xlu1 %3069 }
 0x9b7   : > { %3103 = vst.msk [vmem:[#allocation4 + $0x78] sm:$0xff] %vm3087_vm2, %v3070_v59 }
 0x9bc   : > { %v3755_v56 = vpop.permute.xlu0 %3754 }
 0x9bd   : > { %3803 = vst.msk [vmem:[#allocation4] sm:$0xff] %vm3802_vm3, %v3755_v56 }
 0x9be   : > { %v3757_v50 = vpop.permute.xlu1 %3756 }
 0x9bf   : > { %3804 = vst.msk [vmem:[#allocation4 + $0x8] sm:$0xff] %vm3802_vm3, %v3757_v50 }
 0x9c4   : > { %v3759_v61 = vpop.permute.xlu0 %3758  ;;  %v3819_v14 = vld [vmem:[#allocation4] sm:$0xff] }
 0x9c5   : > { %3805 = vst.msk [vmem:[#allocation4 + $0x10] sm:$0xff] %vm3802_vm3, %v3759_v61  ;;  %v5689_v61 = vld [vmem:[%s6305_s20 + $0x38] sm:$0xff] }
 0x9c6   : > { %v3761_v19 = vpop.permute.xlu1 %3760  ;;  %v3820_v45 = vld [vmem:[#allocation4 + $0x8] sm:$0xff] }
 0x9c7   : > { %3806 = vst.msk [vmem:[#allocation4 + $0x18] sm:$0xff] %vm3802_vm3, %v3761_v19  ;;  %v3835_v46 = vpack.c.bf16 %v3820_v45, %v3819_v14  ;;  %v5690_v45 = vld [vmem:[%s6305_s20 + $0x20] sm:$0xff] }
 0x9c9   : > { %4973 = vmatprep.mubr.bf16.mxu0 %v3835_v46 }
 0x9cc   : > { %v3763_v3 = vpop.permute.xlu0 %3762  ;;  %v3821_v29 = vld [vmem:[#allocation4 + $0x10] sm:$0xff] }
 0x9cd   : > { %3807 = vst.msk [vmem:[#allocation4 + $0x20] sm:$0xff] %vm3802_vm3, %v3763_v3  ;;  %v5691_v3 = vld [vmem:[%s6305_s20 + $0x28] sm:$0xff] }
 0x9ce   : > { %v3765_v20 = vpop.permute.xlu1 %3764  ;;  %v3822_v5 = vld [vmem:[#allocation4 + $0x18] sm:$0xff] }
 0x9cf   : > { %3808 = vst.msk [vmem:[#allocation4 + $0x28] sm:$0xff] %vm3802_vm3, %v3765_v20  ;;  %v3836_v47 = vpack.c.bf16 %v3822_v5, %v3821_v29 }
 0x9d1   : > { %4974 = vmatmul.mubr.bf16.vlgmr.msra.gmra.mrb[144].mxu0 %v3836_v47 }
 0x9d4   : > { %v3767_v48 = vpop.permute.xlu0 %3766  ;;  %v3823_v41 = vld [vmem:[#allocation4 + $0x20] sm:$0xff] }
 0x9d5   : > { %3809 = vst.msk [vmem:[#allocation4 + $0x30] sm:$0xff] %vm3802_vm3, %v3767_v48 }
 0x9d6   : > { %v3769_v21 = vpop.permute.xlu1 %3768  ;;  %v3824_v26 = vld [vmem:[#allocation4 + $0x28] sm:$0xff] }
 0x9d7   : > { %3810 = vst.msk [vmem:[#allocation4 + $0x38] sm:$0xff] %vm3802_vm3, %v3769_v21  ;;  %v3837_v15 = vpack.c.bf16 %v3824_v26, %v3823_v41  ;;  %v5692_v21 = vld [vmem:[%s6305_s20 + $0x50] sm:$0xff] }
 0x9d9   : > { %4977 = vmatprep.mubr.bf16.mxu0 %v3837_v15 }
 0x9dc   : > { %v3825_v27 = vld [vmem:[#allocation4 + $0x30] sm:$0xff] }
 0x9dd   : > { %v3771_v58 = vpop.permute.xlu0 %3770 }
 0x9de   : > { %3811 = vst.msk [vmem:[#allocation4 + $0x40] sm:$0xff] %vm3802_vm3, %v3771_v58  ;;  %v3826_v28 = vld [vmem:[#allocation4 + $0x38] sm:$0xff] }
 0x9df   : > { %v3773_v35 = vpop.permute.xlu1 %3772  ;;  %v3838_v30 = vpack.c.bf16 %v3826_v28, %v3825_v27  ;;  %v5693_v27 = vld [vmem:[%s6305_s20 + $0x58] sm:$0xff] }
 0x9e0   : > { %3812 = vst.msk [vmem:[#allocation4 + $0x48] sm:$0xff] %vm3802_vm3, %v3773_v35 }
 0x9e1   : > { %4978 = vmatmul.mubr.bf16.gmra.mrb[148].mxu0 %v3838_v30  ;;  %v5694_v30 = vld [vmem:[%s6305_s20 + $0x40] sm:$0xff] }
 0x9e5   : > { %v3775_v52 = vpop.permute.xlu0 %3774  ;;  %v3827_v40 = vld [vmem:[#allocation4 + $0x40] sm:$0xff] }
 0x9e6   : > { %3813 = vst.msk [vmem:[#allocation4 + $0x50] sm:$0xff] %vm3802_vm3, %v3775_v52 }
 0x9e7   : > { %v3777_v25 = vpop.permute.xlu1 %3776  ;;  %v3828_v23 = vld [vmem:[#allocation4 + $0x48] sm:$0xff] }
 0x9e8   : > { %3814 = vst.msk [vmem:[#allocation4 + $0x58] sm:$0xff] %vm3802_vm3, %v3777_v25  ;;  %v3839_v4 = vpack.c.bf16 %v3828_v23, %v3827_v40  ;;  %v5695_v25 = vld [vmem:[%s6305_s20 + $0x48] sm:$0xff] }
 0x9ea   : > { %4981 = vmatprep.mubr.bf16.mxu1 %v3839_v4 }
 0x9ed   : > { %v3779_v18 = vpop.permute.xlu0 %3778  ;;  %v3829_v36 = vld [vmem:[#allocation4 + $0x50] sm:$0xff] }
 0x9ee   : > { %3815 = vst.msk [vmem:[#allocation4 + $0x60] sm:$0xff] %vm3802_vm3, %v3779_v18 }
 0x9ef   : > { %v3781_v62 = vpop.permute.xlu1 %3780  ;;  %v3830_v55 = vld [vmem:[#allocation4 + $0x58] sm:$0xff] }
 0x9f0   : > { %3816 = vst.msk [vmem:[#allocation4 + $0x68] sm:$0xff] %vm3802_vm3, %v3781_v62  ;;  %v3840_v43 = vpack.c.bf16 %v3830_v55, %v3829_v36 }
 0x9f2   : > { %4982 = vmatmul.mubr.bf16.vlgmr.msra.gmra.mrb[128].mxu1 %v3840_v43  ;;  %v5696_v43 = vld [vmem:[%s6305_s20 + $0x60] sm:$0xff] }
 0x9f5   : > { %v3783_v51 = vpop.permute.xlu0 %3782  ;;  %v3831_v22 = vld [vmem:[#allocation4 + $0x60] sm:$0xff] }
 0x9f6   : > { %3817 = vst.msk [vmem:[#allocation4 + $0x70] sm:$0xff] %vm3802_vm3, %v3783_v51 }
 0x9f7   : > { %v3785_v39 = vpop.permute.xlu1 %3784  ;;  %v3832_v8 = vld [vmem:[#allocation4 + $0x68] sm:$0xff] }
 0x9f8   : > { %3818 = vst.msk [vmem:[#allocation4 + $0x78] sm:$0xff] %vm3802_vm3, %v3785_v39  ;;  %v3841_v9 = vpack.c.bf16 %v3832_v8, %v3831_v22  ;;  %v5697_v8 = vld [vmem:[%s6305_s20 + $0x68] sm:$0xff] }
 0x9fa   : > { %4985 = vmatprep.mubr.bf16.mxu1 %v3841_v9 }
 0x9fd   : > { %v3833_v31 = vld [vmem:[#allocation4 + $0x70] sm:$0xff] }
 0x9ff   : > { %v3834_v16 = vld [vmem:[#allocation4 + $0x78] sm:$0xff] }
 0xa00   : > { %v3842_v44 = vpack.c.bf16 %v3834_v16, %v3833_v31  ;;  %v5698_v31 = vld [vmem:[%s6305_s20 + $0x70] sm:$0xff] }
 0xa02   : > { %4986 = vmatmul.mubr.bf16.gmra.mrb[132].mxu1 %v3842_v44  ;;  %v5699_v44 = vld [vmem:[%s6305_s20 + $0x78] sm:$0xff]  ;;  %s5820_s20 = sshll.u32 %s5966_s0, 4  ;;  %s5821_s20 = int_to_ptr.vmem [resolvable:$false] %s5820_s20 }
 0xa03   : > { %p5823_p3 = scmp.lt.s32.totalorder %s8591_s24, %s5821_s20 }
 0xaa4   : > { %v4975_v33 = vpop.f32.mrb[144].mxu0 }
 0xaa5   : > { %v3957_v60 = vadd.f32 %v4975_v33, %v8355_v57  ;;  %v3948_v6 = vpop.f32.mrb[145].mxu0 }
 0xaa6   : > { %v4976_v1 = vpop.f32.mrb[146].mxu0  ;;  %v3949_v17 = vadd.f32 %v8355_v57, %v3948_v6 }
 0xaa7   : > { %v8359_v7 = vadd.f32 %v5684_v49, %v3957_v60  ;;  %v3951_v24 = vpop.f32.mrb[147].mxu0  ;;  %v3960_v37 = vadd.f32 %v4976_v1, %v8355_v57 }
 0xaa8   : > { %v3952_v38 = vadd.f32 %v8355_v57, %v3951_v24  ;;  %v8368_v13 = vadd.f32 %v5686_v34, %v3949_v17 }
 0xaa9   : > { %4033 = vadd.xlane.f32.xlu0 %v8359_v7  ;;  %v8374_v32 = vadd.f32 %v5687_v53, %v3960_v37 }
 0xaaa   : > { %v8365_v12 = vadd.f32 %v5685_v0, %v3952_v38 }
 0xaac   : > { %4031 = vadd.xlane.f32.xlu1 %v8365_v12 }
 0xaad   : > { %4029 = vadd.xlane.f32.xlu0 %v8368_v13 }
 0xab1   : > { %4035 = vadd.xlane.f32.xlu0 %v8374_v32 }
 0xab4   : > { %v4979_v10 = vpop.f32.mrb[148].mxu0 }
 0xab5   : > { %v3973_v11 = vadd.f32 %v4979_v10, %v8355_v57  ;;  %v3964_v54 = vpop.f32.mrb[149].mxu0 }
 0xab6   : > { %v4980_v42 = vpop.f32.mrb[150].mxu0  ;;  %v3965_v59 = vadd.f32 %v8355_v57, %v3964_v54 }
 0xab7   : > { %v8379_v2 = vadd.f32 %v5688_v63, %v3973_v11  ;;  %v3976_v56 = vadd.f32 %v4980_v42, %v8355_v57  ;;  %v3967_v50 = vpop.f32.mrb[151].mxu0 }
 0xab8   : > { %v3968_v14 = vadd.f32 %v8355_v57, %v3967_v50  ;;  %v8389_v46 = vadd.f32 %v5690_v45, %v3965_v59 }
 0xab9   : > { %v8384_v19 = vadd.f32 %v5689_v61, %v3976_v56  ;;  %4041 = vadd.xlane.f32.xlu0 %v8379_v2 }
 0xaba   : > { %v8393_v20 = vadd.f32 %v5691_v3, %v3968_v14 }
 0xabb   : > { %4043 = vadd.xlane.f32.xlu1 %v8384_v19 }
 0xabd   : > { %4037 = vadd.xlane.f32.xlu0 %v8389_v46 }
 0xabf   : > { %4039 = vadd.xlane.f32.xlu1 %v8393_v20 }
 0xac5   : > { %v4983_v29 = vpop.f32.mrb[128].mxu1 }
 0xac6   : > { %v3989_v5 = vadd.f32 %v4983_v29, %v8355_v57  ;;  %v3980_v47 = vpop.f32.mrb[129].mxu1 }
 0xac7   : > { %v4984_v48 = vpop.f32.mrb[130].mxu1  ;;  %v3981_v26 = vadd.f32 %v8355_v57, %v3980_v47 }
 0xac8   : > { %v8399_v41 = vadd.f32 %v5692_v21, %v3989_v5  ;;  %v3992_v15 = vadd.f32 %v4984_v48, %v8355_v57  ;;  %v3983_v58 = vpop.f32.mrb[131].mxu1 }
 0xac9   : > { %v3984_v35 = vadd.f32 %v8355_v57, %v3983_v58  ;;  %v8409_v52 = vadd.f32 %v5694_v30, %v3981_v26 }
 0xaca   : > { %v8404_v28 = vadd.f32 %v5693_v27, %v3992_v15  ;;  %4049 = vadd.xlane.f32.xlu0 %v8399_v41 }
 0xacb   : > { %v8413_v40 = vadd.f32 %v5695_v25, %v3984_v35 }
 0xacc   : > { %4051 = vadd.xlane.f32.xlu1 %v8404_v28 }
 0xace   : > { %4045 = vadd.xlane.f32.xlu0 %v8409_v52 }
 0xad0   : > { %4047 = vadd.xlane.f32.xlu1 %v8413_v40 }
 0xad5   : > { %v4987_v23 = vpop.f32.mrb[132].mxu1 }
 0xad6   : > { %v3996_v4 = vpop.f32.mrb[133].mxu1  ;;  %v4005_v55 = vadd.f32 %v4987_v23, %v8355_v57 }
 0xad7   : > { %v3997_v18 = vadd.f32 %v8355_v57, %v3996_v4  ;;  %v4988_v62 = vpop.f32.mrb[134].mxu1 }
 0xad8   : > { %v3999_v36 = vpop.f32.mrb[135].mxu1  ;;  %v4008_v22 = vadd.f32 %v4988_v62, %v8355_v57  ;;  %v8429_v16 = vadd.f32 %v5698_v31, %v4005_v55 }
 0xad9   : > { %v8420_v51 = vadd.f32 %v5696_v43, %v3997_v18  ;;  %v4000_v39 = vadd.f32 %v8355_v57, %v3999_v36 }
 0xada   : > { %v8433_v33 = vadd.f32 %v5699_v44, %v4008_v22 }
 0xadb   : > { %v8425_v9 = vadd.f32 %v5697_v8, %v4000_v39  ;;  %4053 = vadd.xlane.f32.xlu0 %v8420_v51 }
 0xadd   : > { %4055 = vadd.xlane.f32.xlu1 %v8425_v9 }
 0xadf   : > { %4057 = vadd.xlane.f32.xlu0 %v8429_v16 }
 0xae1   : > { %4059 = vadd.xlane.f32.xlu1 %v8433_v33 }
 0xb36   : > { %v4034_v60 = vpop.xlane.xlu0 %4033 }
 0xb37   : > { %v4064_v6 = vmul.f32 0.0078125, %v4034_v60 }
 0xb39   : > { %v8438_v57 = vsub.f32 %v8359_v7, %v4064_v6  ;;  %v4032_v24 = vpop.xlane.xlu1 %4031 }
 0xb3a   : > { %v4030_v1 = vpop.xlane.xlu0 %4029  ;;  %v4063_v34 = vmul.f32 0.0078125, %v4032_v24 }
 0xb3b   : > { %v4062_v49 = vmul.f32 0.0078125, %v4030_v1  ;;  %v4096_v17 = vmul.f32 %v8438_v57, %v8438_v57 }
 0xb3c   : > { %v8451_v7 = vsub.f32 %v8365_v12, %v4063_v34 }
 0xb3d   : > { %v8443_v38 = vsub.f32 %v8368_v13, %v4062_v49  ;;  %4114 = vadd.xlane.f32.xlu0 %v4096_v17 }
 0xb3e   : > { %v4036_v0 = vpop.xlane.xlu0 %4035  ;;  %v4095_v42 = vmul.f32 %v8451_v7, %v8451_v7 }
 0xb3f   : > { %v4065_v37 = vmul.f32 0.0078125, %v4036_v0  ;;  %v4094_v53 = vmul.f32 %v8443_v38, %v8443_v38 }
 0xb41   : > { %v8448_v10 = vsub.f32 %v8374_v32, %v4065_v37  ;;  %4110 = vadd.xlane.f32.xlu0 %v4094_v53 }
 0xb43   : > { %v4097_v11 = vmul.f32 %v8448_v10, %v8448_v10 }
 0xb45   : > { %4116 = vadd.xlane.f32.xlu1 %v4097_v11 }
 0xb46   : > { %v4042_v13 = vpop.xlane.xlu0 %4041 }
 0xb47   : > { %v4068_v54 = vmul.f32 0.0078125, %v4042_v13 }
 0xb48   : > { %v4044_v63 = vpop.xlane.xlu1 %4043 }
 0xb49   : > { %v8458_v59 = vsub.f32 %v8379_v2, %v4068_v54  ;;  %v4069_v56 = vmul.f32 0.0078125, %v4044_v63  ;;  %4112 = vadd.xlane.f32.xlu1 %v4095_v42  ;;  %v8520_v54 = vld [vmem:[%s9109_s21] ss:$0 sm:$0xff]  ;;  %s5816_s21 = scalar_lea.vmem %s8591_s24, 2048 }
 0xb4a   : > { %v4038_v32 = vpop.xlane.xlu0 %4037  ;;  %p5817_p0 = scmp.ne.s32.totalorder %s8591_s24, %s5816_s21 }
 0xb4b   : > { %v8461_v50 = vsub.f32 %v8384_v19, %v4069_v56  ;;  %v4066_v12 = vmul.f32 0.0078125, %v4038_v32  ;;  %v4100_v61 = vmul.f32 %v8458_v59, %v8458_v59  ;;  %v8526_v32 = vld [vmem:[%s9110_s17] ss:$0 sm:$0xff]  ;;  %s5822_s17 = scalar_lea.vmem %s5821_s20, 4096 }
 0xb4c   : > { %v4040_v14 = vpop.xlane.xlu1 %4039  ;;  %p5818_p6 = pnand %p5817_p0, %p6224_p11  ;;  %p5824_p9 = scmp.lt.s32.totalorder %s5822_s17, %s5816_s21 }
 0xb4d   : > { %v8466_v45 = vsub.f32 %v8389_v46, %v4066_v12  ;;  %v4067_v3 = vmul.f32 0.0078125, %v4040_v14  ;;  %4122 = vadd.xlane.f32.xlu0 %v4100_v61  ;;  %v4101_v2 = vmul.f32 %v8461_v50, %v8461_v50 }
 0xb4e   : > { %p5819_p1 = pneg %p5818_p6  ;;  %p5825_p4 = por %p5824_p9, %p5823_p3 }
 0xb4f   : > { %v8471_v29 = vsub.f32 %v8393_v20, %v4067_v3  ;;  %4124 = vadd.xlane.f32.xlu1 %v4101_v2  ;;  %v4098_v19 = vmul.f32 %v8466_v45, %v8466_v45 }
 0xb50   : > { %p5826_p8 = pnand %p5825_p4, %p5819_p1 }
 0xb51   : > { %4118 = vadd.xlane.f32.xlu0 %v4098_v19  ;;  %v4099_v5 = vmul.f32 %v8471_v29, %v8471_v29 }
 0xb53   : > { %4120 = vadd.xlane.f32.xlu1 %v4099_v5 }
 0xb57   : > { %v4050_v47 = vpop.xlane.xlu0 %4049 }
 0xb58   : > { %v4072_v46 = vmul.f32 0.0078125, %v4050_v47 }
 0xb59   : > { %v4052_v48 = vpop.xlane.xlu1 %4051 }
 0xb5a   : > { %v8478_v21 = vsub.f32 %v8399_v41, %v4072_v46  ;;  %v4073_v26 = vmul.f32 0.0078125, %v4052_v48 }
 0xb5b   : > { %v4046_v15 = vpop.xlane.xlu0 %4045 }
 0xb5c   : > { %v8481_v20 = vsub.f32 %v8404_v28, %v4073_v26  ;;  %v4070_v58 = vmul.f32 0.0078125, %v4046_v15  ;;  %v4104_v27 = vmul.f32 %v8478_v21, %v8478_v21 }
 0xb5d   : > { %v4048_v35 = vpop.xlane.xlu1 %4047 }
 0xb5e   : > { %v8486_v30 = vsub.f32 %v8409_v52, %v4070_v58  ;;  %v4071_v25 = vmul.f32 0.0078125, %v4048_v35  ;;  %4130 = vadd.xlane.f32.xlu0 %v4104_v27  ;;  %v4105_v23 = vmul.f32 %v8481_v20, %v8481_v20 }
 0xb60   : > { %v8491_v41 = vsub.f32 %v8413_v40, %v4071_v25  ;;  %4132 = vadd.xlane.f32.xlu1 %v4105_v23  ;;  %v4102_v28 = vmul.f32 %v8486_v30, %v8486_v30 }
 0xb62   : > { %4126 = vadd.xlane.f32.xlu0 %v4102_v28  ;;  %v4103_v4 = vmul.f32 %v8491_v41, %v8491_v41 }
 0xb64   : > { %4128 = vadd.xlane.f32.xlu1 %v4103_v4 }
 0xb68   : > { %v4054_v18 = vpop.xlane.xlu0 %4053 }
 0xb69   : > { %v4074_v52 = vmul.f32 0.0078125, %v4054_v18 }
 0xb6a   : > { %v4056_v62 = vpop.xlane.xlu1 %4055 }
 0xb6b   : > { %v8498_v36 = vsub.f32 %v8420_v51, %v4074_v52  ;;  %v4075_v55 = vmul.f32 0.0078125, %v4056_v62 }
 0xb6c   : > { %v4058_v43 = vpop.xlane.xlu0 %4057 }
 0xb6d   : > { %v8501_v40 = vsub.f32 %v8425_v9, %v4075_v55  ;;  %v4076_v39 = vmul.f32 0.0078125, %v4058_v43  ;;  %v4106_v22 = vmul.f32 %v8498_v36, %v8498_v36 }
 0xb6e   : > { %v4060_v8 = vpop.xlane.xlu1 %4059 }
 0xb6f   : > { %v8506_v31 = vsub.f32 %v8429_v16, %v4076_v39  ;;  %v4077_v44 = vmul.f32 0.0078125, %v4060_v8  ;;  %4134 = vadd.xlane.f32.xlu0 %v4106_v22  ;;  %v4107_v60 = vmul.f32 %v8501_v40, %v8501_v40 }
 0xb71   : > { %v8511_v51 = vsub.f32 %v8433_v33, %v4077_v44  ;;  %4136 = vadd.xlane.f32.xlu1 %v4107_v60  ;;  %v4108_v9 = vmul.f32 %v8506_v31, %v8506_v31 }
 0xb73   : > { %4138 = vadd.xlane.f32.xlu0 %v4108_v9  ;;  %v4109_v6 = vmul.f32 %v8511_v51, %v8511_v51 }
 0xb75   : > { %4140 = vadd.xlane.f32.xlu1 %v4109_v6 }
 0xbca   : > { %v4115_v1 = vpop.xlane.xlu0 %4114 }
 0xbcb   : > { %v4144_v16 = vmul.f32 0.0078125, %v4115_v1 }
 0xbcd   : > { %v4160_v49 = vadd.f32 1e-05, %v4144_v16 }
 0xbce   : > { %v4111_v17 = vpop.xlane.xlu0 %4110 }
 0xbcf   : > { %5617 = vrsqrt.f32 %v4160_v49  ;;  %v4142_v24 = vmul.f32 0.0078125, %v4111_v17 }
 0xbd1   : > { %v4158_v0 = vadd.f32 1e-05, %v4142_v24 }
 0xbd2   : > { %v4117_v34 = vpop.xlane.xlu1 %4116 }
 0xbd3   : > { %5619 = vrsqrt.f32 %v4158_v0  ;;  %v4145_v33 = vmul.f32 0.0078125, %v4117_v34 }
 0xbd5   : > { %v4161_v37 = vadd.f32 1e-05, %v4145_v33 }
 0xbd6   : > { %v4113_v53 = vpop.xlane.xlu1 %4112 }
 0xbd7   : > { %5621 = vrsqrt.f32 %v4161_v37  ;;  %v4143_v11 = vmul.f32 0.0078125, %v4113_v53 }
 0xbd9   : > { %v5618_v13 = vpop.eup %5617  ;;  %v4159_v42 = vadd.f32 1e-05, %v4143_v11 }
 0xbda   : > { %v4192_v63 = vmul.f32 %v5618_v13, %v8438_v57  ;;  %v4123_v56 = vpop.xlane.xlu0 %4122 }
 0xbdb   : > { %5623 = vrsqrt.f32 %v4159_v42  ;;  %v4148_v12 = vmul.f32 0.0078125, %v4123_v56 }
 0xbdc   : > { %v4214_v61 = vmul.f32 %v8520_v54, %v4192_v63  ;;  %v4125_v14 = vpop.xlane.xlu1 %4124 }
 0xbdd   : > { %v5620_v3 = vpop.eup %5619  ;;  %v4164_v2 = vadd.f32 1e-05, %v4148_v12  ;;  %v4149_v19 = vmul.f32 0.0078125, %v4125_v14 }
 0xbde   : > { %v4236_v5 = vadd.f32 %v8526_v32, %v4214_v61  ;;  %v4190_v47 = vmul.f32 %v5620_v3, %v8443_v38  ;;  %v4119_v57 = vpop.xlane.xlu0 %4118 }
 0xbdf   : > { %5625 = vrsqrt.f32 %v4164_v2  ;;  %v4165_v46 = vadd.f32 1e-05, %v4149_v19  ;;  %v4146_v48 = vmul.f32 0.0078125, %v4119_v57 }
 0xbe0   : > { %4252 = vst [vmem:[%s6319_s18 + $0x10] sm:$0xff] %v4236_v5  ;;  %v4212_v26 = vmul.f32 %v8520_v54, %v4190_v47  ;;  %v4121_v15 = vpop.xlane.xlu1 %4120 }
 0xbe1   : > { %v5622_v58 = vpop.eup %5621  ;;  %5627 = vrsqrt.f32 %v4165_v46  ;;  %v4162_v27 = vadd.f32 1e-05, %v4146_v48  ;;  %v4147_v35 = vmul.f32 0.0078125, %v4121_v15 }
 0xbe2   : > { %v4234_v25 = vadd.f32 %v8526_v32, %v4212_v26  ;;  %v4193_v23 = vmul.f32 %v5622_v58, %v8448_v10 }
 0xbe3   : > { %5629 = vrsqrt.f32 %v4162_v27  ;;  %v4163_v38 = vadd.f32 1e-05, %v4147_v35 }
 0xbe4   : > { %4250 = vst [vmem:[%s6319_s18] sm:$0xff] %v4234_v25  ;;  %v4215_v28 = vmul.f32 %v8520_v54, %v4193_v23 }
 0xbe5   : > { %v5624_v4 = vpop.eup %5623  ;;  %5631 = vrsqrt.f32 %v4163_v38 }
 0xbe6   : > { %v4237_v18 = vadd.f32 %v8526_v32, %v4215_v28  ;;  %v4191_v52 = vmul.f32 %v5624_v4, %v8451_v7 }
 0xbe8   : > { %4253 = vst [vmem:[%s6319_s18 + $0x18] sm:$0xff] %v4237_v18  ;;  %v4213_v62 = vmul.f32 %v8520_v54, %v4191_v52 }
 0xbe9   : > { %v5626_v55 = vpop.eup %5625 }
 0xbea   : > { %v4235_v43 = vadd.f32 %v8526_v32, %v4213_v62  ;;  %v4196_v10 = vmul.f32 %v5626_v55, %v8458_v59 }
 0xbeb   : > { %v5628_v39 = vpop.eup %5627  ;;  %v4131_v22 = vpop.xlane.xlu0 %4130 }
 0xbec   : > { %4251 = vst [vmem:[%s6319_s18 + $0x8] sm:$0xff] %v4235_v43  ;;  %v4218_v8 = vmul.f32 %v8520_v54, %v4196_v10  ;;  %v4197_v44 = vmul.f32 %v5628_v39, %v8461_v50  ;;  %v4152_v60 = vmul.f32 0.0078125, %v4131_v22 }
 0xbed   : > { %v5630_v9 = vpop.eup %5629  ;;  %v4133_v6 = vpop.xlane.xlu1 %4132 }
 0xbee   : > { %v4240_v7 = vadd.f32 %v8526_v32, %v4218_v8  ;;  %v4219_v1 = vmul.f32 %v8520_v54, %v4197_v44  ;;  %v4194_v16 = vmul.f32 %v5630_v9, %v8466_v45  ;;  %v4168_v49 = vadd.f32 1e-05, %v4152_v60 }
 0xbef   : > { %v5632_v59 = vpop.eup %5631  ;;  %v4153_v17 = vmul.f32 0.0078125, %v4133_v6  ;;  %v4127_v24 = vpop.xlane.xlu0 %4126 }
 0xbf0   : > { %4256 = vst [vmem:[%s6319_s18 + $0x30] sm:$0xff] %v4240_v7  ;;  %v4241_v0 = vadd.f32 %v8526_v32, %v4219_v1  ;;  %v4216_v50 = vmul.f32 %v8520_v54, %v4194_v16  ;;  %v4195_v34 = vmul.f32 %v5632_v59, %v8471_v29  ;;  %5633 = vrsqrt.f32 %v4168_v49 }
 0xbf1   : > { %v4169_v33 = vadd.f32 1e-05, %v4153_v17  ;;  %v4150_v37 = vmul.f32 0.0078125, %v4127_v24  ;;  %v4129_v53 = vpop.xlane.xlu1 %4128 }
 0xbf2   : > { %4257 = vst [vmem:[%s6319_s18 + $0x38] sm:$0xff] %v4241_v0  ;;  %v4238_v45 = vadd.f32 %v8526_v32, %v4216_v50  ;;  %v4217_v11 = vmul.f32 %v8520_v54, %v4195_v34  ;;  %v4151_v13 = vmul.f32 0.0078125, %v4129_v53 }
 0xbf3   : > { %5635 = vrsqrt.f32 %v4169_v33  ;;  %v4166_v42 = vadd.f32 1e-05, %v4150_v37 }
 0xbf4   : > { %4254 = vst [vmem:[%s6319_s18 + $0x20] sm:$0xff] %v4238_v45  ;;  %v4239_v63 = vadd.f32 %v8526_v32, %v4217_v11  ;;  %v4167_v56 = vadd.f32 1e-05, %v4151_v13 }
 0xbf5   : > { %5637 = vrsqrt.f32 %v4166_v42 }
 0xbf6   : > { %4255 = vst [vmem:[%s6319_s18 + $0x28] sm:$0xff] %v4239_v63  ;;  %5639 = vrsqrt.f32 %v4167_v56 }
 0xbfa   : > { %v5634_v29 = vpop.eup %5633 }
 0xbfb   : > { %v4200_v12 = vmul.f32 %v5634_v29, %v8478_v21 }
 0xbfc   : > { %v4135_v61 = vpop.xlane.xlu0 %4134 }
 0xbfd   : > { %v5636_v14 = vpop.eup %5635  ;;  %v4222_v3 = vmul.f32 %v8520_v54, %v4200_v12  ;;  %v4154_v2 = vmul.f32 0.0078125, %v4135_v61 }
 0xbfe   : > { %v4201_v19 = vmul.f32 %v5636_v14, %v8481_v20  ;;  %v4137_v5 = vpop.xlane.xlu1 %4136 }
 0xbff   : > { %v5638_v47 = vpop.eup %5637  ;;  %v4244_v57 = vadd.f32 %v8526_v32, %v4222_v3  ;;  %v4170_v46 = vadd.f32 1e-05, %v4154_v2  ;;  %v4155_v48 = vmul.f32 0.0078125, %v4137_v5 }
 0xc00   : > { %v5640_v26 = vpop.eup %5639  ;;  %v4223_v15 = vmul.f32 %v8520_v54, %v4201_v19  ;;  %v4198_v58 = vmul.f32 %v5638_v47, %v8486_v30  ;;  %v4139_v21 = vpop.xlane.xlu0 %4138 }
 0xc01   : > { %4260 = vst [vmem:[%s6319_s18 + $0x50] sm:$0xff] %v4244_v57  ;;  %v4199_v27 = vmul.f32 %v5640_v26, %v8491_v41  ;;  %5641 = vrsqrt.f32 %v4170_v46  ;;  %v4171_v20 = vadd.f32 1e-05, %v4155_v48  ;;  %v4156_v35 = vmul.f32 0.0078125, %v4139_v21 }
 0xc02   : > { %v4245_v25 = vadd.f32 %v8526_v32, %v4223_v15  ;;  %v4220_v23 = vmul.f32 %v8520_v54, %v4198_v58  ;;  %v4141_v38 = vpop.xlane.xlu1 %4140 }
 0xc03   : > { %v4221_v28 = vmul.f32 %v8520_v54, %v4199_v27  ;;  %5643 = vrsqrt.f32 %v4171_v20  ;;  %v4172_v30 = vadd.f32 1e-05, %v4156_v35  ;;  %v4157_v4 = vmul.f32 0.0078125, %v4141_v38 }
 0xc04   : > { %4261 = vst [vmem:[%s6319_s18 + $0x58] sm:$0xff] %v4245_v25  ;;  %v4242_v41 = vadd.f32 %v8526_v32, %v4220_v23 }
 0xc05   : > { %v4243_v18 = vadd.f32 %v8526_v32, %v4221_v28  ;;  %5645 = vrsqrt.f32 %v4172_v30  ;;  %v4173_v52 = vadd.f32 1e-05, %v4157_v4 }
 0xc06   : > { %4258 = vst [vmem:[%s6319_s18 + $0x40] sm:$0xff] %v4242_v41 }
 0xc07   : > { %4259 = vst [vmem:[%s6319_s18 + $0x48] sm:$0xff] %v4243_v18  ;;  %5647 = vrsqrt.f32 %v4173_v52 }
 0xc0b   : > { %v5642_v62 = vpop.eup %5641 }
 0xc0c   : > { %v4202_v55 = vmul.f32 %v5642_v62, %v8498_v36 }
 0xc0d   : > { %v5644_v43 = vpop.eup %5643 }
 0xc0e   : > { %v4224_v10 = vmul.f32 %v8520_v54, %v4202_v55  ;;  %v4203_v39 = vmul.f32 %v5644_v43, %v8501_v40 }
 0xc0f   : > { %v5646_v22 = vpop.eup %5645 }
 0xc10   : > { %v4246_v8 = vadd.f32 %v8526_v32, %v4224_v10  ;;  %v4225_v44 = vmul.f32 %v8520_v54, %v4203_v39  ;;  %v4204_v60 = vmul.f32 %v5646_v22, %v8506_v31 }
 0xc11   : > { %v5648_v36 = vpop.eup %5647 }
 0xc12   : > { %4262 = vst [vmem:[%s6319_s18 + $0x60] sm:$0xff] %v4246_v8  ;;  %v4247_v9 = vadd.f32 %v8526_v32, %v4225_v44  ;;  %v4226_v6 = vmul.f32 %v8520_v54, %v4204_v60  ;;  %v4205_v40 = vmul.f32 %v5648_v36, %v8511_v51 }
 0xc14   : > { %4263 = vst [vmem:[%s6319_s18 + $0x68] sm:$0xff] %v4247_v9  ;;  %v4248_v7 = vadd.f32 %v8526_v32, %v4226_v6  ;;  %v4227_v1 = vmul.f32 %v8520_v54, %v4205_v40 }
 0xc16   : > { %4264 = vst [vmem:[%s6319_s18 + $0x70] sm:$0xff] %v4248_v7  ;;  %v4249_v31 = vadd.f32 %v8526_v32, %v4227_v1 }
 0xc18   : > { %4265 = vst [vmem:[%s6319_s18 + $0x78] sm:$0xff] %v4249_v31 }
 0xc19   : > { %5829 = shalt.err (!%p5826_p8)
}
 0xc1a   : > { %s5830_s19 = scalar_lea.hbm %s8598_s12, 2048  ;;  %s5834_s23 = scalar_lea.hbm %s9115_s6, 8192 }
 0xc1b   : > { %p5831_p7 = scmp.ne.s32.totalorder %s8598_s12, %s5830_s19  ;;  %p5835_p12 = scmp.lt.u32.totalorder %s8598_s12, %s9115_s6 }
 0xc1c   : > { %p5836_p13 = scmp.lt.u32.totalorder %s5834_s23, %s5830_s19  ;;  %p5838_p0 = scmp.lt.u32.totalorder %s5830_s19, %s8598_s12 }
 0xc1d   : > { %p5832_p2 = pnand %p5831_p7, %p6224_p11 }
 0xc1e   : > { %p5837_p5 = por %p5836_p13, %p5835_p12 }
 0xc1f   : > { %p5833_p10 = pneg %p5832_p2 }
 0xc20   : > { %p5839_p6 = por %p5838_p0, %p5837_p5 }
 0xc22   : > { %p5840_p1 = pnand %p5839_p6, %p5833_p10 }
 0xc24   : > { %5843 = shalt.err (!%p5840_p1)
}
 0xc25   : > { %s5967_s26 = smov 128   ;;  %s5968_s7 = smov 8  }
 0xc26   : > { %5065 = dma.vmem_to_hbm [thread:$0]  (%p6224_p11), %s8591_s24, 2048, %s8598_s12, %s8603_s3, %s5967_s26, %s5967_s26, %s5968_s7  }
 0xc27 PF: > { %s9116_s8 = sld [smem:[#allocation19_spill]]  ;;  %s9117_s27 = sld [smem:[#allocation23_spill]] }
 0xc28   : > { %p5090_p3 = scmp.ge.s32.totalorder %s5950_s15, 2 }
 0xc2d   : > { %s4297_s11 = sand.u32 1, %s9116_s8   ;;  %p9118_p9 = scmp.ne.s32.totalorder %s9117_s27, 0 }
 0xc2e   : > { %s4298_s21 = scalar_lea.sflag [#allocation7], %s4297_s11 }
 0xc2f   : > { %p5082_p4 = pnand %p5090_p3, %p9118_p9 }
 0xc31   : > { %5905 = dma.done.wait (!%p5082_p4), %s4298_s21, 2048  }
 0xc32   : > { %5907 = vsyncadd (!%p5082_p4), %s4298_s21, 4294965248  ;;  %s28_s15 = sadd.s32 1, %s5950_s15   ;;  %s9119_s5 = sld [smem:[#allocation24_spill]] }
 0xc33   : > { %p25_p8 = scmp.ge.s32.totalorder %s28_s15, 6   ;;  %s9120_s24 = smov %s9136_s30 }
 0xc34   : > { %s9121_s27 = smov %s5914_s28  ;;  %s9122_s28 = smov %s5918_s29 }
 0xc35   : > { %s9123_s29 = smov %s6244_s4  ;;  %s9124_s30 = smov %s5926_s9 }
 0xc36   : > { %s9125_s9 = smov %s5930_s10  ;;  %s9126_s10 = smov %s6241_s2 }
 0xc37   : > { %s9127_s11 = smov %s5942_s13  ;;  %s9128_s12 = smov %s5946_s14 }
 0xc38   : > { %s9129_s13 = smov %s9119_s5  ;;  %s9130_s14 = smov %s9120_s24 }
 0xc39   :  { %27 = sbr.rel (!%p25_p8) target bundleno = 21 (0x15), region = 122 }
 0xc40   :  { %4303 = vsyncpa [#allocation6], 1 }
 0xc41   :  { %4305 = vsyncpa [#allocation6 + $0x1], 1 }
 0xc42   :  { %4306 = vsyncpa [#allocation9], 1 }
 0xc43   :  { %4308 = vsyncpa [#allocation9 + $0x1], 1 }
 0xc44   :  { %4309 = vsyncpa [#allocation12], 1 }
 0xc45   :  { %4310 = vsyncpa [#allocation7], 1 }
 0xc46   :  { %4312 = vsyncpa [#allocation7 + $0x1], 1 }

</bundles_post_ra>
